<compile_context>
chip_gen: v5e
topology: v5e:2x2
jax: 0.10.0
libtpu: 0.0.40
codegen_flags: <defaults>
</compile_context>

<pallas_src>
import functools
import math

import jax
import jax.numpy as jnp
from jax import lax
from jax.experimental import pallas as pl
from jax.experimental.pallas import tpu as pltpu


def _round_up(x, m):
    return ((x + m - 1) // m) * m


def _fused_mha_kernel(xk_ref, xq_ref, w_ref, bk_ref, bq_ref, out_ref, *, h, d):
    """PE + all-head QKV projection + attention + correlation, all batches fused.

    xk_ref : (B, C, Lk)   support features, channels-major (NCHW-flattened)
    xq_ref : (B, C, Lq)   query features, channels-major
    w_ref  : (3*h*d, C)   packed [Wq_heads/sqrt(d) ; Wk_heads ; Wv_heads]   (bf16)
    bk_ref : (3*h*d, Lk)  support bias = b_packed + W_packed @ pe^T         (f32)
    bq_ref : (3*h*d, 1)   query bias   = b_packed                           (f32)
    out_ref: (B, Lq, round_up(h*Lk, 128))  correlation feat, heads on last axis
    """
    batch = xk_ref.shape[0]
    lk = xk_ref.shape[2]
    hd = h * d
    inv_sqrt_d = 1.0 / math.sqrt(d)
    w = w_ref[...]                                            # (3hd, C) bf16

    def sdpa_cm(q, k, v):
        # channels-major q:(d,M), k:(d,N), v:(d,N) -> (M, d) f32.
        # scores already include 1/sqrt(d) (folded into Wq / bq rows).
        s = lax.dot_general(q, k, (((0,), (0,)), ((), ())),          # TN: contract d
                            preferred_element_type=jnp.float32)      # (M, N)
        s = s - jnp.max(s, axis=-1, keepdims=True)
        e = jnp.exp(s)
        # approx reciprocal routes the divide to the EUP slot (free next to VPU work)
        p = e * pl.reciprocal(jnp.sum(e, axis=-1, keepdims=True), approx=True)
        return lax.dot_general(p.astype(jnp.bfloat16), v,            # NT: contract N
                               (((1,), (1,)), ((), ())),
                               preferred_element_type=jnp.float32)   # (M, d)

    for b in range(batch):                                  # static, unrolled
        xk = xk_ref[b].astype(jnp.bfloat16)                 # (C, Lk)
        xq = xq_ref[b].astype(jnp.bfloat16)                 # (C, Lq)
        # two separate projections (no concat copy), bf16 MXU inputs / f32 accumulate
        pk = (jnp.dot(w, xk, preferred_element_type=jnp.float32)
              + bk_ref[...]).astype(jnp.bfloat16)           # (3hd, Lk)
        pq = (jnp.dot(w, xq, preferred_element_type=jnp.float32)
              + bq_ref[...]).astype(jnp.bfloat16)           # (3hd, Lq)

        for i in range(h):                                  # static, unrolled
            r0 = i * d                                      # sublane-aligned row slices
            q_k, k_k, v_k = (pk[r0:r0 + d], pk[hd + r0:hd + r0 + d],
                             pk[2 * hd + r0:2 * hd + r0 + d])
            q_q, k_q, v_q = (pq[r0:r0 + d], pq[hd + r0:hd + r0 + d],
                             pq[2 * hd + r0:2 * hd + r0 + d])

            z_k = sdpa_cm(q_k, k_k, v_k) * inv_sqrt_d       # (Lk, d), 2nd 1/sqrt(d) here
            z_q = sdpa_cm(q_q, k_q, v_q)                    # (Lq, d)

            corr = lax.dot_general(z_q.astype(jnp.bfloat16), z_k.astype(jnp.bfloat16),
                                   (((1,), (1,)), ((), ())),
                                   preferred_element_type=jnp.float32)   # (Lq, Lk)
            # stream each head's result directly into its slice of the output
            out_ref[b, :, i * lk:(i + 1) * lk] = corr


def multihead_attention(support_flat, query_flat, pe, wq, bq, wk, bk, wv, bv):
    """support_flat: (B, C, Lk), query_flat: (B, C, Lq) (channels-major, NCHW-flattened),
    pe: (Lk, C), per-head weights w*: (h, C, d), biases b*: (h, d).

    Returns correlation_feat: (B, Lq, h*Lk) == torch.cat over heads along dim 2.
    """
    B, C, Lk = support_flat.shape
    _, _, Lq = query_flat.shape
    h, _, d = wq.shape
    hd = h * d
    inv_sqrt_d = 1.0 / math.sqrt(d)

    # ---- one-time packing in the wrapper (f32) --------------------------------
    def pack_rows(w):            # (h, C, d) -> (h*d, C), channels-major row form
        return jnp.transpose(w, (0, 2, 1)).reshape(hd, C)

    w_packed = jnp.concatenate(
        [pack_rows(wq) * inv_sqrt_d, pack_rows(wk), pack_rows(wv)], axis=0)    # (3hd, C)
    b_packed = jnp.concatenate(
        [bq.reshape(hd) * inv_sqrt_d, bk.reshape(hd), bv.reshape(hd)])         # (3hd,)
    bq_col = b_packed.reshape(3 * hd, 1)                                       # query bias
    # (key + pe) @ W == key @ W + pe @ W  -> fold the PE into the support bias.
    bk_mat = bq_col + w_packed @ pe.T                                          # (3hd, Lk)
    w_bf16 = w_packed.astype(jnp.bfloat16)

    out_pad = _round_up(h * Lk, 128)                  # lane-dense output writeback
    kernel = functools.partial(_fused_mha_kernel, h=h, d=d)

    out = pl.pallas_call(
        kernel,
        out_shape=jax.ShapeDtypeStruct((B, Lq, out_pad), jnp.float32),
        grid_spec=pltpu.PrefetchScalarGridSpec(
            num_scalar_prefetch=0,
            grid=(1,),                                 # B folded in (single-TC friendly)
            in_specs=[
                pl.BlockSpec((B, C, Lk), lambda i: (0, 0, 0)),     # support (key) feats
                pl.BlockSpec((B, C, Lq), lambda i: (0, 0, 0)),     # query feats
                pl.BlockSpec((3 * hd, C), lambda i: (0, 0)),       # packed QKV weight (bf16)
                pl.BlockSpec((3 * hd, Lk), lambda i: (0, 0)),      # support bias (incl. PE)
                pl.BlockSpec((3 * hd, 1), lambda i: (0, 0)),       # query bias
            ],
            out_specs=pl.BlockSpec((B, Lq, out_pad), lambda i: (0, 0, 0)),
        ),
        compiler_params=pltpu.CompilerParams(
            dimension_semantics=("arbitrary",)),
    )(support_flat, query_flat, w_bf16, bk_mat, bq_col)

    return out[:, :, :h * Lk]


def positional_encoding(max_len, d_model):
    """Sinusoidal PE identical to the PyTorch PositionalEncoding module."""
    assert d_model % 2 == 0, "PositionalEncoding requires an even d_model"
    position = jnp.arange(max_len, dtype=jnp.float32)[:, None]            # (L, 1)
    div_term = jnp.exp(jnp.arange(0, d_model, 2, dtype=jnp.float32)
                       * (-math.log(10000.0) / float(d_model)))           # (d/2,)
    angles = position * div_term                                          # (L, d/2)
    pe = jnp.stack([jnp.sin(angles), jnp.cos(angles)], axis=-1)           # (L, d/2, 2)
    return pe.reshape(max_len, d_model)                                   # (L, d)


def multircnn_correlation_forward(base_feat, support_feat, params):
    """Effective forward of _multiRCNN up to correlation_feat.

    base_feat   : (B, C, Hq, Wq)  NCHW query feature map (stand-in for RCNN_base output)
    support_feat: (B, C, Hs, Ws)  NCHW averaged support feature map (unpooled)
    Returns correlation_feat of shape (B, Hq*Wq, h * Hs*Ws).
    """
    B, C, Hq, Wq = base_feat.shape
    _, _, Hs, Ws = support_feat.shape

    # view(B, C, -1) is a free (contiguous) reshape; the transpose(1, 2) and the
    # PE add are fused into the Pallas kernel / folded into the packed bias.
    query_flat = base_feat.reshape(B, C, Hq * Wq)
    support_flat = support_feat.reshape(B, C, Hs * Ws)
    pe = positional_encoding(Hs * Ws, C)            # (Lk, C)

    return multihead_attention(
        support_flat, query_flat, pe,
        params["wq"], params["bq"],
        params["wk"], params["bk"],
        params["wv"], params["bv"],
    )


def init_params(key, h, dim_in, d_feat):
    """init.normal_(weight, std=0.01); init.constant_(bias, 0) per head."""
    kq, kk, kv = jax.random.split(key, 3)
    # PyTorch Linear weight is (out, in); we store the transpose (in, out).
    wq = 0.01 * jax.random.normal(kq, (h, dim_in, d_feat), jnp.float32)
    wk = 0.01 * jax.random.normal(kk, (h, dim_in, d_feat), jnp.float32)
    wv = 0.01 * jax.random.normal(kv, (h, dim_in, d_feat), jnp.float32)
    zeros = jnp.zeros((h, d_feat), jnp.float32)
    return {"wq": wq, "bq": zeros, "wk": wk, "bk": zeros, "wv": wv, "bv": zeros}


def _reference_jax(base_feat, support_feat, params):
    """Pure-JAX f32 reference of the same computation (per-head, exact softmax)."""
    B, C, Hq, Wq = base_feat.shape
    _, _, Hs, Ws = support_feat.shape
    support_mat = jnp.transpose(support_feat.reshape(B, C, Hs * Ws), (0, 2, 1))
    query_mat = jnp.transpose(base_feat.reshape(B, C, Hq * Wq), (0, 2, 1))
    support_mat = support_mat + positional_encoding(Hs * Ws, C)[None]

    h, _, d = params["wq"].shape
    outs = []
    for i in range(h):
        def attend(x):
            q = x @ params["wq"][i] + params["bq"][i]
            k = x @ params["wk"][i] + params["bk"][i]
            v = x @ params["wv"][i] + params["bv"][i]
            s = (q @ jnp.swapaxes(k, -1, -2)) / math.sqrt(d)
            p = jax.nn.softmax(s, axis=-1)
            return p @ v
        z_k = attend(support_mat)
        z_q = attend(query_mat)
        outs.append((z_q @ jnp.swapaxes(z_k, -1, -2)) / math.sqrt(d))
    return jnp.concatenate(outs, axis=2)


if __name__ == "__main__":
    # Small shapes consistent with the module's forward:
    #   pool_feat_dim (C) -> 32, d_feat -> 16, n_head -> 4,
    #   query feature map 8x8 (Lq = 64), support feature map 4x4 (Lk = 16).
    B, C, Hq, Wq = 2, 32, 8, 8
    Hs, Ws = 4, 4
    n_head, d_feat = 4, 16

    key = jax.random.PRNGKey(0)
    k1, k2, k3 = jax.random.split(key, 3)
    base_feat = jax.random.normal(k1, (B, C, Hq, Wq), jnp.float32)      # NCHW
    support_feat = jax.random.normal(k2, (B, C, Hs, Ws), jnp.float32)   # NCHW
    params = init_params(k3, n_head, C, d_feat)

    out = multircnn_correlation_forward(base_feat, support_feat, params)
    out = jax.block_until_ready(out)

    ref = _reference_jax(base_feat, support_feat, params)
    assert out.shape == (B, Hq * Wq, n_head * Hs * Ws), out.shape

    # bf16 MXU inputs + approx softmax reciprocal -> compare at bf16-level tolerance
    # relative to the overall output scale.
    scale = float(jnp.max(jnp.abs(ref)))
    max_err = float(jnp.max(jnp.abs(out - ref)))
    assert max_err <= 5e-2 * scale, (max_err, scale)

    print("KERNEL_OK")
</pallas_src>

<mosaic_0001>
module attributes {stable_mosaic.version = 11 : i64} {
  func.func @_fused_mha_kernel(%arg0: i32, %arg1: memref<2x32x16xf32, #tpu.memory_space<vmem>>, %arg2: memref<2x32x64xf32, #tpu.memory_space<vmem>>, %arg3: memref<192x32xbf16, #tpu.memory_space<vmem>>, %arg4: memref<192x16xf32, #tpu.memory_space<vmem>>, %arg5: memref<192x1xf32, #tpu.memory_space<vmem>>, %arg6: memref<2x64x128xf32, #tpu.memory_space<vmem>>) attributes {dimension_semantics = [#tpu.dimension_semantics<arbitrary>], iteration_bounds = array<i64: 1>, scalar_prefetch = 0 : i64, scratch_operands = 0 : i64, tpu.core_type = #tpu.core_type<tc>, window_params = [{pipeline_mode = #tpu.pipeline_mode<synchronous>, transform_indices = @transform_0, window_bounds = array<i64: 2, 32, 16>}, {pipeline_mode = #tpu.pipeline_mode<synchronous>, transform_indices = @transform_1, window_bounds = array<i64: 2, 32, 64>}, {pipeline_mode = #tpu.pipeline_mode<synchronous>, transform_indices = @transform_2, window_bounds = array<i64: 192, 32>}, {pipeline_mode = #tpu.pipeline_mode<synchronous>, transform_indices = @transform_3, window_bounds = array<i64: 192, 16>}, {pipeline_mode = #tpu.pipeline_mode<synchronous>, transform_indices = @transform_4, window_bounds = array<i64: 192, 1>}, {pipeline_mode = #tpu.pipeline_mode<synchronous>, transform_indices = @transform_5, window_bounds = array<i64: 2, 64, 128>}]} {
    %c0 = arith.constant 0 : index
    %c0_0 = arith.constant 0 : index
    %0 = vector.load %arg3[%c0, %c0_0] : memref<192x32xbf16, #tpu.memory_space<vmem>>, vector<192x32xbf16>
    %c0_1 = arith.constant 0 : index
    %c0_2 = arith.constant 0 : index
    %c0_3 = arith.constant 0 : index
    %1 = vector.load %arg1[%c0_1, %c0_2, %c0_3] : memref<2x32x16xf32, #tpu.memory_space<vmem>>, vector<1x32x16xf32>
    %2 = vector.shape_cast %1 : vector<1x32x16xf32> to vector<32x16xf32>
    %3 = arith.truncf %2 : vector<32x16xf32> to vector<32x16xbf16>
    %c0_4 = arith.constant 0 : index
    %c0_5 = arith.constant 0 : index
    %c0_6 = arith.constant 0 : index
    %4 = vector.load %arg2[%c0_4, %c0_5, %c0_6] : memref<2x32x64xf32, #tpu.memory_space<vmem>>, vector<1x32x64xf32>
    %5 = vector.shape_cast %4 : vector<1x32x64xf32> to vector<32x64xf32>
    %6 = arith.truncf %5 : vector<32x64xf32> to vector<32x64xbf16>
    %cst = arith.constant dense<0.000000e+00> : vector<192x16xf32>
    %7 = tpu.matmul %0, %3, %cst {dimension_numbers = #tpu.dot_dimension_numbers<[1], [0], [0], [1], [0, 0, 1, 1], [], []>} : vector<192x32xbf16>, vector<32x16xbf16>, vector<192x16xf32> -> vector<192x16xf32>
    %c0_7 = arith.constant 0 : index
    %c0_8 = arith.constant 0 : index
    %8 = vector.load %arg4[%c0_7, %c0_8] : memref<192x16xf32, #tpu.memory_space<vmem>>, vector<192x16xf32>
    %9 = arith.addf %7, %8 : vector<192x16xf32>
    %10 = arith.truncf %9 : vector<192x16xf32> to vector<192x16xbf16>
    %cst_9 = arith.constant dense<0.000000e+00> : vector<192x64xf32>
    %11 = tpu.matmul %0, %6, %cst_9 {dimension_numbers = #tpu.dot_dimension_numbers<[1], [0], [0], [1], [0, 0, 1, 1], [], []>} : vector<192x32xbf16>, vector<32x64xbf16>, vector<192x64xf32> -> vector<192x64xf32>
    %c0_10 = arith.constant 0 : index
    %c0_11 = arith.constant 0 : index
    %12 = vector.load %arg5[%c0_10, %c0_11] : memref<192x1xf32, #tpu.memory_space<vmem>>, vector<192x1xf32>
    %13 = vector.broadcast %12 : vector<192x1xf32> to vector<192x64xf32>
    %14 = arith.addf %11, %13 : vector<192x64xf32>
    %15 = arith.truncf %14 : vector<192x64xf32> to vector<192x64xbf16>
    %16 = vector.extract_strided_slice %10 {offsets = [0, 0], sizes = [16, 16], strides = [1, 1]} : vector<192x16xbf16> to vector<16x16xbf16>
    %17 = vector.extract_strided_slice %10 {offsets = [64, 0], sizes = [16, 16], strides = [1, 1]} : vector<192x16xbf16> to vector<16x16xbf16>
    %18 = vector.extract_strided_slice %10 {offsets = [128, 0], sizes = [16, 16], strides = [1, 1]} : vector<192x16xbf16> to vector<16x16xbf16>
    %19 = vector.extract_strided_slice %15 {offsets = [0, 0], sizes = [16, 64], strides = [1, 1]} : vector<192x64xbf16> to vector<16x64xbf16>
    %20 = vector.extract_strided_slice %15 {offsets = [64, 0], sizes = [16, 64], strides = [1, 1]} : vector<192x64xbf16> to vector<16x64xbf16>
    %21 = vector.extract_strided_slice %15 {offsets = [128, 0], sizes = [16, 64], strides = [1, 1]} : vector<192x64xbf16> to vector<16x64xbf16>
    %cst_12 = arith.constant dense<0.000000e+00> : vector<16x16xf32>
    %22 = tpu.matmul %16, %17, %cst_12 {dimension_numbers = #tpu.dot_dimension_numbers<[0], [0], [1], [1], [0, 1, 1, 1], [], []>} : vector<16x16xbf16>, vector<16x16xbf16>, vector<16x16xf32> -> vector<16x16xf32>
    %cst_13 = arith.constant dense<0xFF800000> : vector<16xf32>
    %23 = vector.multi_reduction <maximumf>, %22, %cst_13 [1] : vector<16x16xf32> to vector<16xf32>
    %24 = vector.shape_cast %23 : vector<16xf32> to vector<16x1xf32>
    %25 = vector.broadcast %24 : vector<16x1xf32> to vector<16x16xf32>
    %26 = arith.subf %22, %25 : vector<16x16xf32>
    %27 = math.exp %26 : vector<16x16xf32>
    %cst_14 = arith.constant dense<0.000000e+00> : vector<16xf32>
    %28 = vector.multi_reduction <add>, %27, %cst_14 [1] : vector<16x16xf32> to vector<16xf32>
    %29 = vector.shape_cast %28 : vector<16xf32> to vector<16x1xf32>
    %30 = tpu.reciprocal %29 {approx = true} : vector<16x1xf32> -> vector<16x1xf32>
    %31 = vector.broadcast %30 : vector<16x1xf32> to vector<16x16xf32>
    %32 = arith.mulf %27, %31 : vector<16x16xf32>
    %33 = arith.truncf %32 : vector<16x16xf32> to vector<16x16xbf16>
    %cst_15 = arith.constant dense<0.000000e+00> : vector<16x16xf32>
    %34 = tpu.matmul %33, %18, %cst_15 {dimension_numbers = #tpu.dot_dimension_numbers<[1], [1], [0], [0], [0, 0, 1, 0], [], []>} : vector<16x16xbf16>, vector<16x16xbf16>, vector<16x16xf32> -> vector<16x16xf32>
    %cst_16 = arith.constant 2.500000e-01 : f32
    %35 = vector.broadcast %cst_16 : f32 to vector<16x16xf32>
    %36 = arith.mulf %34, %35 : vector<16x16xf32>
    %cst_17 = arith.constant dense<0.000000e+00> : vector<64x64xf32>
    %37 = tpu.matmul %19, %20, %cst_17 {dimension_numbers = #tpu.dot_dimension_numbers<[0], [0], [1], [1], [0, 1, 1, 1], [], []>} : vector<16x64xbf16>, vector<16x64xbf16>, vector<64x64xf32> -> vector<64x64xf32>
    %cst_18 = arith.constant dense<0xFF800000> : vector<64xf32>
    %38 = vector.multi_reduction <maximumf>, %37, %cst_18 [1] : vector<64x64xf32> to vector<64xf32>
    %39 = vector.shape_cast %38 : vector<64xf32> to vector<64x1xf32>
    %40 = vector.broadcast %39 : vector<64x1xf32> to vector<64x64xf32>
    %41 = arith.subf %37, %40 : vector<64x64xf32>
    %42 = math.exp %41 : vector<64x64xf32>
    %cst_19 = arith.constant dense<0.000000e+00> : vector<64xf32>
    %43 = vector.multi_reduction <add>, %42, %cst_19 [1] : vector<64x64xf32> to vector<64xf32>
    %44 = vector.shape_cast %43 : vector<64xf32> to vector<64x1xf32>
    %45 = tpu.reciprocal %44 {approx = true} : vector<64x1xf32> -> vector<64x1xf32>
    %46 = vector.broadcast %45 : vector<64x1xf32> to vector<64x64xf32>
    %47 = arith.mulf %42, %46 : vector<64x64xf32>
    %48 = arith.truncf %47 : vector<64x64xf32> to vector<64x64xbf16>
    %cst_20 = arith.constant dense<0.000000e+00> : vector<64x16xf32>
    %49 = tpu.matmul %48, %21, %cst_20 {dimension_numbers = #tpu.dot_dimension_numbers<[1], [1], [0], [0], [0, 0, 1, 0], [], []>} : vector<64x64xbf16>, vector<16x64xbf16>, vector<64x16xf32> -> vector<64x16xf32>
    %50 = arith.truncf %49 : vector<64x16xf32> to vector<64x16xbf16>
    %51 = arith.truncf %36 : vector<16x16xf32> to vector<16x16xbf16>
    %cst_21 = arith.constant dense<0.000000e+00> : vector<64x16xf32>
    %52 = tpu.matmul %50, %51, %cst_21 {dimension_numbers = #tpu.dot_dimension_numbers<[1], [1], [0], [0], [0, 0, 1, 0], [], []>} : vector<64x16xbf16>, vector<16x16xbf16>, vector<64x16xf32> -> vector<64x16xf32>
    %c0_22 = arith.constant 0 : index
    %c0_23 = arith.constant 0 : index
    %c0_24 = arith.constant 0 : index
    %53 = vector.load %arg6[%c0_22, %c0_23, %c0_24] : memref<2x64x128xf32, #tpu.memory_space<vmem>>, vector<1x64x16xf32>
    %54 = vector.shape_cast %53 : vector<1x64x16xf32> to vector<64x16xf32>
    %55 = vector.shape_cast %52 : vector<64x16xf32> to vector<1x64x16xf32>
    tpu.vector_store %arg6[%c0_22, %c0_23, %c0_24], %55 {strides = array<i32>} : memref<2x64x128xf32, #tpu.memory_space<vmem>>, vector<1x64x16xf32>,
    %56 = vector.extract_strided_slice %10 {offsets = [16, 0], sizes = [16, 16], strides = [1, 1]} : vector<192x16xbf16> to vector<16x16xbf16>
    %57 = vector.extract_strided_slice %10 {offsets = [80, 0], sizes = [16, 16], strides = [1, 1]} : vector<192x16xbf16> to vector<16x16xbf16>
    %58 = vector.extract_strided_slice %10 {offsets = [144, 0], sizes = [16, 16], strides = [1, 1]} : vector<192x16xbf16> to vector<16x16xbf16>
    %59 = vector.extract_strided_slice %15 {offsets = [16, 0], sizes = [16, 64], strides = [1, 1]} : vector<192x64xbf16> to vector<16x64xbf16>
    %60 = vector.extract_strided_slice %15 {offsets = [80, 0], sizes = [16, 64], strides = [1, 1]} : vector<192x64xbf16> to vector<16x64xbf16>
    %61 = vector.extract_strided_slice %15 {offsets = [144, 0], sizes = [16, 64], strides = [1, 1]} : vector<192x64xbf16> to vector<16x64xbf16>
    %cst_25 = arith.constant dense<0.000000e+00> : vector<16x16xf32>
    %62 = tpu.matmul %56, %57, %cst_25 {dimension_numbers = #tpu.dot_dimension_numbers<[0], [0], [1], [1], [0, 1, 1, 1], [], []>} : vector<16x16xbf16>, vector<16x16xbf16>, vector<16x16xf32> -> vector<16x16xf32>
    %cst_26 = arith.constant dense<0xFF800000> : vector<16xf32>
    %63 = vector.multi_reduction <maximumf>, %62, %cst_26 [1] : vector<16x16xf32> to vector<16xf32>
    %64 = vector.shape_cast %63 : vector<16xf32> to vector<16x1xf32>
    %65 = vector.broadcast %64 : vector<16x1xf32> to vector<16x16xf32>
    %66 = arith.subf %62, %65 : vector<16x16xf32>
    %67 = math.exp %66 : vector<16x16xf32>
    %cst_27 = arith.constant dense<0.000000e+00> : vector<16xf32>
    %68 = vector.multi_reduction <add>, %67, %cst_27 [1] : vector<16x16xf32> to vector<16xf32>
    %69 = vector.shape_cast %68 : vector<16xf32> to vector<16x1xf32>
    %70 = tpu.reciprocal %69 {approx = true} : vector<16x1xf32> -> vector<16x1xf32>
    %71 = vector.broadcast %70 : vector<16x1xf32> to vector<16x16xf32>
    %72 = arith.mulf %67, %71 : vector<16x16xf32>
    %73 = arith.truncf %72 : vector<16x16xf32> to vector<16x16xbf16>
    %cst_28 = arith.constant dense<0.000000e+00> : vector<16x16xf32>
    %74 = tpu.matmul %73, %58, %cst_28 {dimension_numbers = #tpu.dot_dimension_numbers<[1], [1], [0], [0], [0, 0, 1, 0], [], []>} : vector<16x16xbf16>, vector<16x16xbf16>, vector<16x16xf32> -> vector<16x16xf32>
    %cst_29 = arith.constant 2.500000e-01 : f32
    %75 = vector.broadcast %cst_29 : f32 to vector<16x16xf32>
    %76 = arith.mulf %74, %75 : vector<16x16xf32>
    %cst_30 = arith.constant dense<0.000000e+00> : vector<64x64xf32>
    %77 = tpu.matmul %59, %60, %cst_30 {dimension_numbers = #tpu.dot_dimension_numbers<[0], [0], [1], [1], [0, 1, 1, 1], [], []>} : vector<16x64xbf16>, vector<16x64xbf16>, vector<64x64xf32> -> vector<64x64xf32>
    %cst_31 = arith.constant dense<0xFF800000> : vector<64xf32>
    %78 = vector.multi_reduction <maximumf>, %77, %cst_31 [1] : vector<64x64xf32> to vector<64xf32>
    %79 = vector.shape_cast %78 : vector<64xf32> to vector<64x1xf32>
    %80 = vector.broadcast %79 : vector<64x1xf32> to vector<64x64xf32>
    %81 = arith.subf %77, %80 : vector<64x64xf32>
    %82 = math.exp %81 : vector<64x64xf32>
    %cst_32 = arith.constant dense<0.000000e+00> : vector<64xf32>
    %83 = vector.multi_reduction <add>, %82, %cst_32 [1] : vector<64x64xf32> to vector<64xf32>
    %84 = vector.shape_cast %83 : vector<64xf32> to vector<64x1xf32>
    %85 = tpu.reciprocal %84 {approx = true} : vector<64x1xf32> -> vector<64x1xf32>
    %86 = vector.broadcast %85 : vector<64x1xf32> to vector<64x64xf32>
    %87 = arith.mulf %82, %86 : vector<64x64xf32>
    %88 = arith.truncf %87 : vector<64x64xf32> to vector<64x64xbf16>
    %cst_33 = arith.constant dense<0.000000e+00> : vector<64x16xf32>
    %89 = tpu.matmul %88, %61, %cst_33 {dimension_numbers = #tpu.dot_dimension_numbers<[1], [1], [0], [0], [0, 0, 1, 0], [], []>} : vector<64x64xbf16>, vector<16x64xbf16>, vector<64x16xf32> -> vector<64x16xf32>
    %90 = arith.truncf %89 : vector<64x16xf32> to vector<64x16xbf16>
    %91 = arith.truncf %76 : vector<16x16xf32> to vector<16x16xbf16>
    %cst_34 = arith.constant dense<0.000000e+00> : vector<64x16xf32>
    %92 = tpu.matmul %90, %91, %cst_34 {dimension_numbers = #tpu.dot_dimension_numbers<[1], [1], [0], [0], [0, 0, 1, 0], [], []>} : vector<64x16xbf16>, vector<16x16xbf16>, vector<64x16xf32> -> vector<64x16xf32>
    %c0_35 = arith.constant 0 : index
    %c0_36 = arith.constant 0 : index
    %c16 = arith.constant 16 : index
    %93 = vector.load %arg6[%c0_35, %c0_36, %c16] : memref<2x64x128xf32, #tpu.memory_space<vmem>>, vector<1x64x16xf32>
    %94 = vector.shape_cast %93 : vector<1x64x16xf32> to vector<64x16xf32>
    %95 = vector.shape_cast %92 : vector<64x16xf32> to vector<1x64x16xf32>
    tpu.vector_store %arg6[%c0_35, %c0_36, %c16], %95 {strides = array<i32>} : memref<2x64x128xf32, #tpu.memory_space<vmem>>, vector<1x64x16xf32>,
    %96 = vector.extract_strided_slice %10 {offsets = [32, 0], sizes = [16, 16], strides = [1, 1]} : vector<192x16xbf16> to vector<16x16xbf16>
    %97 = vector.extract_strided_slice %10 {offsets = [96, 0], sizes = [16, 16], strides = [1, 1]} : vector<192x16xbf16> to vector<16x16xbf16>
    %98 = vector.extract_strided_slice %10 {offsets = [160, 0], sizes = [16, 16], strides = [1, 1]} : vector<192x16xbf16> to vector<16x16xbf16>
    %99 = vector.extract_strided_slice %15 {offsets = [32, 0], sizes = [16, 64], strides = [1, 1]} : vector<192x64xbf16> to vector<16x64xbf16>
    %100 = vector.extract_strided_slice %15 {offsets = [96, 0], sizes = [16, 64], strides = [1, 1]} : vector<192x64xbf16> to vector<16x64xbf16>
    %101 = vector.extract_strided_slice %15 {offsets = [160, 0], sizes = [16, 64], strides = [1, 1]} : vector<192x64xbf16> to vector<16x64xbf16>
    %cst_37 = arith.constant dense<0.000000e+00> : vector<16x16xf32>
    %102 = tpu.matmul %96, %97, %cst_37 {dimension_numbers = #tpu.dot_dimension_numbers<[0], [0], [1], [1], [0, 1, 1, 1], [], []>} : vector<16x16xbf16>, vector<16x16xbf16>, vector<16x16xf32> -> vector<16x16xf32>
    %cst_38 = arith.constant dense<0xFF800000> : vector<16xf32>
    %103 = vector.multi_reduction <maximumf>, %102, %cst_38 [1] : vector<16x16xf32> to vector<16xf32>
    %104 = vector.shape_cast %103 : vector<16xf32> to vector<16x1xf32>
    %105 = vector.broadcast %104 : vector<16x1xf32> to vector<16x16xf32>
    %106 = arith.subf %102, %105 : vector<16x16xf32>
    %107 = math.exp %106 : vector<16x16xf32>
    %cst_39 = arith.constant dense<0.000000e+00> : vector<16xf32>
    %108 = vector.multi_reduction <add>, %107, %cst_39 [1] : vector<16x16xf32> to vector<16xf32>
    %109 = vector.shape_cast %108 : vector<16xf32> to vector<16x1xf32>
    %110 = tpu.reciprocal %109 {approx = true} : vector<16x1xf32> -> vector<16x1xf32>
    %111 = vector.broadcast %110 : vector<16x1xf32> to vector<16x16xf32>
    %112 = arith.mulf %107, %111 : vector<16x16xf32>
    %113 = arith.truncf %112 : vector<16x16xf32> to vector<16x16xbf16>
    %cst_40 = arith.constant dense<0.000000e+00> : vector<16x16xf32>
    %114 = tpu.matmul %113, %98, %cst_40 {dimension_numbers = #tpu.dot_dimension_numbers<[1], [1], [0], [0], [0, 0, 1, 0], [], []>} : vector<16x16xbf16>, vector<16x16xbf16>, vector<16x16xf32> -> vector<16x16xf32>
    %cst_41 = arith.constant 2.500000e-01 : f32
    %115 = vector.broadcast %cst_41 : f32 to vector<16x16xf32>
    %116 = arith.mulf %114, %115 : vector<16x16xf32>
    %cst_42 = arith.constant dense<0.000000e+00> : vector<64x64xf32>
    %117 = tpu.matmul %99, %100, %cst_42 {dimension_numbers = #tpu.dot_dimension_numbers<[0], [0], [1], [1], [0, 1, 1, 1], [], []>} : vector<16x64xbf16>, vector<16x64xbf16>, vector<64x64xf32> -> vector<64x64xf32>
    %cst_43 = arith.constant dense<0xFF800000> : vector<64xf32>
    %118 = vector.multi_reduction <maximumf>, %117, %cst_43 [1] : vector<64x64xf32> to vector<64xf32>
    %119 = vector.shape_cast %118 : vector<64xf32> to vector<64x1xf32>
    %120 = vector.broadcast %119 : vector<64x1xf32> to vector<64x64xf32>
    %121 = arith.subf %117, %120 : vector<64x64xf32>
    %122 = math.exp %121 : vector<64x64xf32>
    %cst_44 = arith.constant dense<0.000000e+00> : vector<64xf32>
    %123 = vector.multi_reduction <add>, %122, %cst_44 [1] : vector<64x64xf32> to vector<64xf32>
    %124 = vector.shape_cast %123 : vector<64xf32> to vector<64x1xf32>
    %125 = tpu.reciprocal %124 {approx = true} : vector<64x1xf32> -> vector<64x1xf32>
    %126 = vector.broadcast %125 : vector<64x1xf32> to vector<64x64xf32>
    %127 = arith.mulf %122, %126 : vector<64x64xf32>
    %128 = arith.truncf %127 : vector<64x64xf32> to vector<64x64xbf16>
    %cst_45 = arith.constant dense<0.000000e+00> : vector<64x16xf32>
    %129 = tpu.matmul %128, %101, %cst_45 {dimension_numbers = #tpu.dot_dimension_numbers<[1], [1], [0], [0], [0, 0, 1, 0], [], []>} : vector<64x64xbf16>, vector<16x64xbf16>, vector<64x16xf32> -> vector<64x16xf32>
    %130 = arith.truncf %129 : vector<64x16xf32> to vector<64x16xbf16>
    %131 = arith.truncf %116 : vector<16x16xf32> to vector<16x16xbf16>
    %cst_46 = arith.constant dense<0.000000e+00> : vector<64x16xf32>
    %132 = tpu.matmul %130, %131, %cst_46 {dimension_numbers = #tpu.dot_dimension_numbers<[1], [1], [0], [0], [0, 0, 1, 0], [], []>} : vector<64x16xbf16>, vector<16x16xbf16>, vector<64x16xf32> -> vector<64x16xf32>
    %c0_47 = arith.constant 0 : index
    %c0_48 = arith.constant 0 : index
    %c32 = arith.constant 32 : index
    %133 = vector.load %arg6[%c0_47, %c0_48, %c32] : memref<2x64x128xf32, #tpu.memory_space<vmem>>, vector<1x64x16xf32>
    %134 = vector.shape_cast %133 : vector<1x64x16xf32> to vector<64x16xf32>
    %135 = vector.shape_cast %132 : vector<64x16xf32> to vector<1x64x16xf32>
    tpu.vector_store %arg6[%c0_47, %c0_48, %c32], %135 {strides = array<i32>} : memref<2x64x128xf32, #tpu.memory_space<vmem>>, vector<1x64x16xf32>,
    %136 = vector.extract_strided_slice %10 {offsets = [48, 0], sizes = [16, 16], strides = [1, 1]} : vector<192x16xbf16> to vector<16x16xbf16>
    %137 = vector.extract_strided_slice %10 {offsets = [112, 0], sizes = [16, 16], strides = [1, 1]} : vector<192x16xbf16> to vector<16x16xbf16>
    %138 = vector.extract_strided_slice %10 {offsets = [176, 0], sizes = [16, 16], strides = [1, 1]} : vector<192x16xbf16> to vector<16x16xbf16>
    %139 = vector.extract_strided_slice %15 {offsets = [48, 0], sizes = [16, 64], strides = [1, 1]} : vector<192x64xbf16> to vector<16x64xbf16>
    %140 = vector.extract_strided_slice %15 {offsets = [112, 0], sizes = [16, 64], strides = [1, 1]} : vector<192x64xbf16> to vector<16x64xbf16>
    %141 = vector.extract_strided_slice %15 {offsets = [176, 0], sizes = [16, 64], strides = [1, 1]} : vector<192x64xbf16> to vector<16x64xbf16>
    %cst_49 = arith.constant dense<0.000000e+00> : vector<16x16xf32>
    %142 = tpu.matmul %136, %137, %cst_49 {dimension_numbers = #tpu.dot_dimension_numbers<[0], [0], [1], [1], [0, 1, 1, 1], [], []>} : vector<16x16xbf16>, vector<16x16xbf16>, vector<16x16xf32> -> vector<16x16xf32>
    %cst_50 = arith.constant dense<0xFF800000> : vector<16xf32>
    %143 = vector.multi_reduction <maximumf>, %142, %cst_50 [1] : vector<16x16xf32> to vector<16xf32>
    %144 = vector.shape_cast %143 : vector<16xf32> to vector<16x1xf32>
    %145 = vector.broadcast %144 : vector<16x1xf32> to vector<16x16xf32>
    %146 = arith.subf %142, %145 : vector<16x16xf32>
    %147 = math.exp %146 : vector<16x16xf32>
    %cst_51 = arith.constant dense<0.000000e+00> : vector<16xf32>
    %148 = vector.multi_reduction <add>, %147, %cst_51 [1] : vector<16x16xf32> to vector<16xf32>
    %149 = vector.shape_cast %148 : vector<16xf32> to vector<16x1xf32>
    %150 = tpu.reciprocal %149 {approx = true} : vector<16x1xf32> -> vector<16x1xf32>
    %151 = vector.broadcast %150 : vector<16x1xf32> to vector<16x16xf32>
    %152 = arith.mulf %147, %151 : vector<16x16xf32>
    %153 = arith.truncf %152 : vector<16x16xf32> to vector<16x16xbf16>
    %cst_52 = arith.constant dense<0.000000e+00> : vector<16x16xf32>
    %154 = tpu.matmul %153, %138, %cst_52 {dimension_numbers = #tpu.dot_dimension_numbers<[1], [1], [0], [0], [0, 0, 1, 0], [], []>} : vector<16x16xbf16>, vector<16x16xbf16>, vector<16x16xf32> -> vector<16x16xf32>
    %cst_53 = arith.constant 2.500000e-01 : f32
    %155 = vector.broadcast %cst_53 : f32 to vector<16x16xf32>
    %156 = arith.mulf %154, %155 : vector<16x16xf32>
    %cst_54 = arith.constant dense<0.000000e+00> : vector<64x64xf32>
    %157 = tpu.matmul %139, %140, %cst_54 {dimension_numbers = #tpu.dot_dimension_numbers<[0], [0], [1], [1], [0, 1, 1, 1], [], []>} : vector<16x64xbf16>, vector<16x64xbf16>, vector<64x64xf32> -> vector<64x64xf32>
    %cst_55 = arith.constant dense<0xFF800000> : vector<64xf32>
    %158 = vector.multi_reduction <maximumf>, %157, %cst_55 [1] : vector<64x64xf32> to vector<64xf32>
    %159 = vector.shape_cast %158 : vector<64xf32> to vector<64x1xf32>
    %160 = vector.broadcast %159 : vector<64x1xf32> to vector<64x64xf32>
    %161 = arith.subf %157, %160 : vector<64x64xf32>
    %162 = math.exp %161 : vector<64x64xf32>
    %cst_56 = arith.constant dense<0.000000e+00> : vector<64xf32>
    %163 = vector.multi_reduction <add>, %162, %cst_56 [1] : vector<64x64xf32> to vector<64xf32>
    %164 = vector.shape_cast %163 : vector<64xf32> to vector<64x1xf32>
    %165 = tpu.reciprocal %164 {approx = true} : vector<64x1xf32> -> vector<64x1xf32>
    %166 = vector.broadcast %165 : vector<64x1xf32> to vector<64x64xf32>
    %167 = arith.mulf %162, %166 : vector<64x64xf32>
    %168 = arith.truncf %167 : vector<64x64xf32> to vector<64x64xbf16>
    %cst_57 = arith.constant dense<0.000000e+00> : vector<64x16xf32>
    %169 = tpu.matmul %168, %141, %cst_57 {dimension_numbers = #tpu.dot_dimension_numbers<[1], [1], [0], [0], [0, 0, 1, 0], [], []>} : vector<64x64xbf16>, vector<16x64xbf16>, vector<64x16xf32> -> vector<64x16xf32>
    %170 = arith.truncf %169 : vector<64x16xf32> to vector<64x16xbf16>
    %171 = arith.truncf %156 : vector<16x16xf32> to vector<16x16xbf16>
    %cst_58 = arith.constant dense<0.000000e+00> : vector<64x16xf32>
    %172 = tpu.matmul %170, %171, %cst_58 {dimension_numbers = #tpu.dot_dimension_numbers<[1], [1], [0], [0], [0, 0, 1, 0], [], []>} : vector<64x16xbf16>, vector<16x16xbf16>, vector<64x16xf32> -> vector<64x16xf32>
    %c0_59 = arith.constant 0 : index
    %c0_60 = arith.constant 0 : index
    %c48 = arith.constant 48 : index
    %173 = vector.load %arg6[%c0_59, %c0_60, %c48] : memref<2x64x128xf32, #tpu.memory_space<vmem>>, vector<1x64x16xf32>
    %174 = vector.shape_cast %173 : vector<1x64x16xf32> to vector<64x16xf32>
    %175 = vector.shape_cast %172 : vector<64x16xf32> to vector<1x64x16xf32>
    tpu.vector_store %arg6[%c0_59, %c0_60, %c48], %175 {strides = array<i32>} : memref<2x64x128xf32, #tpu.memory_space<vmem>>, vector<1x64x16xf32>,
    %c1 = arith.constant 1 : index
    %c0_61 = arith.constant 0 : index
    %c0_62 = arith.constant 0 : index
    %176 = vector.load %arg1[%c1, %c0_61, %c0_62] : memref<2x32x16xf32, #tpu.memory_space<vmem>>, vector<1x32x16xf32>
    %177 = vector.shape_cast %176 : vector<1x32x16xf32> to vector<32x16xf32>
    %178 = arith.truncf %177 : vector<32x16xf32> to vector<32x16xbf16>
    %c1_63 = arith.constant 1 : index
    %c0_64 = arith.constant 0 : index
    %c0_65 = arith.constant 0 : index
    %179 = vector.load %arg2[%c1_63, %c0_64, %c0_65] : memref<2x32x64xf32, #tpu.memory_space<vmem>>, vector<1x32x64xf32>
    %180 = vector.shape_cast %179 : vector<1x32x64xf32> to vector<32x64xf32>
    %181 = arith.truncf %180 : vector<32x64xf32> to vector<32x64xbf16>
    %cst_66 = arith.constant dense<0.000000e+00> : vector<192x16xf32>
    %182 = tpu.matmul %0, %178, %cst_66 {dimension_numbers = #tpu.dot_dimension_numbers<[1], [0], [0], [1], [0, 0, 1, 1], [], []>} : vector<192x32xbf16>, vector<32x16xbf16>, vector<192x16xf32> -> vector<192x16xf32>
    %c0_67 = arith.constant 0 : index
    %c0_68 = arith.constant 0 : index
    %183 = vector.load %arg4[%c0_67, %c0_68] : memref<192x16xf32, #tpu.memory_space<vmem>>, vector<192x16xf32>
    %184 = arith.addf %182, %183 : vector<192x16xf32>
    %185 = arith.truncf %184 : vector<192x16xf32> to vector<192x16xbf16>
    %cst_69 = arith.constant dense<0.000000e+00> : vector<192x64xf32>
    %186 = tpu.matmul %0, %181, %cst_69 {dimension_numbers = #tpu.dot_dimension_numbers<[1], [0], [0], [1], [0, 0, 1, 1], [], []>} : vector<192x32xbf16>, vector<32x64xbf16>, vector<192x64xf32> -> vector<192x64xf32>
    %c0_70 = arith.constant 0 : index
    %c0_71 = arith.constant 0 : index
    %187 = vector.load %arg5[%c0_70, %c0_71] : memref<192x1xf32, #tpu.memory_space<vmem>>, vector<192x1xf32>
    %188 = vector.broadcast %187 : vector<192x1xf32> to vector<192x64xf32>
    %189 = arith.addf %186, %188 : vector<192x64xf32>
    %190 = arith.truncf %189 : vector<192x64xf32> to vector<192x64xbf16>
    %191 = vector.extract_strided_slice %185 {offsets = [0, 0], sizes = [16, 16], strides = [1, 1]} : vector<192x16xbf16> to vector<16x16xbf16>
    %192 = vector.extract_strided_slice %185 {offsets = [64, 0], sizes = [16, 16], strides = [1, 1]} : vector<192x16xbf16> to vector<16x16xbf16>
    %193 = vector.extract_strided_slice %185 {offsets = [128, 0], sizes = [16, 16], strides = [1, 1]} : vector<192x16xbf16> to vector<16x16xbf16>
    %194 = vector.extract_strided_slice %190 {offsets = [0, 0], sizes = [16, 64], strides = [1, 1]} : vector<192x64xbf16> to vector<16x64xbf16>
    %195 = vector.extract_strided_slice %190 {offsets = [64, 0], sizes = [16, 64], strides = [1, 1]} : vector<192x64xbf16> to vector<16x64xbf16>
    %196 = vector.extract_strided_slice %190 {offsets = [128, 0], sizes = [16, 64], strides = [1, 1]} : vector<192x64xbf16> to vector<16x64xbf16>
    %cst_72 = arith.constant dense<0.000000e+00> : vector<16x16xf32>
    %197 = tpu.matmul %191, %192, %cst_72 {dimension_numbers = #tpu.dot_dimension_numbers<[0], [0], [1], [1], [0, 1, 1, 1], [], []>} : vector<16x16xbf16>, vector<16x16xbf16>, vector<16x16xf32> -> vector<16x16xf32>
    %cst_73 = arith.constant dense<0xFF800000> : vector<16xf32>
    %198 = vector.multi_reduction <maximumf>, %197, %cst_73 [1] : vector<16x16xf32> to vector<16xf32>
    %199 = vector.shape_cast %198 : vector<16xf32> to vector<16x1xf32>
    %200 = vector.broadcast %199 : vector<16x1xf32> to vector<16x16xf32>
    %201 = arith.subf %197, %200 : vector<16x16xf32>
    %202 = math.exp %201 : vector<16x16xf32>
    %cst_74 = arith.constant dense<0.000000e+00> : vector<16xf32>
    %203 = vector.multi_reduction <add>, %202, %cst_74 [1] : vector<16x16xf32> to vector<16xf32>
    %204 = vector.shape_cast %203 : vector<16xf32> to vector<16x1xf32>
    %205 = tpu.reciprocal %204 {approx = true} : vector<16x1xf32> -> vector<16x1xf32>
    %206 = vector.broadcast %205 : vector<16x1xf32> to vector<16x16xf32>
    %207 = arith.mulf %202, %206 : vector<16x16xf32>
    %208 = arith.truncf %207 : vector<16x16xf32> to vector<16x16xbf16>
    %cst_75 = arith.constant dense<0.000000e+00> : vector<16x16xf32>
    %209 = tpu.matmul %208, %193, %cst_75 {dimension_numbers = #tpu.dot_dimension_numbers<[1], [1], [0], [0], [0, 0, 1, 0], [], []>} : vector<16x16xbf16>, vector<16x16xbf16>, vector<16x16xf32> -> vector<16x16xf32>
    %cst_76 = arith.constant 2.500000e-01 : f32
    %210 = vector.broadcast %cst_76 : f32 to vector<16x16xf32>
    %211 = arith.mulf %209, %210 : vector<16x16xf32>
    %cst_77 = arith.constant dense<0.000000e+00> : vector<64x64xf32>
    %212 = tpu.matmul %194, %195, %cst_77 {dimension_numbers = #tpu.dot_dimension_numbers<[0], [0], [1], [1], [0, 1, 1, 1], [], []>} : vector<16x64xbf16>, vector<16x64xbf16>, vector<64x64xf32> -> vector<64x64xf32>
    %cst_78 = arith.constant dense<0xFF800000> : vector<64xf32>
    %213 = vector.multi_reduction <maximumf>, %212, %cst_78 [1] : vector<64x64xf32> to vector<64xf32>
    %214 = vector.shape_cast %213 : vector<64xf32> to vector<64x1xf32>
    %215 = vector.broadcast %214 : vector<64x1xf32> to vector<64x64xf32>
    %216 = arith.subf %212, %215 : vector<64x64xf32>
    %217 = math.exp %216 : vector<64x64xf32>
    %cst_79 = arith.constant dense<0.000000e+00> : vector<64xf32>
    %218 = vector.multi_reduction <add>, %217, %cst_79 [1] : vector<64x64xf32> to vector<64xf32>
    %219 = vector.shape_cast %218 : vector<64xf32> to vector<64x1xf32>
    %220 = tpu.reciprocal %219 {approx = true} : vector<64x1xf32> -> vector<64x1xf32>
    %221 = vector.broadcast %220 : vector<64x1xf32> to vector<64x64xf32>
    %222 = arith.mulf %217, %221 : vector<64x64xf32>
    %223 = arith.truncf %222 : vector<64x64xf32> to vector<64x64xbf16>
    %cst_80 = arith.constant dense<0.000000e+00> : vector<64x16xf32>
    %224 = tpu.matmul %223, %196, %cst_80 {dimension_numbers = #tpu.dot_dimension_numbers<[1], [1], [0], [0], [0, 0, 1, 0], [], []>} : vector<64x64xbf16>, vector<16x64xbf16>, vector<64x16xf32> -> vector<64x16xf32>
    %225 = arith.truncf %224 : vector<64x16xf32> to vector<64x16xbf16>
    %226 = arith.truncf %211 : vector<16x16xf32> to vector<16x16xbf16>
    %cst_81 = arith.constant dense<0.000000e+00> : vector<64x16xf32>
    %227 = tpu.matmul %225, %226, %cst_81 {dimension_numbers = #tpu.dot_dimension_numbers<[1], [1], [0], [0], [0, 0, 1, 0], [], []>} : vector<64x16xbf16>, vector<16x16xbf16>, vector<64x16xf32> -> vector<64x16xf32>
    %c1_82 = arith.constant 1 : index
    %c0_83 = arith.constant 0 : index
    %c0_84 = arith.constant 0 : index
    %228 = vector.load %arg6[%c1_82, %c0_83, %c0_84] : memref<2x64x128xf32, #tpu.memory_space<vmem>>, vector<1x64x16xf32>
    %229 = vector.shape_cast %228 : vector<1x64x16xf32> to vector<64x16xf32>
    %230 = vector.shape_cast %227 : vector<64x16xf32> to vector<1x64x16xf32>
    tpu.vector_store %arg6[%c1_82, %c0_83, %c0_84], %230 {strides = array<i32>} : memref<2x64x128xf32, #tpu.memory_space<vmem>>, vector<1x64x16xf32>,
    %231 = vector.extract_strided_slice %185 {offsets = [16, 0], sizes = [16, 16], strides = [1, 1]} : vector<192x16xbf16> to vector<16x16xbf16>
    %232 = vector.extract_strided_slice %185 {offsets = [80, 0], sizes = [16, 16], strides = [1, 1]} : vector<192x16xbf16> to vector<16x16xbf16>
    %233 = vector.extract_strided_slice %185 {offsets = [144, 0], sizes = [16, 16], strides = [1, 1]} : vector<192x16xbf16> to vector<16x16xbf16>
    %234 = vector.extract_strided_slice %190 {offsets = [16, 0], sizes = [16, 64], strides = [1, 1]} : vector<192x64xbf16> to vector<16x64xbf16>
    %235 = vector.extract_strided_slice %190 {offsets = [80, 0], sizes = [16, 64], strides = [1, 1]} : vector<192x64xbf16> to vector<16x64xbf16>
    %236 = vector.extract_strided_slice %190 {offsets = [144, 0], sizes = [16, 64], strides = [1, 1]} : vector<192x64xbf16> to vector<16x64xbf16>
    %cst_85 = arith.constant dense<0.000000e+00> : vector<16x16xf32>
    %237 = tpu.matmul %231, %232, %cst_85 {dimension_numbers = #tpu.dot_dimension_numbers<[0], [0], [1], [1], [0, 1, 1, 1], [], []>} : vector<16x16xbf16>, vector<16x16xbf16>, vector<16x16xf32> -> vector<16x16xf32>
    %cst_86 = arith.constant dense<0xFF800000> : vector<16xf32>
    %238 = vector.multi_reduction <maximumf>, %237, %cst_86 [1] : vector<16x16xf32> to vector<16xf32>
    %239 = vector.shape_cast %238 : vector<16xf32> to vector<16x1xf32>
    %240 = vector.broadcast %239 : vector<16x1xf32> to vector<16x16xf32>
    %241 = arith.subf %237, %240 : vector<16x16xf32>
    %242 = math.exp %241 : vector<16x16xf32>
    %cst_87 = arith.constant dense<0.000000e+00> : vector<16xf32>
    %243 = vector.multi_reduction <add>, %242, %cst_87 [1] : vector<16x16xf32> to vector<16xf32>
    %244 = vector.shape_cast %243 : vector<16xf32> to vector<16x1xf32>
    %245 = tpu.reciprocal %244 {approx = true} : vector<16x1xf32> -> vector<16x1xf32>
    %246 = vector.broadcast %245 : vector<16x1xf32> to vector<16x16xf32>
    %247 = arith.mulf %242, %246 : vector<16x16xf32>
    %248 = arith.truncf %247 : vector<16x16xf32> to vector<16x16xbf16>
    %cst_88 = arith.constant dense<0.000000e+00> : vector<16x16xf32>
    %249 = tpu.matmul %248, %233, %cst_88 {dimension_numbers = #tpu.dot_dimension_numbers<[1], [1], [0], [0], [0, 0, 1, 0], [], []>} : vector<16x16xbf16>, vector<16x16xbf16>, vector<16x16xf32> -> vector<16x16xf32>
    %cst_89 = arith.constant 2.500000e-01 : f32
    %250 = vector.broadcast %cst_89 : f32 to vector<16x16xf32>
    %251 = arith.mulf %249, %250 : vector<16x16xf32>
    %cst_90 = arith.constant dense<0.000000e+00> : vector<64x64xf32>
    %252 = tpu.matmul %234, %235, %cst_90 {dimension_numbers = #tpu.dot_dimension_numbers<[0], [0], [1], [1], [0, 1, 1, 1], [], []>} : vector<16x64xbf16>, vector<16x64xbf16>, vector<64x64xf32> -> vector<64x64xf32>
    %cst_91 = arith.constant dense<0xFF800000> : vector<64xf32>
    %253 = vector.multi_reduction <maximumf>, %252, %cst_91 [1] : vector<64x64xf32> to vector<64xf32>
    %254 = vector.shape_cast %253 : vector<64xf32> to vector<64x1xf32>
    %255 = vector.broadcast %254 : vector<64x1xf32> to vector<64x64xf32>
    %256 = arith.subf %252, %255 : vector<64x64xf32>
    %257 = math.exp %256 : vector<64x64xf32>
    %cst_92 = arith.constant dense<0.000000e+00> : vector<64xf32>
    %258 = vector.multi_reduction <add>, %257, %cst_92 [1] : vector<64x64xf32> to vector<64xf32>
    %259 = vector.shape_cast %258 : vector<64xf32> to vector<64x1xf32>
    %260 = tpu.reciprocal %259 {approx = true} : vector<64x1xf32> -> vector<64x1xf32>
    %261 = vector.broadcast %260 : vector<64x1xf32> to vector<64x64xf32>
    %262 = arith.mulf %257, %261 : vector<64x64xf32>
    %263 = arith.truncf %262 : vector<64x64xf32> to vector<64x64xbf16>
    %cst_93 = arith.constant dense<0.000000e+00> : vector<64x16xf32>
    %264 = tpu.matmul %263, %236, %cst_93 {dimension_numbers = #tpu.dot_dimension_numbers<[1], [1], [0], [0], [0, 0, 1, 0], [], []>} : vector<64x64xbf16>, vector<16x64xbf16>, vector<64x16xf32> -> vector<64x16xf32>
    %265 = arith.truncf %264 : vector<64x16xf32> to vector<64x16xbf16>
    %266 = arith.truncf %251 : vector<16x16xf32> to vector<16x16xbf16>
    %cst_94 = arith.constant dense<0.000000e+00> : vector<64x16xf32>
    %267 = tpu.matmul %265, %266, %cst_94 {dimension_numbers = #tpu.dot_dimension_numbers<[1], [1], [0], [0], [0, 0, 1, 0], [], []>} : vector<64x16xbf16>, vector<16x16xbf16>, vector<64x16xf32> -> vector<64x16xf32>
    %c1_95 = arith.constant 1 : index
    %c0_96 = arith.constant 0 : index
    %c16_97 = arith.constant 16 : index
    %268 = vector.load %arg6[%c1_95, %c0_96, %c16_97] : memref<2x64x128xf32, #tpu.memory_space<vmem>>, vector<1x64x16xf32>
    %269 = vector.shape_cast %268 : vector<1x64x16xf32> to vector<64x16xf32>
    %270 = vector.shape_cast %267 : vector<64x16xf32> to vector<1x64x16xf32>
    tpu.vector_store %arg6[%c1_95, %c0_96, %c16_97], %270 {strides = array<i32>} : memref<2x64x128xf32, #tpu.memory_space<vmem>>, vector<1x64x16xf32>,
    %271 = vector.extract_strided_slice %185 {offsets = [32, 0], sizes = [16, 16], strides = [1, 1]} : vector<192x16xbf16> to vector<16x16xbf16>
    %272 = vector.extract_strided_slice %185 {offsets = [96, 0], sizes = [16, 16], strides = [1, 1]} : vector<192x16xbf16> to vector<16x16xbf16>
    %273 = vector.extract_strided_slice %185 {offsets = [160, 0], sizes = [16, 16], strides = [1, 1]} : vector<192x16xbf16> to vector<16x16xbf16>
    %274 = vector.extract_strided_slice %190 {offsets = [32, 0], sizes = [16, 64], strides = [1, 1]} : vector<192x64xbf16> to vector<16x64xbf16>
    %275 = vector.extract_strided_slice %190 {offsets = [96, 0], sizes = [16, 64], strides = [1, 1]} : vector<192x64xbf16> to vector<16x64xbf16>
    %276 = vector.extract_strided_slice %190 {offsets = [160, 0], sizes = [16, 64], strides = [1, 1]} : vector<192x64xbf16> to vector<16x64xbf16>
    %cst_98 = arith.constant dense<0.000000e+00> : vector<16x16xf32>
    %277 = tpu.matmul %271, %272, %cst_98 {dimension_numbers = #tpu.dot_dimension_numbers<[0], [0], [1], [1], [0, 1, 1, 1], [], []>} : vector<16x16xbf16>, vector<16x16xbf16>, vector<16x16xf32> -> vector<16x16xf32>
    %cst_99 = arith.constant dense<0xFF800000> : vector<16xf32>
    %278 = vector.multi_reduction <maximumf>, %277, %cst_99 [1] : vector<16x16xf32> to vector<16xf32>
    %279 = vector.shape_cast %278 : vector<16xf32> to vector<16x1xf32>
    %280 = vector.broadcast %279 : vector<16x1xf32> to vector<16x16xf32>
    %281 = arith.subf %277, %280 : vector<16x16xf32>
    %282 = math.exp %281 : vector<16x16xf32>
    %cst_100 = arith.constant dense<0.000000e+00> : vector<16xf32>
    %283 = vector.multi_reduction <add>, %282, %cst_100 [1] : vector<16x16xf32> to vector<16xf32>
    %284 = vector.shape_cast %283 : vector<16xf32> to vector<16x1xf32>
    %285 = tpu.reciprocal %284 {approx = true} : vector<16x1xf32> -> vector<16x1xf32>
    %286 = vector.broadcast %285 : vector<16x1xf32> to vector<16x16xf32>
    %287 = arith.mulf %282, %286 : vector<16x16xf32>
    %288 = arith.truncf %287 : vector<16x16xf32> to vector<16x16xbf16>
    %cst_101 = arith.constant dense<0.000000e+00> : vector<16x16xf32>
    %289 = tpu.matmul %288, %273, %cst_101 {dimension_numbers = #tpu.dot_dimension_numbers<[1], [1], [0], [0], [0, 0, 1, 0], [], []>} : vector<16x16xbf16>, vector<16x16xbf16>, vector<16x16xf32> -> vector<16x16xf32>
    %cst_102 = arith.constant 2.500000e-01 : f32
    %290 = vector.broadcast %cst_102 : f32 to vector<16x16xf32>
    %291 = arith.mulf %289, %290 : vector<16x16xf32>
    %cst_103 = arith.constant dense<0.000000e+00> : vector<64x64xf32>
    %292 = tpu.matmul %274, %275, %cst_103 {dimension_numbers = #tpu.dot_dimension_numbers<[0], [0], [1], [1], [0, 1, 1, 1], [], []>} : vector<16x64xbf16>, vector<16x64xbf16>, vector<64x64xf32> -> vector<64x64xf32>
    %cst_104 = arith.constant dense<0xFF800000> : vector<64xf32>
    %293 = vector.multi_reduction <maximumf>, %292, %cst_104 [1] : vector<64x64xf32> to vector<64xf32>
    %294 = vector.shape_cast %293 : vector<64xf32> to vector<64x1xf32>
    %295 = vector.broadcast %294 : vector<64x1xf32> to vector<64x64xf32>
    %296 = arith.subf %292, %295 : vector<64x64xf32>
    %297 = math.exp %296 : vector<64x64xf32>
    %cst_105 = arith.constant dense<0.000000e+00> : vector<64xf32>
    %298 = vector.multi_reduction <add>, %297, %cst_105 [1] : vector<64x64xf32> to vector<64xf32>
    %299 = vector.shape_cast %298 : vector<64xf32> to vector<64x1xf32>
    %300 = tpu.reciprocal %299 {approx = true} : vector<64x1xf32> -> vector<64x1xf32>
    %301 = vector.broadcast %300 : vector<64x1xf32> to vector<64x64xf32>
    %302 = arith.mulf %297, %301 : vector<64x64xf32>
    %303 = arith.truncf %302 : vector<64x64xf32> to vector<64x64xbf16>
    %cst_106 = arith.constant dense<0.000000e+00> : vector<64x16xf32>
    %304 = tpu.matmul %303, %276, %cst_106 {dimension_numbers = #tpu.dot_dimension_numbers<[1], [1], [0], [0], [0, 0, 1, 0], [], []>} : vector<64x64xbf16>, vector<16x64xbf16>, vector<64x16xf32> -> vector<64x16xf32>
    %305 = arith.truncf %304 : vector<64x16xf32> to vector<64x16xbf16>
    %306 = arith.truncf %291 : vector<16x16xf32> to vector<16x16xbf16>
    %cst_107 = arith.constant dense<0.000000e+00> : vector<64x16xf32>
    %307 = tpu.matmul %305, %306, %cst_107 {dimension_numbers = #tpu.dot_dimension_numbers<[1], [1], [0], [0], [0, 0, 1, 0], [], []>} : vector<64x16xbf16>, vector<16x16xbf16>, vector<64x16xf32> -> vector<64x16xf32>
    %c1_108 = arith.constant 1 : index
    %c0_109 = arith.constant 0 : index
    %c32_110 = arith.constant 32 : index
    %308 = vector.load %arg6[%c1_108, %c0_109, %c32_110] : memref<2x64x128xf32, #tpu.memory_space<vmem>>, vector<1x64x16xf32>
    %309 = vector.shape_cast %308 : vector<1x64x16xf32> to vector<64x16xf32>
    %310 = vector.shape_cast %307 : vector<64x16xf32> to vector<1x64x16xf32>
    tpu.vector_store %arg6[%c1_108, %c0_109, %c32_110], %310 {strides = array<i32>} : memref<2x64x128xf32, #tpu.memory_space<vmem>>, vector<1x64x16xf32>,
    %311 = vector.extract_strided_slice %185 {offsets = [48, 0], sizes = [16, 16], strides = [1, 1]} : vector<192x16xbf16> to vector<16x16xbf16>
    %312 = vector.extract_strided_slice %185 {offsets = [112, 0], sizes = [16, 16], strides = [1, 1]} : vector<192x16xbf16> to vector<16x16xbf16>
    %313 = vector.extract_strided_slice %185 {offsets = [176, 0], sizes = [16, 16], strides = [1, 1]} : vector<192x16xbf16> to vector<16x16xbf16>
    %314 = vector.extract_strided_slice %190 {offsets = [48, 0], sizes = [16, 64], strides = [1, 1]} : vector<192x64xbf16> to vector<16x64xbf16>
    %315 = vector.extract_strided_slice %190 {offsets = [112, 0], sizes = [16, 64], strides = [1, 1]} : vector<192x64xbf16> to vector<16x64xbf16>
    %316 = vector.extract_strided_slice %190 {offsets = [176, 0], sizes = [16, 64], strides = [1, 1]} : vector<192x64xbf16> to vector<16x64xbf16>
    %cst_111 = arith.constant dense<0.000000e+00> : vector<16x16xf32>
    %317 = tpu.matmul %311, %312, %cst_111 {dimension_numbers = #tpu.dot_dimension_numbers<[0], [0], [1], [1], [0, 1, 1, 1], [], []>} : vector<16x16xbf16>, vector<16x16xbf16>, vector<16x16xf32> -> vector<16x16xf32>
    %cst_112 = arith.constant dense<0xFF800000> : vector<16xf32>
    %318 = vector.multi_reduction <maximumf>, %317, %cst_112 [1] : vector<16x16xf32> to vector<16xf32>
    %319 = vector.shape_cast %318 : vector<16xf32> to vector<16x1xf32>
    %320 = vector.broadcast %319 : vector<16x1xf32> to vector<16x16xf32>
    %321 = arith.subf %317, %320 : vector<16x16xf32>
    %322 = math.exp %321 : vector<16x16xf32>
    %cst_113 = arith.constant dense<0.000000e+00> : vector<16xf32>
    %323 = vector.multi_reduction <add>, %322, %cst_113 [1] : vector<16x16xf32> to vector<16xf32>
    %324 = vector.shape_cast %323 : vector<16xf32> to vector<16x1xf32>
    %325 = tpu.reciprocal %324 {approx = true} : vector<16x1xf32> -> vector<16x1xf32>
    %326 = vector.broadcast %325 : vector<16x1xf32> to vector<16x16xf32>
    %327 = arith.mulf %322, %326 : vector<16x16xf32>
    %328 = arith.truncf %327 : vector<16x16xf32> to vector<16x16xbf16>
    %cst_114 = arith.constant dense<0.000000e+00> : vector<16x16xf32>
    %329 = tpu.matmul %328, %313, %cst_114 {dimension_numbers = #tpu.dot_dimension_numbers<[1], [1], [0], [0], [0, 0, 1, 0], [], []>} : vector<16x16xbf16>, vector<16x16xbf16>, vector<16x16xf32> -> vector<16x16xf32>
    %cst_115 = arith.constant 2.500000e-01 : f32
    %330 = vector.broadcast %cst_115 : f32 to vector<16x16xf32>
    %331 = arith.mulf %329, %330 : vector<16x16xf32>
    %cst_116 = arith.constant dense<0.000000e+00> : vector<64x64xf32>
    %332 = tpu.matmul %314, %315, %cst_116 {dimension_numbers = #tpu.dot_dimension_numbers<[0], [0], [1], [1], [0, 1, 1, 1], [], []>} : vector<16x64xbf16>, vector<16x64xbf16>, vector<64x64xf32> -> vector<64x64xf32>
    %cst_117 = arith.constant dense<0xFF800000> : vector<64xf32>
    %333 = vector.multi_reduction <maximumf>, %332, %cst_117 [1] : vector<64x64xf32> to vector<64xf32>
    %334 = vector.shape_cast %333 : vector<64xf32> to vector<64x1xf32>
    %335 = vector.broadcast %334 : vector<64x1xf32> to vector<64x64xf32>
    %336 = arith.subf %332, %335 : vector<64x64xf32>
    %337 = math.exp %336 : vector<64x64xf32>
    %cst_118 = arith.constant dense<0.000000e+00> : vector<64xf32>
    %338 = vector.multi_reduction <add>, %337, %cst_118 [1] : vector<64x64xf32> to vector<64xf32>
    %339 = vector.shape_cast %338 : vector<64xf32> to vector<64x1xf32>
    %340 = tpu.reciprocal %339 {approx = true} : vector<64x1xf32> -> vector<64x1xf32>
    %341 = vector.broadcast %340 : vector<64x1xf32> to vector<64x64xf32>
    %342 = arith.mulf %337, %341 : vector<64x64xf32>
    %343 = arith.truncf %342 : vector<64x64xf32> to vector<64x64xbf16>
    %cst_119 = arith.constant dense<0.000000e+00> : vector<64x16xf32>
    %344 = tpu.matmul %343, %316, %cst_119 {dimension_numbers = #tpu.dot_dimension_numbers<[1], [1], [0], [0], [0, 0, 1, 0], [], []>} : vector<64x64xbf16>, vector<16x64xbf16>, vector<64x16xf32> -> vector<64x16xf32>
    %345 = arith.truncf %344 : vector<64x16xf32> to vector<64x16xbf16>
    %346 = arith.truncf %331 : vector<16x16xf32> to vector<16x16xbf16>
    %cst_120 = arith.constant dense<0.000000e+00> : vector<64x16xf32>
    %347 = tpu.matmul %345, %346, %cst_120 {dimension_numbers = #tpu.dot_dimension_numbers<[1], [1], [0], [0], [0, 0, 1, 0], [], []>} : vector<64x16xbf16>, vector<16x16xbf16>, vector<64x16xf32> -> vector<64x16xf32>
    %c1_121 = arith.constant 1 : index
    %c0_122 = arith.constant 0 : index
    %c48_123 = arith.constant 48 : index
    %348 = vector.load %arg6[%c1_121, %c0_122, %c48_123] : memref<2x64x128xf32, #tpu.memory_space<vmem>>, vector<1x64x16xf32>
    %349 = vector.shape_cast %348 : vector<1x64x16xf32> to vector<64x16xf32>
    %350 = vector.shape_cast %347 : vector<64x16xf32> to vector<1x64x16xf32>
    tpu.vector_store %arg6[%c1_121, %c0_122, %c48_123], %350 {strides = array<i32>} : memref<2x64x128xf32, #tpu.memory_space<vmem>>, vector<1x64x16xf32>,
    return
  }
  func.func @transform_0(%arg0: i32) -> (i32, i32, i32) {
    %c0_i32 = arith.constant 0 : i32
    %c0_i32_0 = arith.constant 0 : i32
    %c0_i32_1 = arith.constant 0 : i32
    %c0_i32_2 = arith.constant 0 : i32
    return %c0_i32, %c0_i32_0, %c0_i32_1 : i32, i32, i32
  }
  func.func @transform_1(%arg0: i32) -> (i32, i32, i32) {
    %c0_i32 = arith.constant 0 : i32
    %c0_i32_0 = arith.constant 0 : i32
    %c0_i32_1 = arith.constant 0 : i32
    %c0_i32_2 = arith.constant 0 : i32
    return %c0_i32, %c0_i32_0, %c0_i32_1 : i32, i32, i32
  }
  func.func @transform_2(%arg0: i32) -> (i32, i32) {
    %c0_i32 = arith.constant 0 : i32
    %c0_i32_0 = arith.constant 0 : i32
    %c0_i32_1 = arith.constant 0 : i32
    return %c0_i32, %c0_i32_0 : i32, i32
  }
  func.func @transform_3(%arg0: i32) -> (i32, i32) {
    %c0_i32 = arith.constant 0 : i32
    %c0_i32_0 = arith.constant 0 : i32
    %c0_i32_1 = arith.constant 0 : i32
    return %c0_i32, %c0_i32_0 : i32, i32
  }
  func.func @transform_4(%arg0: i32) -> (i32, i32) {
    %c0_i32 = arith.constant 0 : i32
    %c0_i32_0 = arith.constant 0 : i32
    %c0_i32_1 = arith.constant 0 : i32
    return %c0_i32, %c0_i32_0 : i32, i32
  }
  func.func @transform_5(%arg0: i32) -> (i32, i32, i32) {
    %c0_i32 = arith.constant 0 : i32
    %c0_i32_0 = arith.constant 0 : i32
    %c0_i32_1 = arith.constant 0 : i32
    %c0_i32_2 = arith.constant 0 : i32
    return %c0_i32, %c0_i32_0, %c0_i32_1 : i32, i32, i32
  }
}

</mosaic_0001>

<bundles_post_ra>
// kernel: tpu_custom_call.1
= control target key start
LH: loop header
LB: loop body
LE: loop exit
PB: predicated region body
PF: predicated region fallthrough
CT: control target
= control target key end

     0   :  { %s6233_s0 = inlined_call_operand.vmem [shape: f32[2,32,16], index: 0, kind: input, shape index: {}]   ;;  %s6234_s1 = inlined_call_operand.vmem [shape: f32[2,32,64], index: 1, kind: input, shape index: {}]   ;;  %s6235_s2 = inlined_call_operand.vmem [shape: bf16[192,32], index: 2, kind: input, shape index: {}]   ;;  %s6236_s3 = inlined_call_operand.vmem [shape: f32[192,16], index: 3, kind: input, shape index: {}]   ;;  %s6237_s4 = inlined_call_operand.vmem [shape: f32[192,1], index: 4, kind: input, shape index: {}]   ;;  %s6238_s5 = inlined_call_operand.hbm [shape: f32[2,64,128], index: 5, kind: output, shape index: {}]  }
   0x1   :  { %v48_v0 = vld [vmem:[%s6233_s0 + $0x10] sm:$0xff]  ;;  %v49_v1 = vld [vmem:[%s6233_s0 + $0x18] sm:$0xff]  ;;  %v46_v2 = vld [vmem:[%s6233_s0] sm:$0xff] }
   0x2   :  { %v51_v3 = vpack.c.bf16 %v49_v1, %v48_v0  ;;  %v47_v4 = vld [vmem:[%s6233_s0 + $0x8] sm:$0xff] }
   0x3   :  { %10 = vsyncpa [#allocation3], 0  ;;  %v50_v5 = vpack.c.bf16 %v47_v4, %v46_v2  ;;  %v4205_v6 = vld [vmem:[%s6235_s2] sm:$0xff]  ;;  %vm142_vm0 = vcmask 261120   ;;  %v4206_v7 = vld [vmem:[%s6235_s2 + $0x8] sm:$0xff]  ;;  %vm537_vm1 = vcmask 130048  }
   0x4   :  { %185 = vmatpush.bf16.msra.mxu0 %v51_v3  ;;  %v4207_v8 = vld [vmem:[%s6235_s2 + $0x10] sm:$0xff]  ;;  %v4208_v9 = vld [vmem:[%s6235_s2 + $0x18] sm:$0xff]  ;;  %v4209_v11 = vld [vmem:[%s6235_s2 + $0x20] sm:$0xff]  ;;  %v4595_v47 = vmov 0   ;;  %vm674_vm2 = vcmask 523264   ;;  %s4597_s24 = smov 32  }
   0x5   :  { %v58_v12 = vld [vmem:[%s6236_s3] sm:$0xff]  ;;  %v59_v14 = vld [vmem:[%s6236_s3 + $0x8] sm:$0xff]  ;;  %v54_v24 = vld [vmem:[%s6234_s1 + $0x10] sm:$0xff]  ;;  %4226 = vset.pattern.permute.xlu1 %v4595_v47  ;;  %4227 = vset.pattern.permute.xlu2 %v4595_v47  ;;  %vm1259_vm3 = vcmask 261248   ;;  %vm1654_vm4 = vcmask 392448   ;;  %s4598_s25 = smov 48  }
   0x6   :  { %v55_v25 = vld [vmem:[%s6234_s1 + $0x18] sm:$0xff]  ;;  %v52_v28 = vld [vmem:[%s6234_s1] sm:$0xff]  ;;  %v53_v29 = vld [vmem:[%s6234_s1 + $0x8] sm:$0xff]  ;;  %vm2049_vm5 = vcmask 523648   ;;  %s4599_s26 = smov [#allocation2]   ;;  %s3977_s29 = sshll.u32 %s6238_s5, 4  ;;  %s3978_s29 = int_to_ptr.hbm [resolvable:$true] %s3977_s29 }
   0x7   :  { %v57_v27 = vpack.c.bf16 %v55_v25, %v54_v24  ;;  %v56_v30 = vpack.c.bf16 %v53_v29, %v52_v28  ;;  %v4216_v31 = vld [vmem:[%s6235_s2 + $0x58] sm:$0xff]  ;;  %v66_v35 = vld [vmem:[%s6236_s3 + $0x40] sm:$0xff]  ;;  %v67_v38 = vld [vmem:[%s6236_s3 + $0x48] sm:$0xff]  ;;  %s3975_s27 = sshll.u32 %s4599_s26, 4  ;;  %s4600_s30 = smov 128   ;;  %s3976_s27 = int_to_ptr.vmem [resolvable:$true] %s3975_s27 }
   0x8   :  { %186 = vmatpush.bf16.msra.mxu0 %v50_v5  ;;  %v4210_v52 = vld [vmem:[%s6235_s2 + $0x28] sm:$0xff]  ;;  %v280_v56 = vld [vmem:[%s6237_s4 + $0x40] sm:$0xff]  ;;  %v4211_v57 = vld [vmem:[%s6235_s2 + $0x30] sm:$0xff]  ;;  %s4601_s6 = smov 8  }
   0x9   :  { %4217 = vmatpush.bf16.msra.mxu2 %v57_v27  ;;  %422 = vmatpush.bf16.msra.mxu1 %v57_v27  ;;  %v273_v53 = vld [vmem:[%s6237_s4 + $0x8] sm:$0xff]  ;;  %v272_v58 = vld [vmem:[%s6237_s4] sm:$0xff]  ;;  %v4212_v59 = vld [vmem:[%s6235_s2 + $0x38] sm:$0xff] }
   0xa   :  { %303 = vperm.xlu2 %4227, %v273_v53   ;;  %v4213_v60 = vld [vmem:[%s6235_s2 + $0x40] sm:$0xff] }
   0xb   :  { %4037 = vmatmul.msk.bf16.vlgmr.msra.gmra.mxu0 %vm142_vm0, %v4205_v6 }
   0xd   :  { %4218 = vmatpush.bf16.msra.mxu2 %v56_v30  ;;  %423 = vmatpush.bf16.msra.mxu1 %v56_v30 }
  0x10   :  { %4060 = vmatmul.msk.bf16.vlgmr.msra.gmra.mxu2 %vm142_vm0, %v4216_v31  ;;  %4049 = vmatmul.msk.bf16.vlgmr.msra.gmra.mxu1 %vm142_vm0, %v4205_v6 }
  0x12   :  { %338 = vperm.xlu2 %4227, %v280_v56  }
  0x1b   :  { %4038 = vmatmul.msk.bf16.gmra.mxu0 %vm142_vm0, %v4206_v7 }
  0x20   :  { %4050 = vmatmul.msk.bf16.gmra.mxu1 %vm142_vm0, %v4206_v7  ;;  %v281_v7 = vld [vmem:[%s6237_s4 + $0x48] sm:$0xff] }
  0x2b   :  { %4039 = vmatmul.msk.bf16.gmra.mxu0 %vm142_vm0, %v4207_v8 }
  0x30   :  { %4051 = vmatmul.msk.bf16.gmra.mxu1 %vm142_vm0, %v4207_v8 }
  0x3b   :  { %4040 = vmatmul.msk.bf16.gmra.mxu0 %vm142_vm0, %v4208_v9 }
  0x40   :  { %4052 = vmatmul.msk.bf16.gmra.mxu1 %vm142_vm0, %v4208_v9 }
  0x4b   :  { %4041 = vmatmul.msk.bf16.gmra.mxu0 %vm142_vm0, %v4209_v11 }
  0x50   :  { %4053 = vmatmul.msk.bf16.gmra.mxu1 %vm142_vm0, %v4209_v11 }
  0x5b   :  { %4042 = vmatmul.msk.bf16.gmra.mxu0 %vm142_vm0, %v4210_v52 }
  0x60   :  { %4054 = vmatmul.msk.bf16.gmra.mxu1 %vm142_vm0, %v4210_v52 }
  0x6b   :  { %4043 = vmatmul.msk.bf16.gmra.mxu0 %vm142_vm0, %v4211_v57 }
  0x70   :  { %4055 = vmatmul.msk.bf16.gmra.mxu1 %vm142_vm0, %v4211_v57 }
  0x7b   :  { %4044 = vmatmul.msk.bf16.gmra.mxu0 %vm142_vm0, %v4212_v59 }
  0x80   :  { %4056 = vmatmul.msk.bf16.gmra.mxu1 %vm142_vm0, %v4212_v59 }
  0x88   :  { %v188_v10 = vpop.f32.mrf.mxu0 }
  0x89   :  { %v189_v13 = vadd.f32 %v188_v10, %v58_v12 }
  0x8b   :  { %v248_v16 = vpack.c.bf16 %v189_v13, %v189_v13  ;;  %4045 = vmatmul.msk.bf16.gmra.mxu0 %vm142_vm0, %v4213_v60  ;;  %v304_v13 = vpop.permute.xlu2 %303 }
  0x8d   :  { %v511_v19 = vunpack.c.l.b16 %v248_v16  ;;  %v425_v9 = vpop.f32.mrf.mxu1 }
  0x90   :  { %v190_v15 = vpop.f32.mrf.mxu0  ;;  %4057 = vmatmul.msk.bf16.gmra.mxu1 %vm142_vm0, %v4213_v60 }
  0x91   :  { %v191_v17 = vadd.f32 %v190_v15, %v59_v14 }
  0x93   :  { %v249_v18 = vpack.c.bf16 %v191_v17, %v191_v17  ;;  %v4710_v48 = vpop.f32.mrf.mxu2  ;;  %v339_v60 = vpop.permute.xlu2 %338 }
  0x95   :  { %v512_v20 = vunpack.c.l.b16 %v249_v18  ;;  %v427_v12 = vpop.f32.mrf.mxu1 }
  0x96   :  { %v428_v16 = vadd.f32 %v427_v12, %v304_v13 }
  0x97   :  { %v513_v21 = vpack.c.b16 %v512_v20, %v511_v19 }
  0x98   :  { %v4670_v22 = vpop.f32.mrf.mxu0  ;;  %v486_v19 = vpack.c.bf16 %v428_v16, %v428_v16 }
  0x99   :  { %515 = vxpose.xlu0.c.b16.start.end [1/1] (short) (narrow) %v513_v21, 16 }
  0x9a   :  { %v608_v24 = vunpack.c.l.b16 %v486_v19 }
  0x9b   :  { %v4712_v49 = vpop.f32.mrf.mxu2 }
  0x9d   :  { %v4760_v18 = vpop.f32.mrf.mxu1 }
  0xa0   :  { %v4672_v23 = vpop.f32.mrf.mxu0 }
  0xa5   :  { %v4764_v27 = vpop.f32.mrf.mxu1 }
  0xa8   :  { %v4680_v26 = vpop.f32.mrf.mxu0 }
  0xad   :  { %v4768_v30 = vpop.f32.mrf.mxu1 }
  0xb0   :  { %v4691_v32 = vpop.f32.mrf.mxu0 }
  0xb8   :  { %v4695_v33 = vpop.f32.mrf.mxu0 }
  0xc0   :  { %v4697_v34 = vpop.f32.mrf.mxu0 }
  0xc8   :  { %v208_v36 = vpop.f32.mrf.mxu0 }
  0xc9   :  { %v209_v37 = vadd.f32 %v208_v36, %v66_v35  ;;  %v74_v35 = vld [vmem:[%s6236_s3 + $0x80] sm:$0xff] }
  0xcb   :  { %v256_v39 = vpack.c.bf16 %v209_v37, %v209_v37  ;;  %v4773_v37 = vpop.f32.mrf.mxu1 }
  0xcd   :  { %v533_v42 = vunpack.c.l.b16 %v256_v39  ;;  %v75_v39 = vld [vmem:[%s6236_s3 + $0x88] sm:$0xff] }
  0xd0   :  { %v210_v40 = vpop.f32.mrf.mxu0 }
  0xd1   :  { %v211_v41 = vadd.f32 %v210_v40, %v67_v38 }
  0xd3   :  { %v257_v43 = vpack.c.bf16 %v211_v41, %v211_v41 }
  0xd5   :  { %v534_v44 = vunpack.c.l.b16 %v257_v43  ;;  %v71_v43 = vld [vmem:[%s6236_s3 + $0x68] sm:$0xff] }
  0xd7   :  { %v535_v45 = vpack.c.b16 %v534_v44, %v533_v42  ;;  %v70_v42 = vld [vmem:[%s6236_s3 + $0x60] sm:$0xff] }
  0xd8   :  { %v4756_v8 = vpop.f32.mrf.mxu0 }
  0xd9   :  { %548 = vmatpush.bf16.msrb.mxu2 %v535_v45 }
  0xe0   :  { %v4758_v10 = vpop.f32.mrf.mxu0 }
  0xe8   :  { %v218_v11 = vpop.f32.mrf.mxu0 }
  0xf0   :  { %v220_v15 = vpop.f32.mrf.mxu0 }
  0xf8   :  { %v4762_v21 = vpop.f32.mrf.mxu0 }
 0x100   :  { %4228 = vset.pattern.permute.xlu0 %v4595_v47  ;;  %v4766_v29 = vpop.f32.mrf.mxu0  ;;  %v221_v47 = vadd.f32 %v220_v15, %v71_v43 }
 0x108   :  { %v228_v31 = vpop.f32.mrf.mxu0 }
 0x109   :  { %v229_v36 = vadd.f32 %v228_v31, %v74_v35 }
 0x10b   :  { %v264_v38 = vpack.c.bf16 %v229_v36, %v229_v36 }
 0x10d   :  { %v580_v44 = vunpack.c.l.b16 %v264_v38 }
 0x110   :  { %v230_v40 = vpop.f32.mrf.mxu0 }
 0x111   :  { %v231_v41 = vadd.f32 %v230_v40, %v75_v39 }
 0x113   :  { %v265_v45 = vpack.c.bf16 %v231_v41, %v231_v41 }
 0x145   :  { %v523_v46 = vpop.trf.xlu0 }
 0x146   :  { %4061 = vmatmul.msk.bf16.vlgmr.msrb.gmra.mxu2 %vm537_vm1, %v523_v46  ;;  %v219_v46 = vadd.f32 %v218_v11, %v70_v42 }
 0x148   :  { %v260_v53 = vpack.c.bf16 %v219_v46, %v219_v46 }
 0x14a   :  { %v1292_v56 = vunpack.c.l.b16 %v260_v53  ;;  %v288_v53 = vld [vmem:[%s6237_s4 + $0x80] sm:$0xff] }
 0x1c9   :  { %v550_v50 = vpop.f32.mrf.mxu2 }
 0x1ca   :  { %v555_v51 = vsel %vm537_vm1, %v550_v50, -inf }
 0x1cb   :  { %556 = vmax.xlane.f32.xlu0 %v555_v51  ;;  %v4784_v51 = vpop.f32.mrf.mxu1 }
 0x1d1   :  { %v552_v54 = vpop.f32.mrf.mxu2 }
 0x1d2   :  { %v558_v55 = vsel %vm537_vm1, %v552_v54, -inf }
 0x1d3   :  { %559 = vmax.xlane.f32.xlu1 %v558_v55 }
 0x1ec   :  { %298 = vperm.xlu1 %4226, %v272_v58   ;;  %v4787_v58 = vpop.f32.mrf.mxu1 }
 0x23e   :  { %v557_v61 = vpop.xlane.xlu0 %556 }
 0x23f   :  { %v561_v62 = vsub.f32 %v550_v50, %v557_v61  ;;  %v581_v50 = vunpack.c.l.b16 %v265_v45  ;;  %v445_v61 = vpop.f32.mrf.mxu1 }
 0x241   :  { %v563_v63 = vmul.f32 1.442695, %v561_v62  ;;  %v582_v52 = vpack.c.b16 %v581_v50, %v580_v44 }
 0x243   :  { %4238 = vpow2.f32 %v563_v63  ;;  %v587_v55 = vsel %vm537_vm1, %v582_v52, 0  ;;  %v446_v63 = vadd.f32 %v445_v61, %v339_v60 }
 0x244   :  { %596 = vmatpush.bf16.xpose.msra.mxu2 %v587_v55  ;;  %v275_v55 = vld [vmem:[%s6237_s4 + $0x18] sm:$0xff] }
 0x246   :  { %v560_v0 = vpop.xlane.xlu1 %559 }
 0x247   :  { %v562_v1 = vsub.f32 %v552_v54, %v560_v0  ;;  %v261_v54 = vpack.c.bf16 %v221_v47, %v221_v47  ;;  %v447_v0 = vpop.f32.mrf.mxu1 }
 0x249   :  { %v4745_v2 = vpop.eup %4238  ;;  %v565_v3 = vmul.f32 1.442695, %v562_v1  ;;  %v1293_v57 = vunpack.c.l.b16 %v261_v54  ;;  %v289_v54 = vld [vmem:[%s6237_s4 + $0x88] sm:$0xff] }
 0x24a   :  { %v567_v4 = vsel %vm537_vm1, %v4745_v2, 0.0 }
 0x24b   :  { %4240 = vpow2.f32 %v565_v3  ;;  %568 = vadd.xlane.f32.xlu2 %v567_v4  ;;  %v1294_v59 = vpack.c.b16 %v1293_v57, %v1292_v56  ;;  %v493_v4 = vpack.c.bf16 %v446_v63, %v446_v63  ;;  %v282_v56 = vld [vmem:[%s6237_s4 + $0x50] sm:$0xff] }
 0x24d   :  { %1306 = vmatpush.bf16.msrb.mxu0 %v1294_v59  ;;  %v629_v11 = vunpack.c.l.b16 %v493_v4  ;;  %v283_v59 = vld [vmem:[%s6237_s4 + $0x58] sm:$0xff] }
 0x251   :  { %v4749_v5 = vpop.eup %4240 }
 0x252   :  { %v570_v6 = vsel %vm537_vm1, %v4749_v5, 0.0 }
 0x253   :  { %571 = vadd.xlane.f32.xlu1 %v570_v6 }
 0x25e   :  { %v299_v14 = vpop.permute.xlu1 %298 }
 0x25f   :  { %v426_v17 = vadd.f32 %v425_v9, %v299_v14 }
 0x261   :  { %v485_v20 = vpack.c.bf16 %v426_v17, %v426_v17 }
 0x263   :  { %343 = vperm.xlu2 %4227, %v281_v7   ;;  %v607_v25 = vunpack.c.l.b16 %v485_v20 }
 0x265   :  { %v609_v28 = vpack.c.b16 %v608_v24, %v607_v25 }
 0x28d   :  { %611 = vxpose.xlu1.c.b16.start.end [1/1] (short) (narrow) %v609_v28, 64 }
 0x2be   :  { %v569_v62 = vpop.xlane.xlu2 %568 }
 0x2bf   :  { %4242 = vrcp.f32 %v569_v62  ;;  %v4827_v62 = vpop.f32.mrf.mxu1 }
 0x2c5   :  { %v4243_v9 = vpop.eup %4242 }
 0x2c6   :  { %v344_v1 = vpop.permute.xlu2 %343  ;;  %v572_v3 = vpop.xlane.xlu1 %571  ;;  %v575_v15 = vmul.f32 %v4243_v9, %v4745_v2 }
 0x2c7   :  { %v448_v6 = vadd.f32 %v447_v0, %v344_v1  ;;  %4244 = vrcp.f32 %v572_v3  ;;  %v4829_v63 = vpop.f32.mrf.mxu1 }
 0x2c9   :  { %v494_v7 = vpack.c.bf16 %v448_v6, %v448_v6 }
 0x2cb   :  { %v630_v12 = vunpack.c.l.b16 %v494_v7 }
 0x2cd   :  { %v4245_v13 = vpop.eup %4244  ;;  %v631_v14 = vpack.c.b16 %v630_v12, %v629_v11 }
 0x2ce   :  { %v576_v16 = vmul.f32 %v4245_v13, %v4749_v5 }
 0x2cf   :  { %652 = vmatpush.bf16.msrb.mxu2 %v631_v14  ;;  %v4833_v1 = vpop.f32.mrf.mxu1 }
 0x2d0   :  { %v577_v17 = vpack.c.bf16 %v576_v16, %v575_v15 }
 0x2d2   :  { %4062 = vmatmul.msk.bf16.vlgmr.msra.gmra.mxu2 %vm537_vm1, %v577_v17 }
 0x2d7   :  { %v4835_v3 = vpop.f32.mrf.mxu1 }
 0x2df   :  { %v4837_v11 = vpop.f32.mrf.mxu1 }
 0x339   :  { %v619_v19 = vpop.trf.xlu1 }
 0x33a   :  { %4063 = vmatmul.msk.bf16.vlgmr.msrb.gmra.mxu2 %vm537_vm1, %v619_v19  ;;  %v4843_v19 = vpop.f32.mrf.mxu1 }
 0x349   :  { %v620_v20 = vpop.trf.xlu1 }
 0x34a   :  { %4064 = vmatmul.msk.bf16.gmra.mxu2 %vm537_vm1, %v620_v20 }
 0x355   :  { %v598_v24 = vpop.f32.mrf.mxu2 }
 0x356   :  { %v603_v31 = vmul.f32 0.25, %v598_v24 }
 0x359   :  { %v621_v25 = vpop.trf.xlu1 }
 0x35a   :  { %4065 = vmatmul.msk.bf16.gmra.mxu2 %vm537_vm1, %v621_v25 }
 0x35d   :  { %v600_v28 = vpop.f32.mrf.mxu2 }
 0x35e   :  { %v604_v35 = vmul.f32 0.25, %v600_v28 }
 0x360   :  { %v820_v2 = vpack.c.bf16 %v604_v35, %v603_v31 }
 0x362   :  { %v834_v5 = vsel %vm537_vm1, %v820_v2, 0 }
 0x363   :  { %843 = vmatpush.bf16.xpose.msra.mxu2 %v834_v5 }
 0x369   :  { %v622_v36 = vpop.trf.xlu1 }
 0x36a   :  { %4066 = vmatmul.msk.bf16.gmra.mxu2 %vm537_vm1, %v622_v36  ;;  %v465_v36 = vpop.f32.mrf.mxu1 }
 0x3bd   :  { %v654_v38 = vpop.f32.mrf.mxu2 }
 0x3be   :  { %v675_v39 = vsel %vm674_vm2, %v654_v38, -inf }
 0x3bf   :  { %676 = vmax.xlane.f32.xlu2 %v675_v39 }
 0x3c5   :  { %v656_v40 = vpop.f32.mrf.mxu2 }
 0x3c6   :  { %v678_v41 = vsel %vm674_vm2, %v656_v40, -inf }
 0x3c7   :  { %679 = vmax.xlane.f32.xlu0 %v678_v41 }
 0x3cd   :  { %v659_v42 = vpop.f32.mrf.mxu2 }
 0x3ce   :  { %v681_v43 = vsel %vm674_vm2, %v659_v42, -inf }
 0x3cf   :  { %682 = vmax.xlane.f32.xlu2 %v681_v43 }
 0x3d5   :  { %v661_v44 = vpop.f32.mrf.mxu2 }
 0x3d6   :  { %v684_v45 = vsel %vm674_vm2, %v661_v44, -inf }
 0x3d7   :  { %685 = vmax.xlane.f32.xlu0 %v684_v45  ;;  %v467_v45 = vpop.f32.mrf.mxu1 }
 0x3dd   :  { %v664_v46 = vpop.f32.mrf.mxu2 }
 0x3de   :  { %v687_v47 = vsel %vm674_vm2, %v664_v46, -inf }
 0x3df   :  { %688 = vmax.xlane.f32.xlu2 %v687_v47 }
 0x3e5   :  { %v4802_v50 = vpop.f32.mrf.mxu2 }
 0x3e6   :  { %v690_v52 = vsel %vm674_vm2, %v4802_v50, -inf }
 0x3e7   :  { %691 = vmax.xlane.f32.xlu1 %v690_v52 }
 0x3eb   :  { %378 = vperm.xlu0 %4228, %v288_v53  }
 0x3ed   :  { %v4818_v57 = vpop.f32.mrf.mxu2 }
 0x3ee   :  { %v693_v0 = vsel %vm674_vm2, %v4818_v57, -inf }
 0x3f5   :  { %v4823_v60 = vpop.f32.mrf.mxu2 }
 0x3f6   :  { %v696_v61 = vsel %vm674_vm2, %v4823_v60, -inf }
 0x3f7   :  { %383 = vperm.xlu2 %4227, %v289_v54  }
 0x400   :  { %313 = vperm.xlu1 %4226, %v275_v55  }
 0x408   :  { %348 = vperm.xlu1 %4226, %v282_v56  }
 0x410   :  { %353 = vperm.xlu1 %4226, %v283_v59  }
 0x415   :  { %697 = vmax.xlane.f32.xlu0 %v696_v61 }
 0x420   :  { %694 = vmax.xlane.f32.xlu2 %v693_v0 }
 0x432   :  { %v677_v4 = vpop.xlane.xlu2 %676 }
 0x433   :  { %v699_v6 = vsub.f32 %v654_v38, %v677_v4 }
 0x435   :  { %v707_v7 = vmul.f32 1.442695, %v699_v6 }
 0x437   :  { %4246 = vpow2.f32 %v707_v7 }
 0x43a   :  { %v680_v9 = vpop.xlane.xlu0 %679 }
 0x43b   :  { %v700_v12 = vsub.f32 %v656_v40, %v680_v9 }
 0x43d   :  { %v4839_v13 = vpop.eup %4246  ;;  %v709_v14 = vmul.f32 1.442695, %v700_v12 }
 0x43e   :  { %v723_v15 = vsel %vm674_vm2, %v4839_v13, 0.0 }
 0x43f   :  { %4248 = vpow2.f32 %v709_v14  ;;  %724 = vadd.xlane.f32.xlu2 %v723_v15 }
 0x442   :  { %v683_v16 = vpop.xlane.xlu2 %682 }
 0x443   :  { %v701_v17 = vsub.f32 %v659_v42, %v683_v16  ;;  %v68_v42 = vld [vmem:[%s6236_s3 + $0x50] sm:$0xff] }
 0x444   :  { %v214_v47 = vadd.f32 %v4756_v8, %v68_v42 }
 0x445   :  { %v4845_v20 = vpop.eup %4248  ;;  %v711_v24 = vmul.f32 1.442695, %v701_v17 }
 0x446   :  { %v726_v25 = vsel %vm674_vm2, %v4845_v20, 0.0  ;;  %v258_v59 = vpack.c.bf16 %v214_v47, %v214_v47 }
 0x447   :  { %4250 = vpow2.f32 %v711_v24  ;;  %727 = vadd.xlane.f32.xlu2 %v726_v25 }
 0x44a   :  { %v686_v28 = vpop.xlane.xlu0 %685 }
 0x44b   :  { %v702_v31 = vsub.f32 %v661_v44, %v686_v28  ;;  %v69_v44 = vld [vmem:[%s6236_s3 + $0x58] sm:$0xff] }
 0x44d   :  { %v4849_v35 = vpop.eup %4250  ;;  %v713_v2 = vmul.f32 1.442695, %v702_v31 }
 0x44e   :  { %v729_v5 = vsel %vm674_vm2, %v4849_v35, 0.0 }
 0x44f   :  { %4252 = vpow2.f32 %v713_v2  ;;  %730 = vadd.xlane.f32.xlu0 %v729_v5 }
 0x452   :  { %v689_v38 = vpop.xlane.xlu2 %688 }
 0x453   :  { %v703_v39 = vsub.f32 %v664_v46, %v689_v38  ;;  %v216_v46 = vadd.f32 %v4758_v10, %v69_v44  ;;  %v897_v10 = vunpack.c.l.b16 %v258_v59 }
 0x455   :  { %v4853_v40 = vpop.eup %4252  ;;  %v715_v41 = vmul.f32 1.442695, %v703_v39  ;;  %v259_v4 = vpack.c.bf16 %v216_v46, %v216_v46 }
 0x456   :  { %v732_v43 = vsel %vm674_vm2, %v4853_v40, 0.0 }
 0x457   :  { %4254 = vpow2.f32 %v715_v41  ;;  %733 = vadd.xlane.f32.xlu2 %v732_v43  ;;  %v898_v12 = vunpack.c.l.b16 %v259_v4 }
 0x459   :  { %v899_v25 = vpack.c.b16 %v898_v12, %v897_v10 }
 0x45a   :  { %v384_v52 = vpop.permute.xlu2 %383  ;;  %v692_v53 = vpop.xlane.xlu1 %691 }
 0x45b   :  { %v468_v54 = vadd.f32 %v467_v45, %v384_v52  ;;  %v704_v55 = vsub.f32 %v4802_v50, %v692_v53  ;;  %v61_v45 = vld [vmem:[%s6236_s3 + $0x18] sm:$0xff]  ;;  %v4214_v52 = vld [vmem:[%s6235_s2 + $0x48] sm:$0xff] }
 0x45c   :  { %v196_v46 = vadd.f32 %v4672_v23, %v61_v45  ;;  %4046 = vmatmul.msk.bf16.gmra.mxu0 %vm142_vm0, %v4214_v52  ;;  %4058 = vmatmul.msk.bf16.gmra.mxu1 %vm142_vm0, %v4214_v52 }
 0x45d   :  { %v4866_v56 = vpop.eup %4254  ;;  %v717_v61 = vmul.f32 1.442695, %v704_v55  ;;  %v379_v0 = vpop.permute.xlu0 %378  ;;  %v502_v6 = vpack.c.bf16 %v468_v54, %v468_v54 }
 0x45e   :  { %v466_v7 = vadd.f32 %v465_v36, %v379_v0  ;;  %v735_v9 = vsel %vm674_vm2, %v4866_v56, 0.0  ;;  %v251_v55 = vpack.c.bf16 %v196_v46, %v196_v46 }
 0x45f   :  { %4256 = vpow2.f32 %v717_v61  ;;  %736 = vadd.xlane.f32.xlu0 %v735_v9  ;;  %v770_v14 = vunpack.c.l.b16 %v502_v6 }
 0x460   :  { %v501_v8 = vpack.c.bf16 %v466_v7, %v466_v7  ;;  %v876_v4 = vunpack.c.l.b16 %v251_v55 }
 0x462   :  { %v769_v15 = vunpack.c.l.b16 %v501_v8 }
 0x464   :  { %v771_v16 = vpack.c.b16 %v770_v14, %v769_v15 }
 0x465   :  { %v4257_v50 = vpop.eup %4256 }
 0x466   :  { %v785_v17 = vsel %vm674_vm2, %v771_v16, 0  ;;  %v738_v24 = vsel %vm674_vm2, %v4257_v50, 0.0 }
 0x467   :  { %794 = vmatpush.bf16.xpose.msra.mxu3 %v785_v17  ;;  %739 = vadd.xlane.f32.xlu2 %v738_v24 }
 0x46f   :  { %911 = vmatpush.bf16.msrb.mxu3 %v899_v25 }
 0x488   :  { %v698_v28 = vpop.xlane.xlu0 %697 }
 0x489   :  { %v706_v31 = vsub.f32 %v4823_v60, %v698_v28  ;;  %v60_v60 = vld [vmem:[%s6236_s3 + $0x10] sm:$0xff] }
 0x48a   :  { %v194_v47 = vadd.f32 %v4670_v22, %v60_v60  ;;  %v77_v60 = vld [vmem:[%s6236_s3 + $0x98] sm:$0xff] }
 0x48b   :  { %v721_v2 = vmul.f32 1.442695, %v706_v31 }
 0x48c   :  { %v250_v54 = vpack.c.bf16 %v194_v47, %v194_v47 }
 0x48d   :  { %4258 = vpow2.f32 %v721_v2 }
 0x48e   :  { %v875_v22 = vunpack.c.l.b16 %v250_v54 }
 0x490   :  { %v877_v7 = vpack.c.b16 %v876_v4, %v875_v22 }
 0x493   :  { %v4259_v5 = vpop.eup %4258  ;;  %v695_v36 = vpop.xlane.xlu2 %694 }
 0x494   :  { %v705_v38 = vsub.f32 %v4818_v57, %v695_v36  ;;  %v744_v39 = vsel %vm674_vm2, %v4259_v5, 0.0 }
 0x495   :  { %745 = vadd.xlane.f32.xlu2 %v744_v39 }
 0x496   :  { %v719_v41 = vmul.f32 1.442695, %v705_v38 }
 0x498   :  { %4260 = vpow2.f32 %v719_v41  ;;  %v76_v41 = vld [vmem:[%s6236_s3 + $0x90] sm:$0xff] }
 0x49e   :  { %v4261_v42 = vpop.eup %4260 }
 0x49f   :  { %v741_v43 = vsel %vm674_vm2, %v4261_v42, 0.0 }
 0x4a0   :  { %742 = vadd.xlane.f32.xlu0 %v741_v43 }
 0x4b2   :  { %v725_v44 = vpop.xlane.xlu2 %724 }
 0x4b3   :  { %4262 = vrcp.f32 %v725_v44 }
 0x4b9   :  { %v4263_v53 = vpop.eup %4262 }
 0x4ba   :  { %v728_v57 = vpop.xlane.xlu2 %727  ;;  %v755_v61 = vmul.f32 %v4263_v53, %v4839_v13  ;;  %v314_v53 = vpop.permute.xlu1 %313 }
 0x4bb   :  { %4264 = vrcp.f32 %v728_v57 }
 0x4c1   :  { %v4265_v59 = vpop.eup %4264 }
 0x4c2   :  { %v756_v0 = vmul.f32 %v4265_v59, %v4845_v20  ;;  %v731_v6 = vpop.xlane.xlu0 %730 }
 0x4c3   :  { %4266 = vrcp.f32 %v731_v6 }
 0x4c4   :  { %v763_v23 = vpack.c.bf16 %v756_v0, %v755_v61  ;;  %v349_v61 = vpop.permute.xlu1 %348 }
 0x4c6   :  { %4067 = vmatmul.msk.bf16.vlgmr.msra.gmra.mxu3 %vm674_vm2, %v763_v23 }
 0x4c9   :  { %879 = vxpose.xlu0.c.b16.start.end [1/1] (short) (narrow) %v877_v7, 16  ;;  %v4267_v8 = vpop.eup %4266  ;;  %v451_v7 = vadd.f32 %v4827_v62, %v349_v61 }
 0x4ca   :  { %v734_v9 = vpop.xlane.xlu2 %733  ;;  %v757_v12 = vmul.f32 %v4267_v8, %v4849_v35 }
 0x4cb   :  { %4268 = vrcp.f32 %v734_v9  ;;  %v495_v8 = vpack.c.bf16 %v451_v7, %v451_v7 }
 0x4cc   :  { %v354_v4 = vpop.permute.xlu1 %353 }
 0x4cd   :  { %v453_v23 = vadd.f32 %v4829_v63, %v354_v4 }
 0x4cf   :  { %v496_v9 = vpack.c.bf16 %v453_v23, %v453_v23 }
 0x4d1   :  { %v4269_v10 = vpop.eup %4268 }
 0x4d2   :  { %v758_v14 = vmul.f32 %v4269_v10, %v4853_v40  ;;  %v737_v15 = vpop.xlane.xlu0 %736  ;;  %v993_v10 = vunpack.c.l.b16 %v496_v9 }
 0x4d3   :  { %4270 = vrcp.f32 %v737_v15 }
 0x4d4   :  { %v764_v13 = vpack.c.bf16 %v758_v14, %v757_v12 }
 0x4d6   :  { %4068 = vmatmul.msk.bf16.gmra.mxu3 %vm674_vm2, %v764_v13  ;;  %v992_v13 = vunpack.c.l.b16 %v495_v8 }
 0x4d8   :  { %v994_v15 = vpack.c.b16 %v993_v10, %v992_v13  ;;  %v279_v10 = vld [vmem:[%s6237_s4 + $0x38] sm:$0xff] }
 0x4d9   :  { %v4271_v16 = vpop.eup %4270 }
 0x4da   :  { %v740_v20 = vpop.xlane.xlu2 %739  ;;  %v759_v24 = vmul.f32 %v4271_v16, %v4866_v56  ;;  %v233_v56 = vpop.f32.mrf.mxu0 }
 0x4db   :  { %4272 = vrcp.f32 %v740_v20 }
 0x4e1   :  { %v4273_v17 = vpop.eup %4272 }
 0x4e2   :  { %v760_v25 = vmul.f32 %v4273_v17, %v4257_v50  ;;  %v234_v50 = vadd.f32 %v233_v56, %v76_v41  ;;  %v235_v45 = vpop.f32.mrf.mxu0 }
 0x4e3   :  { %v236_v57 = vadd.f32 %v235_v45, %v77_v60 }
 0x4e4   :  { %v765_v28 = vpack.c.bf16 %v760_v25, %v759_v24  ;;  %v266_v44 = vpack.c.bf16 %v234_v50, %v234_v50 }
 0x4e6   :  { %4069 = vmatmul.msk.bf16.gmra.mxu3 %vm674_vm2, %v765_v28  ;;  %v943_v47 = vunpack.c.l.b16 %v266_v44 }
 0x508   :  { %v746_v31 = vpop.xlane.xlu2 %745 }
 0x509   :  { %4274 = vrcp.f32 %v746_v31 }
 0x50f   :  { %v4275_v40 = vpop.eup %4274 }
 0x510   :  { %v762_v38 = vmul.f32 %v4275_v40, %v4259_v5 }
 0x513   :  { %v743_v35 = vpop.xlane.xlu0 %742 }
 0x514   :  { %4276 = vrcp.f32 %v743_v35 }
 0x51a   :  { %v4277_v2 = vpop.eup %4276 }
 0x51b   :  { %v761_v36 = vmul.f32 %v4277_v2, %v4261_v42  ;;  %v267_v42 = vpack.c.bf16 %v236_v57, %v236_v57 }
 0x51d   :  { %v766_v39 = vpack.c.bf16 %v762_v38, %v761_v36  ;;  %v944_v5 = vunpack.c.l.b16 %v267_v42 }
 0x51f   :  { %4070 = vmatmul.msk.bf16.gmra.mxu3 %vm674_vm2, %v766_v39  ;;  %v945_v52 = vpack.c.b16 %v944_v5, %v943_v47  ;;  %v274_v39 = vld [vmem:[%s6237_s4 + $0x10] sm:$0xff]  ;;  %v433_v5 = vadd.f32 %v4764_v27, %v314_v53 }
 0x521   :  { %v950_v55 = vsel %vm537_vm1, %v945_v52, 0  ;;  %v488_v52 = vpack.c.bf16 %v433_v5, %v433_v5 }
 0x522   :  { %959 = vmatpush.bf16.xpose.msra.mxu3 %v950_v55 }
 0x549   :  { %v796_v43 = vpop.f32.mrf.mxu3 }
 0x551   :  { %v798_v46 = vpop.f32.mrf.mxu3 }
 0x552   :  { %v816_v54 = vpack.c.bf16 %v798_v46, %v796_v43 }
 0x554   :  { %4071 = vmatmul.msk.bf16.vlgmr.msra.gmra.mxu2 %vm537_vm1, %v816_v54 }
 0x559   :  { %v801_v59 = vpop.f32.mrf.mxu3 }
 0x561   :  { %v803_v0 = vpop.f32.mrf.mxu3 }
 0x562   :  { %v817_v22 = vpack.c.bf16 %v803_v0, %v801_v59  ;;  %v971_v0 = vunpack.c.l.b16 %v488_v52 }
 0x564   :  { %4072 = vmatmul.msk.bf16.gmra.mxu2 %vm537_vm1, %v817_v22 }
 0x569   :  { %v806_v6 = vpop.f32.mrf.mxu3 }
 0x571   :  { %v808_v12 = vpop.f32.mrf.mxu3 }
 0x572   :  { %v818_v14 = vpack.c.bf16 %v808_v12, %v806_v6 }
 0x574   :  { %4073 = vmatmul.msk.bf16.gmra.mxu2 %vm537_vm1, %v818_v14 }
 0x575   :  { %v887_v20 = vpop.trf.xlu0 }
 0x576   :  { %4075 = vmatmul.msk.bf16.vlgmr.msrb.gmra.mxu3 %vm537_vm1, %v887_v20  ;;  %v72_v20 = vld [vmem:[%s6236_s3 + $0x70] sm:$0xff] }
 0x577   :  { %1015 = vmatpush.bf16.msrb.mxu3 %v994_v15 }
 0x5a2   :  { %v811_v16 = vpop.f32.mrf.mxu3 }
 0x5aa   :  { %v813_v17 = vpop.f32.mrf.mxu3 }
 0x5ab   :  { %v819_v24 = vpack.c.bf16 %v813_v17, %v811_v16  ;;  %v73_v16 = vld [vmem:[%s6236_s3 + $0x78] sm:$0xff] }
 0x5ad   :  { %4074 = vmatmul.msk.bf16.gmra.mxu2 %vm537_vm1, %v819_v24  ;;  %v224_v24 = vadd.f32 %v4762_v21, %v72_v20 }
 0x5d7   :  { %v845_v63 = vpop.f32.mrf.mxu2 }
 0x5d8   :  { %865 = vst.msk [vmem:[#allocation2] sm:$0xff] %vm537_vm1, %v845_v63  ;;  %v226_v63 = vadd.f32 %v4766_v29, %v73_v16 }
 0x5df   :  { %v847_v62 = vpop.f32.mrf.mxu2 }
 0x5e0   :  { %866 = vst.msk [vmem:[#allocation2 + $0x8] sm:$0xff] %vm537_vm1, %v847_v62  ;;  %v262_v62 = vpack.c.bf16 %v224_v24, %v224_v24 }
 0x5e7   :  { %v850_v25 = vpop.f32.mrf.mxu2 }
 0x5e8   :  { %867 = vst.msk [vmem:[#allocation2 + $0x10] sm:$0xff] %vm537_vm1, %v850_v25  ;;  %v263_v25 = vpack.c.bf16 %v226_v63, %v226_v63 }
 0x5ef   :  { %v852_v28 = vpop.f32.mrf.mxu2 }
 0x5f0   :  { %868 = vst.msk [vmem:[#allocation2 + $0x18] sm:$0xff] %vm537_vm1, %v852_v28 }
 0x5f7   :  { %v855_v31 = vpop.f32.mrf.mxu2 }
 0x5f8   :  { %869 = vst.msk [vmem:[#allocation2 + $0x20] sm:$0xff] %vm537_vm1, %v855_v31  ;;  %v1687_v31 = vunpack.c.l.b16 %v262_v62  ;;  %v470_v62 = vpop.f32.mrf.mxu1 }
 0x5f9   :  { %v913_v35 = vpop.f32.mrf.mxu3 }
 0x5fa   :  { %v918_v40 = vsel %vm537_vm1, %v913_v35, -inf }
 0x5fb   :  { %919 = vmax.xlane.f32.xlu2 %v918_v40 }
 0x5ff   :  { %v857_v2 = vpop.f32.mrf.mxu2 }
 0x600   :  { %870 = vst.msk [vmem:[#allocation2 + $0x28] sm:$0xff] %vm537_vm1, %v857_v2 }
 0x601   :  { %v915_v36 = vpop.f32.mrf.mxu3 }
 0x602   :  { %v921_v38 = vsel %vm537_vm1, %v915_v36, -inf }
 0x603   :  { %922 = vmax.xlane.f32.xlu2 %v921_v38 }
 0x61b   :  { %308 = vperm.xlu2 %4227, %v274_v39  }
 0x630   :  { %v860_v41 = vpop.f32.mrf.mxu2 }
 0x631   :  { %871 = vst.msk [vmem:[#allocation2 + $0x30] sm:$0xff] %vm537_vm1, %v860_v41 }
 0x638   :  { %v862_v56 = vpop.f32.mrf.mxu2 }
 0x639   :  { %872 = vst.msk [vmem:[#allocation2 + $0x38] sm:$0xff] %vm537_vm1, %v862_v56 }
 0x66e   :  { %v920_v50 = vpop.xlane.xlu2 %919 }
 0x66f   :  { %v924_v43 = vsub.f32 %v913_v35, %v920_v50  ;;  %v1688_v35 = vunpack.c.l.b16 %v263_v25 }
 0x671   :  { %v926_v44 = vmul.f32 1.442695, %v924_v43  ;;  %v1689_v38 = vpack.c.b16 %v1688_v35, %v1687_v31 }
 0x673   :  { %4278 = vpow2.f32 %v926_v44 }
 0x676   :  { %v923_v60 = vpop.xlane.xlu2 %922 }
 0x677   :  { %v925_v45 = vsub.f32 %v915_v36, %v923_v60 }
 0x679   :  { %v4279_v57 = vpop.eup %4278  ;;  %v928_v47 = vmul.f32 1.442695, %v925_v45 }
 0x67a   :  { %v930_v42 = vsel %vm537_vm1, %v4279_v57, 0.0 }
 0x67b   :  { %4280 = vpow2.f32 %v928_v47  ;;  %931 = vadd.xlane.f32.xlu2 %v930_v42 }
 0x67e   :  { %v309_v46 = vpop.permute.xlu2 %308 }
 0x67f   :  { %v431_v54 = vadd.f32 %v4760_v18, %v309_v46  ;;  %v290_v18 = vld [vmem:[%s6237_s4 + $0x90] sm:$0xff] }
 0x681   :  { %v4281_v55 = vpop.eup %4280  ;;  %v487_v59 = vpack.c.bf16 %v431_v54, %v431_v54  ;;  %v291_v54 = vld [vmem:[%s6237_s4 + $0x98] sm:$0xff] }
 0x682   :  { %v933_v61 = vsel %vm537_vm1, %v4281_v55, 0.0 }
 0x683   :  { %v970_v22 = vunpack.c.l.b16 %v487_v59  ;;  %934 = vadd.xlane.f32.xlu0 %v933_v61 }
 0x685   :  { %v972_v4 = vpack.c.b16 %v971_v0, %v970_v22 }
 0x687   :  { %974 = vxpose.xlu1.c.b16.start.end [1/1] (short) (narrow) %v972_v4, 64 }
 0x6ee   :  { %v932_v23 = vpop.xlane.xlu2 %931 }
 0x6ef   :  { %4282 = vrcp.f32 %v932_v23 }
 0x6f5   :  { %v4283_v27 = vpop.eup %4282 }
 0x6f6   :  { %v935_v6 = vpop.xlane.xlu0 %934  ;;  %v938_v7 = vmul.f32 %v4283_v27, %v4279_v57 }
 0x6f7   :  { %4284 = vrcp.f32 %v935_v6 }
 0x6fd   :  { %v4285_v53 = vpop.eup %4284 }
 0x6fe   :  { %v939_v9 = vmul.f32 %v4285_v53, %v4281_v55 }
 0x700   :  { %v940_v8 = vpack.c.bf16 %v939_v9, %v938_v7 }
 0x702   :  { %4076 = vmatmul.msk.bf16.vlgmr.msra.gmra.mxu3 %vm537_vm1, %v940_v8 }
 0x711   :  { %388 = vperm.xlu1 %4226, %v290_v18  }
 0x719   :  { %333 = vperm.xlu1 %4226, %v279_v10  }
 0x733   :  { %v982_v12 = vpop.trf.xlu1 }
 0x734   :  { %4077 = vmatmul.msk.bf16.vlgmr.msrb.gmra.mxu3 %vm537_vm1, %v982_v12 }
 0x743   :  { %v983_v14 = vpop.trf.xlu1 }
 0x744   :  { %4078 = vmatmul.msk.bf16.gmra.mxu3 %vm537_vm1, %v983_v14 }
 0x753   :  { %v984_v13 = vpop.trf.xlu1 }
 0x754   :  { %4079 = vmatmul.msk.bf16.gmra.mxu3 %vm537_vm1, %v984_v13 }
 0x763   :  { %v985_v15 = vpop.trf.xlu1 }
 0x764   :  { %4080 = vmatmul.msk.bf16.gmra.mxu3 %vm537_vm1, %v985_v15 }
 0x783   :  { %v389_v31 = vpop.permute.xlu1 %388 }
 0x785   :  { %v961_v17 = vpop.f32.mrf.mxu3 }
 0x786   :  { %v966_v40 = vmul.f32 0.25, %v961_v17 }
 0x78d   :  { %v963_v28 = vpop.f32.mrf.mxu3 }
 0x78e   :  { %v967_v2 = vmul.f32 0.25, %v963_v28 }
 0x790   :  { %v1182_v36 = vpack.c.bf16 %v967_v2, %v966_v40 }
 0x792   :  { %v1196_v39 = vsel %vm537_vm1, %v1182_v36, 0  ;;  %v471_v36 = vadd.f32 %v470_v62, %v389_v31 }
 0x793   :  { %1205 = vmatpush.bf16.xpose.msra.mxu3 %v1196_v39 }
 0x79b   :  { %1701 = vmatpush.bf16.msrb.mxu3 %v1689_v38  ;;  %v472_v38 = vpop.f32.mrf.mxu1 }
 0x7b7   :  { %v1017_v41 = vpop.f32.mrf.mxu3 }
 0x7b8   :  { %v1037_v56 = vsel %vm674_vm2, %v1017_v41, -inf }
 0x7b9   :  { %1038 = vmax.xlane.f32.xlu2 %v1037_v56 }
 0x7bf   :  { %v1019_v21 = vpop.f32.mrf.mxu3 }
 0x7c0   :  { %v1040_v29 = vsel %vm674_vm2, %v1019_v21, -inf }
 0x7c1   :  { %1041 = vmax.xlane.f32.xlu2 %v1040_v29 }
 0x7c7   :  { %v1022_v50 = vpop.f32.mrf.mxu3 }
 0x7c8   :  { %v1043_v43 = vsel %vm674_vm2, %v1022_v50, -inf }
 0x7c9   :  { %1044 = vmax.xlane.f32.xlu2 %v1043_v43 }
 0x7cf   :  { %v1024_v44 = vpop.f32.mrf.mxu3 }
 0x7d0   :  { %v1046_v60 = vsel %vm674_vm2, %v1024_v44, -inf }
 0x7d1   :  { %1047 = vmax.xlane.f32.xlu2 %v1046_v60 }
 0x7d7   :  { %v1027_v45 = vpop.f32.mrf.mxu3 }
 0x7d8   :  { %v1049_v57 = vsel %vm674_vm2, %v1027_v45, -inf }
 0x7d9   :  { %1050 = vmax.xlane.f32.xlu2 %v1049_v57 }
 0x7df   :  { %v1029_v47 = vpop.f32.mrf.mxu3 }
 0x7e0   :  { %v1052_v42 = vsel %vm674_vm2, %v1029_v47, -inf }
 0x7e1   :  { %1053 = vmax.xlane.f32.xlu2 %v1052_v42 }
 0x7e7   :  { %v4955_v5 = vpop.f32.mrf.mxu3 }
 0x7e8   :  { %v1055_v55 = vsel %vm674_vm2, %v4955_v5, -inf }
 0x7ef   :  { %v4957_v46 = vpop.f32.mrf.mxu3 }
 0x7f0   :  { %v1058_v52 = vsel %vm674_vm2, %v4957_v46, -inf }
 0x7f1   :  { %1059 = vmax.xlane.f32.xlu0 %v1058_v52 }
 0x7f9   :  { %393 = vperm.xlu2 %4227, %v291_v54  }
 0x822   :  { %1056 = vmax.xlane.f32.xlu2 %v1055_v55  ;;  %v276_v55 = vld [vmem:[%s6237_s4 + $0x20] sm:$0xff] }
 0x82c   :  { %v1039_v59 = vpop.xlane.xlu2 %1038 }
 0x82d   :  { %v1061_v61 = vsub.f32 %v1017_v41, %v1039_v59  ;;  %v503_v41 = vpack.c.bf16 %v471_v36, %v471_v36 }
 0x82f   :  { %v1069_v0 = vmul.f32 1.442695, %v1061_v61  ;;  %v1131_v43 = vunpack.c.l.b16 %v503_v41 }
 0x831   :  { %4286 = vpow2.f32 %v1069_v0  ;;  %v284_v0 = vld [vmem:[%s6237_s4 + $0x60] sm:$0xff] }
 0x834   :  { %v1042_v22 = vpop.xlane.xlu2 %1041 }
 0x835   :  { %v1062_v4 = vsub.f32 %v1019_v21, %v1042_v22 }
 0x837   :  { %v4966_v23 = vpop.eup %4286  ;;  %v1071_v6 = vmul.f32 1.442695, %v1062_v4  ;;  %v285_v4 = vld [vmem:[%s6237_s4 + $0x68] sm:$0xff] }
 0x838   :  { %v1085_v27 = vsel %vm674_vm2, %v4966_v23, 0.0 }
 0x839   :  { %4288 = vpow2.f32 %v1071_v6  ;;  %1086 = vadd.xlane.f32.xlu0 %v1085_v27 }
 0x83c   :  { %v1045_v53 = vpop.xlane.xlu2 %1044 }
 0x83d   :  { %v1063_v7 = vsub.f32 %v1022_v50, %v1045_v53 }
 0x83f   :  { %v4970_v9 = vpop.eup %4288  ;;  %v1073_v8 = vmul.f32 1.442695, %v1063_v7  ;;  %v286_v7 = vld [vmem:[%s6237_s4 + $0x70] sm:$0xff] }
 0x840   :  { %v1088_v18 = vsel %vm674_vm2, %v4970_v9, 0.0 }
 0x841   :  { %4290 = vpow2.f32 %v1073_v8  ;;  %1089 = vadd.xlane.f32.xlu0 %v1088_v18 }
 0x844   :  { %v1048_v10 = vpop.xlane.xlu2 %1047 }
 0x845   :  { %v1064_v12 = vsub.f32 %v1024_v44, %v1048_v10  ;;  %v64_v10 = vld [vmem:[%s6236_s3 + $0x30] sm:$0xff] }
 0x847   :  { %v4974_v14 = vpop.eup %4290  ;;  %v1075_v13 = vmul.f32 1.442695, %v1064_v12  ;;  %v65_v12 = vld [vmem:[%s6236_s3 + $0x38] sm:$0xff] }
 0x848   :  { %v1091_v15 = vsel %vm674_vm2, %v4974_v14, 0.0 }
 0x849   :  { %4292 = vpow2.f32 %v1075_v13  ;;  %1092 = vadd.xlane.f32.xlu0 %v1091_v15 }
 0x84c   :  { %v1051_v20 = vpop.xlane.xlu2 %1050 }
 0x84d   :  { %v1065_v16 = vsub.f32 %v1027_v45, %v1051_v20 }
 0x84f   :  { %v4978_v17 = vpop.eup %4292  ;;  %v1077_v24 = vmul.f32 1.442695, %v1065_v16 }
 0x850   :  { %v1094_v63 = vsel %vm674_vm2, %v4978_v17, 0.0 }
 0x851   :  { %4294 = vpow2.f32 %v1077_v24  ;;  %1095 = vadd.xlane.f32.xlu0 %v1094_v63  ;;  %v204_v24 = vadd.f32 %v4695_v33, %v64_v10  ;;  %v206_v63 = vadd.f32 %v4697_v34, %v65_v12 }
 0x854   :  { %v1054_v25 = vpop.xlane.xlu2 %1053 }
 0x855   :  { %v1066_v28 = vsub.f32 %v1029_v47, %v1054_v25  ;;  %v254_v25 = vpack.c.bf16 %v204_v24, %v204_v24 }
 0x857   :  { %v4982_v35 = vpop.eup %4294  ;;  %v1079_v40 = vmul.f32 1.442695, %v1066_v28  ;;  %v255_v28 = vpack.c.bf16 %v206_v63, %v206_v63 }
 0x858   :  { %v1097_v2 = vsel %vm674_vm2, %v4982_v35, 0.0 }
 0x859   :  { %4296 = vpow2.f32 %v1079_v40  ;;  %1098 = vadd.xlane.f32.xlu0 %v1097_v2  ;;  %v1665_v40 = vunpack.c.l.b16 %v254_v25  ;;  %v1666_v2 = vunpack.c.l.b16 %v255_v28 }
 0x85c   :  { %v394_v39 = vpop.permute.xlu2 %393 }
 0x85d   :  { %v473_v56 = vadd.f32 %v472_v38, %v394_v39  ;;  %v1667_v38 = vpack.c.b16 %v1666_v2, %v1665_v40 }
 0x85f   :  { %v4986_v21 = vpop.eup %4296  ;;  %v504_v29 = vpack.c.bf16 %v473_v56, %v473_v56 }
 0x860   :  { %v1100_v50 = vsel %vm674_vm2, %v4986_v21, 0.0 }
 0x861   :  { %v1132_v44 = vunpack.c.l.b16 %v504_v29  ;;  %1101 = vadd.xlane.f32.xlu2 %v1100_v50 }
 0x863   :  { %v1133_v60 = vpack.c.b16 %v1132_v44, %v1131_v43 }
 0x864   :  { %v1060_v45 = vpop.xlane.xlu0 %1059 }
 0x865   :  { %v1068_v57 = vsub.f32 %v4957_v46, %v1060_v45  ;;  %v1147_v47 = vsel %vm674_vm2, %v1133_v60, 0  ;;  %v277_v46 = vld [vmem:[%s6237_s4 + $0x28] sm:$0xff] }
 0x866   :  { %1156 = vmatpush.bf16.xpose.msrb.mxu2 %v1147_v47 }
 0x867   :  { %v1083_v42 = vmul.f32 1.442695, %v1068_v57 }
 0x869   :  { %4298 = vpow2.f32 %v1083_v42 }
 0x86f   :  { %v4992_v52 = vpop.eup %4298 }
 0x870   :  { %v1106_v54 = vsel %vm674_vm2, %v4992_v52, 0.0 }
 0x871   :  { %1107 = vadd.xlane.f32.xlu2 %v1106_v54 }
 0x889   :  { %318 = vperm.xlu2 %4227, %v276_v55  }
 0x891   :  { %323 = vperm.xlu2 %4227, %v277_v46  }
 0x895   :  { %v1057_v59 = vpop.xlane.xlu2 %1056 }
 0x896   :  { %v1067_v61 = vsub.f32 %v4955_v5, %v1057_v59  ;;  %v278_v5 = vld [vmem:[%s6237_s4 + $0x30] sm:$0xff] }
 0x898   :  { %v1081_v22 = vmul.f32 1.442695, %v1067_v61 }
 0x899   :  { %358 = vperm.xlu2 %4227, %v284_v0  }
 0x89a   :  { %4300 = vpow2.f32 %v1081_v22 }
 0x8a0   :  { %v5009_v6 = vpop.eup %4300 }
 0x8a1   :  { %363 = vperm.xlu2 %4227, %v285_v4   ;;  %v1103_v27 = vsel %vm674_vm2, %v5009_v6, 0.0 }
 0x8a2   :  { %1104 = vadd.xlane.f32.xlu0 %v1103_v27 }
 0x8a9   :  { %328 = vperm.xlu2 %4227, %v278_v5  }
 0x8ac   :  { %v1087_v53 = vpop.xlane.xlu0 %1086 }
 0x8ad   :  { %4302 = vrcp.f32 %v1087_v53 }
 0x8b1   :  { %368 = vperm.xlu2 %4227, %v286_v7  }
 0x8b3   :  { %v4303_v18 = vpop.eup %4302 }
 0x8b4   :  { %v1090_v8 = vpop.xlane.xlu0 %1089  ;;  %v1117_v15 = vmul.f32 %v4303_v18, %v4966_v23 }
 0x8b5   :  { %4304 = vrcp.f32 %v1090_v8 }
 0x8bb   :  { %v4305_v13 = vpop.eup %4304 }
 0x8bc   :  { %v1118_v20 = vmul.f32 %v4305_v13, %v4970_v9  ;;  %v1093_v16 = vpop.xlane.xlu0 %1092 }
 0x8bd   :  { %4306 = vrcp.f32 %v1093_v16 }
 0x8be   :  { %v1125_v62 = vpack.c.bf16 %v1118_v20, %v1117_v15 }
 0x8c0   :  { %4081 = vmatmul.msk.bf16.vlgmr.msrb.gmra.mxu2 %vm674_vm2, %v1125_v62 }
 0x8c3   :  { %v4307_v36 = vpop.eup %4306 }
 0x8c4   :  { %v1096_v31 = vpop.xlane.xlu0 %1095  ;;  %v1119_v9 = vmul.f32 %v4307_v36, %v4974_v14 }
 0x8c5   :  { %4308 = vrcp.f32 %v1096_v31 }
 0x8cb   :  { %v4309_v23 = vpop.eup %4308  ;;  %1669 = vxpose.xlu0.c.b16.start.end [1/1] (short) (narrow) %v1667_v38, 16 }
 0x8cc   :  { %v1120_v33 = vmul.f32 %v4309_v23, %v4978_v17  ;;  %v1099_v34 = vpop.xlane.xlu0 %1098 }
 0x8cd   :  { %4310 = vrcp.f32 %v1099_v34 }
 0x8ce   :  { %v1126_v39 = vpack.c.bf16 %v1120_v33, %v1119_v9 }
 0x8d0   :  { %4082 = vmatmul.msk.bf16.gmra.mxu2 %vm674_vm2, %v1126_v39 }
 0x8d3   :  { %v4311_v56 = vpop.eup %4310 }
 0x8d4   :  { %v1102_v41 = vpop.xlane.xlu2 %1101  ;;  %v1121_v50 = vmul.f32 %v4311_v56, %v4982_v35 }
 0x8d5   :  { %4312 = vrcp.f32 %v1102_v41 }
 0x8db   :  { %v4313_v29 = vpop.eup %4312 }
 0x8dc   :  { %v1122_v43 = vmul.f32 %v4313_v29, %v4986_v21 }
 0x8de   :  { %v1127_v44 = vpack.c.bf16 %v1122_v43, %v1121_v50 }
 0x8e0   :  { %4083 = vmatmul.msk.bf16.gmra.mxu2 %vm674_vm2, %v1127_v44 }
 0x8e4   :  { %v1108_v60 = vpop.xlane.xlu2 %1107 }
 0x8e5   :  { %4314 = vrcp.f32 %v1108_v60 }
 0x8ec   :  { %v319_v14 = vpop.permute.xlu2 %318 }
 0x8ed   :  { %v436_v17 = vadd.f32 %v4768_v30, %v319_v14 }
 0x8ef   :  { %v489_v57 = vpack.c.bf16 %v436_v17, %v436_v17 }
 0x8f1   :  { %v1365_v54 = vunpack.c.l.b16 %v489_v57 }
 0x8f4   :  { %v324_v45 = vpop.permute.xlu2 %323 }
 0x8f5   :  { %v438_v47 = vadd.f32 %v4773_v37, %v324_v45  ;;  %v4315_v37 = vpop.eup %4314 }
 0x8f6   :  { %v1124_v7 = vmul.f32 %v4315_v37, %v4992_v52  ;;  %v287_v52 = vld [vmem:[%s6237_s4 + $0x78] sm:$0xff] }
 0x8f7   :  { %v490_v42 = vpack.c.bf16 %v438_v47, %v438_v47 }
 0x8f9   :  { %v1366_v55 = vunpack.c.l.b16 %v490_v42  ;;  %v5082_v42 = vld [vmem:[%s6235_s2 + $0x50] sm:$0xff] }
 0x8fa   :  { %4059 = vmatmul.msk.bf16.gmra.mxu1 %vm142_vm0, %v5082_v42  ;;  %4047 = vmatmul.msk.bf16.gmra.mxu0 %vm142_vm0, %v5082_v42 }
 0x8fb   :  { %v1367_v46 = vpack.c.b16 %v1366_v55, %v1365_v54 }
 0x8fc   :  { %v359_v59 = vpop.permute.xlu2 %358 }
 0x8fd   :  { %1369 = vxpose.xlu0.c.b16.start.end [1/1] (short) (narrow) %v1367_v46, 64  ;;  %v456_v35 = vadd.f32 %v4833_v1, %v359_v59 }
 0x8ff   :  { %v497_v61 = vpack.c.bf16 %v456_v35, %v456_v35 }
 0x901   :  { %v1387_v4 = vunpack.c.l.b16 %v497_v61  ;;  %v5100_v61 = vld [vmem:[%s6235_s2 + $0x58] sm:$0xff] }
 0x904   :  { %v364_v21 = vpop.permute.xlu2 %363 }
 0x905   :  { %v458_v0 = vadd.f32 %v4835_v3, %v364_v21 }
 0x907   :  { %v498_v22 = vpack.c.bf16 %v458_v0, %v458_v0 }
 0x909   :  { %v1388_v27 = vunpack.c.l.b16 %v498_v22 }
 0x90a   :  { %4048 = vmatmul.msk.bf16.gmra.mxu0 %vm142_vm0, %v5100_v61 }
 0x90b   :  { %v1389_v30 = vpack.c.b16 %v1388_v27, %v1387_v4 }
 0x90c   :  { %v329_v38 = vpop.permute.xlu2 %328 }
 0x90d   :  { %1410 = vmatpush.bf16.msra.mxu2 %v1389_v30  ;;  %v441_v37 = vadd.f32 %v4784_v51, %v329_v38 }
 0x914   :  { %v369_v9 = vpop.permute.xlu2 %368 }
 0x915   :  { %v1105_v5 = vpop.xlane.xlu0 %1104  ;;  %v461_v33 = vadd.f32 %v4837_v11, %v369_v9 }
 0x916   :  { %4316 = vrcp.f32 %v1105_v5  ;;  %v334_v5 = vpop.permute.xlu1 %333 }
 0x917   :  { %v499_v41 = vpack.c.bf16 %v461_v33, %v461_v33 }
 0x919   :  { %v1782_v50 = vunpack.c.l.b16 %v499_v41 }
 0x91c   :  { %v4317_v53 = vpop.eup %4316 }
 0x91d   :  { %v1123_v8 = vmul.f32 %v4317_v53, %v5009_v6  ;;  %v293_v53 = vld [vmem:[%s6237_s4 + $0xa8] sm:$0xff] }
 0x91f   :  { %v1128_v18 = vpack.c.bf16 %v1124_v7, %v1123_v8  ;;  %v443_v7 = vadd.f32 %v4787_v58, %v334_v5  ;;  %v491_v8 = vpack.c.bf16 %v441_v37, %v441_v37 }
 0x921   :  { %4084 = vmatmul.msk.bf16.gmra.mxu2 %vm674_vm2, %v1128_v18  ;;  %v62_v18 = vld [vmem:[%s6236_s3 + $0x20] sm:$0xff] }
 0x922   :  { %v199_v51 = vadd.f32 %v4680_v26, %v62_v18 }
 0x943   :  { %v1158_v1 = vpop.f32.mrf.mxu2 }
 0x94b   :  { %v1160_v10 = vpop.f32.mrf.mxu2 }
 0x94c   :  { %v1178_v3 = vpack.c.bf16 %v1160_v10, %v1158_v1  ;;  %v63_v1 = vld [vmem:[%s6236_s3 + $0x28] sm:$0xff]  ;;  %v492_v10 = vpack.c.bf16 %v443_v7, %v443_v7 }
 0x94e   :  { %4085 = vmatmul.msk.bf16.vlgmr.msra.gmra.mxu3 %vm537_vm1, %v1178_v3  ;;  %v1760_v3 = vunpack.c.l.b16 %v491_v8 }
 0x953   :  { %v1163_v12 = vpop.f32.mrf.mxu2 }
 0x95b   :  { %v1165_v13 = vpop.f32.mrf.mxu2 }
 0x95c   :  { %v1179_v15 = vpack.c.bf16 %v1165_v13, %v1163_v12  ;;  %v201_v12 = vadd.f32 %v4691_v32, %v63_v1  ;;  %v1761_v13 = vunpack.c.l.b16 %v492_v10 }
 0x95e   :  { %4086 = vmatmul.msk.bf16.gmra.mxu3 %vm537_vm1, %v1179_v15  ;;  %v1762_v15 = vpack.c.b16 %v1761_v13, %v1760_v3  ;;  %v253_v58 = vpack.c.bf16 %v201_v12, %v201_v12  ;;  %v80_v13 = vld [vmem:[%s6236_s3 + $0xb0] sm:$0xff] }
 0x963   :  { %v1168_v20 = vpop.f32.mrf.mxu2 }
 0x96b   :  { %v1170_v16 = vpop.f32.mrf.mxu2 }
 0x96c   :  { %v1180_v24 = vpack.c.bf16 %v1170_v16, %v1168_v20  ;;  %v252_v20 = vpack.c.bf16 %v199_v51, %v199_v51 }
 0x96e   :  { %4087 = vmatmul.msk.bf16.gmra.mxu3 %vm537_vm1, %v1180_v24  ;;  %v1270_v16 = vunpack.c.l.b16 %v252_v20  ;;  %v1271_v24 = vunpack.c.l.b16 %v253_v58 }
 0x977   :  { %v1677_v6 = vpop.trf.xlu0  ;;  %v238_v1 = vpop.f32.mrf.mxu0 }
 0x97f   :  { %v240_v3 = vpop.f32.mrf.mxu0 }
 0x987   :  { %v243_v12 = vpop.f32.mrf.mxu0 }
 0x988   :  { %v244_v20 = vadd.f32 %v243_v12, %v80_v13 }
 0x99b   :  { %373 = vperm.xlu0 %4228, %v287_v52   ;;  %v1272_v52 = vpack.c.b16 %v1271_v24, %v1270_v16  ;;  %v81_v16 = vld [vmem:[%s6236_s3 + $0xb8] sm:$0xff] }
 0x9a4   :  { %v1173_v63 = vpop.f32.mrf.mxu2 }
 0x9a9   :  { %v1377_v62 = vpop.trf.xlu0 }
 0x9aa   :  { %4091 = vmatmul.msk.bf16.vlgmr.msra.gmra.mxu2 %vm537_vm1, %v1377_v62 }
 0x9ac   :  { %v1175_v25 = vpop.f32.mrf.mxu2 }
 0x9ad   :  { %v1181_v28 = vpack.c.bf16 %v1175_v25, %v1173_v63 }
 0x9af   :  { %4088 = vmatmul.msk.bf16.gmra.mxu3 %vm537_vm1, %v1181_v28 }
 0x9b9   :  { %v1378_v31 = vpop.trf.xlu0 }
 0x9ba   :  { %4092 = vmatmul.msk.bf16.gmra.mxu2 %vm537_vm1, %v1378_v31 }
 0x9bf   :  { %4103 = vmatmul.msk.bf16.vlgmr.msrb.gmra.mxu3 %vm537_vm1, %v1677_v6 }
 0x9c9   :  { %v1379_v40 = vpop.trf.xlu0 }
 0x9ca   :  { %4093 = vmatmul.msk.bf16.gmra.mxu2 %vm537_vm1, %v1379_v40 }
 0x9d1   :  { %v5055_v36 = vpop.f32.mrf.mxu3 }
 0x9d9   :  { %v1380_v2 = vpop.trf.xlu0  ;;  %v5057_v23 = vpop.f32.mrf.mxu3 }
 0x9da   :  { %4094 = vmatmul.msk.bf16.gmra.mxu2 %vm537_vm1, %v1380_v2 }
 0x9e1   :  { %v5060_v39 = vpop.f32.mrf.mxu3 }
 0x9e9   :  { %v5063_v60 = vpop.f32.mrf.mxu3 }
 0x9f1   :  { %v5065_v14 = vpop.f32.mrf.mxu3 }
 0x9f9   :  { %v5067_v17 = vpop.f32.mrf.mxu3 }
 0xa0d   :  { %v374_v34 = vpop.permute.xlu0 %373 }
 0xa0e   :  { %v463_v56 = vadd.f32 %v4843_v19, %v374_v34 }
 0xa10   :  { %v500_v29 = vpack.c.bf16 %v463_v56, %v463_v56 }
 0xa12   :  { %v1783_v43 = vunpack.c.l.b16 %v500_v29 }
 0xa14   :  { %v1784_v44 = vpack.c.b16 %v1783_v43, %v1782_v50  ;;  %v292_v43 = vld [vmem:[%s6237_s4 + $0xa0] sm:$0xff] }
 0xa16   :  { %1805 = vmatpush.bf16.msrb.mxu2 %v1784_v44 }
 0xa2d   :  { %v5069_v45 = vpop.f32.mrf.mxu2 }
 0xa2e   :  { %v1432_v11 = vsel %vm674_vm2, %v5069_v45, -inf }
 0xa2f   :  { %1433 = vmax.xlane.f32.xlu0 %v1432_v11 }
 0xa32   :  { %v5073_v57 = vpop.f32.mrf.mxu3 }
 0xa35   :  { %v5075_v19 = vpop.f32.mrf.mxu2 }
 0xa36   :  { %v1435_v47 = vsel %vm674_vm2, %v5075_v19, -inf }
 0xa37   :  { %1436 = vmax.xlane.f32.xlu0 %v1435_v47 }
 0xa3a   :  { %v5088_v54 = vpop.f32.mrf.mxu3 }
 0xa3d   :  { %v5090_v55 = vpop.f32.mrf.mxu2 }
 0xa3e   :  { %v1438_v41 = vsel %vm674_vm2, %v5090_v55, -inf }
 0xa42   :  { %v5092_v46 = vpop.f32.mrf.mxu3 }
 0xa43   :  { %v1708_v59 = vsel %vm537_vm1, %v5092_v46, -inf }
 0xa44   :  { %1709 = vmax.xlane.f32.xlu1 %v1708_v59 }
 0xa45   :  { %v1419_v35 = vpop.f32.mrf.mxu2 }
 0xa46   :  { %v1441_v21 = vsel %vm674_vm2, %v1419_v35, -inf }
 0xa47   :  { %1442 = vmax.xlane.f32.xlu0 %v1441_v21 }
 0xa4a   :  { %v1705_v0 = vpop.f32.mrf.mxu3 }
 0xa4b   :  { %v1711_v22 = vsel %vm537_vm1, %v1705_v0, -inf }
 0xa4c   :  { %1712 = vmax.xlane.f32.xlu2 %v1711_v22 }
 0xa4d   :  { %v5105_v4 = vpop.f32.mrf.mxu2 }
 0xa4e   :  { %v1444_v56 = vsel %vm674_vm2, %v5105_v4, -inf }
 0xa55   :  { %v5107_v27 = vpop.f32.mrf.mxu2 }
 0xa56   :  { %v1447_v30 = vsel %vm674_vm2, %v5107_v27, -inf }
 0xa57   :  { %1448 = vmax.xlane.f32.xlu0 %v1447_v30 }
 0xa5d   :  { %v5124_v6 = vpop.f32.mrf.mxu2 }
 0xa5e   :  { %v1450_v63 = vsel %vm674_vm2, %v5124_v6, -inf }
 0xa6b   :  { %403 = vperm.xlu0 %4228, %v293_v53   ;;  %v5161_v53 = vpop.f32.mrf.mxu2 }
 0xa6c   :  { %v1453_v7 = vsel %vm674_vm2, %v5161_v53, -inf }
 0xa75   :  { %1764 = vxpose.xlu2.c.b16.start.end [1/1] (short) (narrow) %v1762_v15, 64 }
 0xa7e   :  { %1274 = vxpose.xlu1.c.b16.start.end [1/1] (short) (narrow) %v1272_v52, 16  ;;  %v270_v52 = vpack.c.bf16 %v244_v20, %v244_v20 }
 0xa95   :  { %1451 = vmax.xlane.f32.xlu0 %v1450_v63  ;;  %v245_v63 = vpop.f32.mrf.mxu0 }
 0xaa2   :  { %v1434_v62 = vpop.xlane.xlu0 %1433 }
 0xaa3   :  { %v1456_v11 = vsub.f32 %v5069_v45, %v1434_v62  ;;  %v246_v62 = vadd.f32 %v245_v63, %v81_v16 }
 0xaa5   :  { %v1464_v47 = vmul.f32 1.442695, %v1456_v11 }
 0xaaa   :  { %v1437_v25 = vpop.xlane.xlu0 %1436 }
 0xab7   :  { %v1710_v29 = vpop.xlane.xlu1 %1709 }
 0xab8   :  { %v1714_v50 = vsub.f32 %v5092_v46, %v1710_v29  ;;  %v79_v29 = vld [vmem:[%s6236_s3 + $0xa8] sm:$0xff] }
 0xaba   :  { %v1443_v26 = vpop.xlane.xlu0 %1442  ;;  %v1716_v44 = vmul.f32 1.442695, %v1714_v50 }
 0xabb   :  { %v1459_v28 = vsub.f32 %v1419_v35, %v1443_v26  ;;  %v1457_v35 = vsub.f32 %v5075_v19, %v1437_v25  ;;  %v1733_v25 = vunpack.c.l.b16 %v270_v52  ;;  %v271_v26 = vpack.c.bf16 %v246_v62, %v246_v62 }
 0xabd   :  { %v1470_v32 = vmul.f32 1.442695, %v1459_v28  ;;  %v1466_v46 = vmul.f32 1.442695, %v1457_v35  ;;  %v475_v28 = vpop.f32.mrf.mxu1 }
 0xabf   :  { %4318 = vpow2.f32 %v1470_v32  ;;  %v1713_v2 = vpop.xlane.xlu2 %1712 }
 0xac0   :  { %v1715_v38 = vsub.f32 %v1705_v0, %v1713_v2 }
 0xac2   :  { %v1718_v9 = vmul.f32 1.442695, %v1715_v38 }
 0xac4   :  { %4320 = vpow2.f32 %v1718_v9 }
 0xac5   :  { %v5128_v31 = vpop.eup %4318  ;;  %4322 = vpow2.f32 %v1716_v44  ;;  %v241_v44 = vadd.f32 %v240_v3, %v79_v29 }
 0xac6   :  { %v1489_v40 = vsel %vm674_vm2, %v5128_v31, 0.0  ;;  %4324 = vpow2.f32 %v1464_v47 }
 0xac7   :  { %1490 = vadd.xlane.f32.xlu0 %v1489_v40  ;;  %4326 = vpow2.f32 %v1466_v46  ;;  %v1734_v40 = vunpack.c.l.b16 %v271_v26 }
 0xac9   :  { %v1735_v38 = vpack.c.b16 %v1734_v40, %v1733_v25 }
 0xaca   :  { %v5132_v33 = vpop.eup %4320  ;;  %v1449_v32 = vpop.xlane.xlu0 %1448 }
 0xacb   :  { %v1723_v34 = vsel %vm537_vm1, %v5132_v33, 0.0  ;;  %v5145_v59 = vpop.eup %4322  ;;  %v1740_v9 = vsel %vm537_vm1, %v1735_v38, 0 }
 0xacc   :  { %v1720_v21 = vsel %vm537_vm1, %v5145_v59, 0.0  ;;  %v5151_v22 = vpop.eup %4324  ;;  %1749 = vmatpush.bf16.xpose.msra.mxu3 %v1740_v9 }
 0xacd   :  { %v1480_v45 = vsel %vm674_vm2, %v5151_v22, 0.0  ;;  %v5155_v30 = vpop.eup %4326 }
 0xace   :  { %v1483_v19 = vsel %vm674_vm2, %v5155_v30, 0.0 }
 0xade   :  { %1724 = vadd.xlane.f32.xlu1 %v1723_v34  ;;  %v477_v34 = vpop.f32.mrf.mxu1 }
 0xae6   :  { %1439 = vmax.xlane.f32.xlu1 %v1438_v41  ;;  %v404_v41 = vpop.permute.xlu0 %403 }
 0xae7   :  { %v478_v50 = vadd.f32 %v477_v34, %v404_v41 }
 0xae9   :  { %v506_v47 = vpack.c.bf16 %v478_v50, %v478_v50 }
 0xaee   :  { %1445 = vmax.xlane.f32.xlu1 %v1444_v56  ;;  %v78_v56 = vld [vmem:[%s6236_s3 + $0xa0] sm:$0xff] }
 0xb07   :  { %398 = vperm.xlu1 %4226, %v292_v43   ;;  %v239_v43 = vadd.f32 %v238_v1, %v78_v56 }
 0xb09   :  { %v268_v35 = vpack.c.bf16 %v239_v43, %v239_v43 }
 0xb16   :  { %v1772_v0 = vpop.trf.xlu2  ;;  %1721 = vadd.xlane.f32.xlu2 %v1720_v21  ;;  %v269_v21 = vpack.c.bf16 %v241_v44, %v241_v44 }
 0xb17   :  { %4105 = vmatmul.msk.bf16.vlgmr.msrb.gmra.mxu2 %vm537_vm1, %v1772_v0 }
 0xb1e   :  { %1481 = vadd.xlane.f32.xlu2 %v1480_v45  ;;  %v1527_v45 = vunpack.c.l.b16 %v506_v47 }
 0xb26   :  { %v1773_v5 = vpop.trf.xlu2  ;;  %1484 = vadd.xlane.f32.xlu2 %v1483_v19  ;;  %v1338_v19 = vunpack.c.l.b16 %v268_v35 }
 0xb27   :  { %4106 = vmatmul.msk.bf16.gmra.mxu2 %vm537_vm1, %v1773_v5  ;;  %v1339_v5 = vunpack.c.l.b16 %v269_v21 }
 0xb2a   :  { %v1282_v37 = vpop.trf.xlu1 }
 0xb2b   :  { %4089 = vmatmul.msk.bf16.vlgmr.msrb.gmra.mxu0 %vm537_vm1, %v1282_v37 }
 0xb31   :  { %1454 = vmax.xlane.f32.xlu1 %v1453_v7 }
 0xb36   :  { %v1774_v8 = vpop.trf.xlu2 }
 0xb37   :  { %4107 = vmatmul.msk.bf16.gmra.mxu2 %vm537_vm1, %v1774_v8 }
 0xb46   :  { %v1775_v18 = vpop.trf.xlu2 }
 0xb47   :  { %4108 = vmatmul.msk.bf16.gmra.mxu2 %vm537_vm1, %v1775_v18  ;;  %v1340_v18 = vpack.c.b16 %v1339_v5, %v1338_v19 }
 0xb49   :  { %v1345_v12 = vsel %vm537_vm1, %v1340_v18, 0  ;;  %v4120_v18 = vld [vmem:[%s6233_s0 + $0x38] sm:$0xff] }
 0xb4a   :  { %1354 = vmatpush.bf16.xpose.msrb.mxu1 %v1345_v12 }
 0xb51   :  { %v1725_v10 = vpop.xlane.xlu1 %1724 }
 0xb59   :  { %v5167_v51 = vpop.xlane.xlu1 %1439 }
 0xb5a   :  { %v1458_v52 = vsub.f32 %v5090_v55, %v5167_v51 }
 0xb61   :  { %v1446_v15 = vpop.xlane.xlu1 %1445 }
 0xb62   :  { %v1460_v58 = vsub.f32 %v5105_v4, %v1446_v15 }
 0xb64   :  { %v1472_v24 = vmul.f32 1.442695, %v1460_v58 }
 0xb66   :  { %4328 = vpow2.f32 %v1472_v24 }
 0xb67   :  { %4330 = vrcp.f32 %v1725_v10 }
 0xb6c   :  { %v5176_v2 = vpop.eup %4328 }
 0xb6d   :  { %v1492_v4 = vsel %vm674_vm2, %v5176_v2, 0.0  ;;  %v4331_v3 = vpop.eup %4330 }
 0xb6e   :  { %1493 = vadd.xlane.f32.xlu0 %v1492_v4  ;;  %v1729_v15 = vmul.f32 %v4331_v3, %v5132_v33  ;;  %v1468_v33 = vmul.f32 1.442695, %v1458_v52  ;;  %v1452_v4 = vpop.xlane.xlu0 %1451  ;;  %v4118_v3 = vld [vmem:[%s6233_s0 + $0x28] sm:$0xff] }
 0xb79   :  { %v399_v11 = vpop.permute.xlu1 %398 }
 0xb7a   :  { %v476_v0 = vadd.f32 %v475_v28, %v399_v11  ;;  %v1461_v28 = vsub.f32 %v5107_v27, %v1449_v32 }
 0xb7c   :  { %v505_v46 = vpack.c.bf16 %v476_v0, %v476_v0  ;;  %v1474_v38 = vmul.f32 1.442695, %v1461_v28  ;;  %v4122_v28 = vld [vmem:[%s6234_s1 + $0x28] sm:$0xff] }
 0xb7e   :  { %v1526_v37 = vunpack.c.l.b16 %v505_v46 }
 0xb80   :  { %v1528_v7 = vpack.c.b16 %v1527_v45, %v1526_v37 }
 0xb82   :  { %v1542_v8 = vsel %vm674_vm2, %v1528_v7, 0 }
 0xb83   :  { %1551 = vmatpush.bf16.xpose.msra.mxu0 %v1542_v8  ;;  %v4119_v8 = vld [vmem:[%s6233_s0 + $0x30] sm:$0xff] }
 0xb84   :  { %v2064_v12 = vpack.c.bf16 %v4120_v18, %v4119_v8 }
 0xb86   :  { %2102 = vmatpush.bf16.msrb.mxu3 %v2064_v12 }
 0xb89   :  { %v1722_v1 = vpop.xlane.xlu2 %1721 }
 0xb8a   :  { %4332 = vrcp.f32 %v1722_v1  ;;  %v4117_v1 = vld [vmem:[%s6233_s0 + $0x20] sm:$0xff] }
 0xb90   :  { %v4333_v13 = vpop.eup %4332 }
 0xb91   :  { %v1728_v20 = vmul.f32 %v4333_v13, %v5145_v59  ;;  %v1482_v58 = vpop.xlane.xlu2 %1481 }
 0xb92   :  { %4334 = vrcp.f32 %v1482_v58  ;;  %v2063_v58 = vpack.c.bf16 %v4118_v3, %v4117_v1 }
 0xb93   :  { %v1730_v16 = vpack.c.bf16 %v1729_v15, %v1728_v20  ;;  %v295_v20 = vld [vmem:[%s6237_s4 + $0xb8] sm:$0xff] }
 0xb94   :  { %2103 = vmatpush.bf16.msrb.mxu3 %v2063_v58 }
 0xb95   :  { %4104 = vmatmul.msk.bf16.vlgmr.msra.gmra.mxu3 %vm537_vm1, %v1730_v16 }
 0xb98   :  { %v4335_v62 = vpop.eup %4334 }
 0xb99   :  { %v1485_v24 = vpop.xlane.xlu2 %1484  ;;  %v1512_v59 = vmul.f32 %v4335_v62, %v5151_v22  ;;  %v1462_v22 = vsub.f32 %v5124_v6, %v1452_v4  ;;  %v4560_v62 = vld [vmem:[%s6235_s2 + $0x8] sm:$0xff] }
 0xb9a   :  { %4336 = vrcp.f32 %v1485_v24  ;;  %v5194_v63 = vpop.f32.mrf.mxu2  ;;  %v4559_v24 = vld [vmem:[%s6235_s2] sm:$0xff] }
 0xb9b   :  { %v1827_v10 = vsel %vm674_vm2, %v5194_v63, -inf  ;;  %4338 = vpow2.f32 %v1468_v33  ;;  %v1476_v41 = vmul.f32 1.442695, %v1462_v22  ;;  %v4123_v33 = vld [vmem:[%s6234_s1 + $0x30] sm:$0xff] }
 0xb9c   :  { %1828 = vmax.xlane.f32.xlu2 %v1827_v10  ;;  %4340 = vpow2.f32 %v1474_v38  ;;  %v294_v10 = vld [vmem:[%s6237_s4 + $0xb0] sm:$0xff]  ;;  %v4562_v38 = vld [vmem:[%s6235_s2 + $0x18] sm:$0xff] }
 0xb9d   :  { %4342 = vpow2.f32 %v1476_v41 }
 0xba0   :  { %v4337_v25 = vpop.eup %4336 }
 0xba1   :  { %v1513_v26 = vmul.f32 %v4337_v25, %v5155_v30  ;;  %v5206_v9 = vpop.eup %4338  ;;  %v4124_v25 = vld [vmem:[%s6234_s1 + $0x38] sm:$0xff] }
 0xba2   :  { %v5201_v40 = vpop.f32.mrf.mxu2  ;;  %v1486_v32 = vsel %vm674_vm2, %v5206_v9, 0.0  ;;  %v5217_v29 = vpop.eup %4340 }
 0xba3   :  { %v1520_v55 = vpack.c.bf16 %v1513_v26, %v1512_v59  ;;  %v1830_v51 = vsel %vm674_vm2, %v5201_v40, -inf  ;;  %v1495_v11 = vsel %vm674_vm2, %v5217_v29, 0.0  ;;  %v5230_v35 = vpop.eup %4342  ;;  %v2071_v59 = vpack.c.bf16 %v4124_v25, %v4123_v33  ;;  %v4121_v26 = vld [vmem:[%s6234_s1 + $0x20] sm:$0xff] }
 0xba4   :  { %1831 = vmax.xlane.f32.xlu2 %v1830_v51  ;;  %v1455_v56 = vpop.xlane.xlu1 %1454  ;;  %v1498_v0 = vsel %vm674_vm2, %v5230_v35, 0.0  ;;  %v2070_v51 = vpack.c.bf16 %v4122_v28, %v4121_v26  ;;  %v5343_v26 = vld [vmem:[%s6235_s2 + $0x30] sm:$0xff] }
 0xba5   :  { %4095 = vmatmul.msk.bf16.vlgmr.msra.gmra.mxu0 %vm674_vm2, %v1520_v55  ;;  %v1463_v43 = vsub.f32 %v5161_v53, %v1455_v56  ;;  %4125 = vmatmul.msk.bf16.vlgmr.msrb.gmra.mxu3 %vm142_vm0, %v4559_v24  ;;  %v4561_v55 = vld [vmem:[%s6235_s2 + $0x10] sm:$0xff] }
 0xba6   :  { %2339 = vmatpush.bf16.msra.mxu2 %v2071_v59 }
 0xba7   :  { %v1478_v21 = vmul.f32 1.442695, %v1463_v43 }
 0xba8   :  { %v5209_v34 = vpop.f32.mrf.mxu0 }
 0xba9   :  { %v1313_v53 = vsel %vm537_vm1, %v5209_v34, -inf  ;;  %4344 = vpow2.f32 %v1478_v21 }
 0xbaa   :  { %v5211_v27 = vpop.f32.mrf.mxu2  ;;  %2340 = vmatpush.bf16.msra.mxu2 %v2070_v51 }
 0xbab   :  { %v1833_v30 = vsel %vm674_vm2, %v5211_v27, -inf }
 0xbac   :  { %1834 = vmax.xlane.f32.xlu1 %v1833_v30  ;;  %1487 = vadd.xlane.f32.xlu2 %v1486_v32  ;;  %v4563_v32 = vld [vmem:[%s6235_s2 + $0x20] sm:$0xff] }
 0xbad   :  { %4137 = vmatmul.msk.bf16.vlgmr.msra.gmra.mxu2 %vm142_vm0, %v4559_v24 }
 0xbaf   :  { %v5240_v19 = vpop.eup %4344 }
 0xbb0   :  { %v5219_v50 = vpop.f32.mrf.mxu0  ;;  %v1501_v7 = vsel %vm674_vm2, %v5240_v19, 0.0 }
 0xbb1   :  { %v1316_v6 = vsel %vm537_vm1, %v5219_v50, -inf }
 0xbb2   :  { %v5224_v44 = vpop.f32.mrf.mxu2  ;;  %1317 = vmax.xlane.f32.xlu0 %v1316_v6 }
 0xbb3   :  { %v1836_v47 = vsel %vm674_vm2, %v5224_v44, -inf }
 0xbb4   :  { %1496 = vadd.xlane.f32.xlu1 %v1495_v11  ;;  %1837 = vmax.xlane.f32.xlu2 %v1836_v47  ;;  %v1491_v11 = vpop.xlane.xlu0 %1490 }
 0xbb5   :  { %4126 = vmatmul.msk.bf16.gmra.mxu3 %vm142_vm0, %v4560_v62 }
 0xbba   :  { %v5236_v46 = vpop.f32.mrf.mxu2  ;;  %1499 = vadd.xlane.f32.xlu0 %v1498_v0 }
 0xbbb   :  { %v1839_v45 = vsel %vm674_vm2, %v5236_v46, -inf }
 0xbbc   :  { %1840 = vmax.xlane.f32.xlu1 %v1839_v45  ;;  %1314 = vmax.xlane.f32.xlu2 %v1313_v53  ;;  %v5321_v45 = vld [vmem:[%s6235_s2 + $0x28] sm:$0xff] }
 0xbbd   :  { %4138 = vmatmul.msk.bf16.gmra.mxu2 %vm142_vm0, %v4560_v62 }
 0xbc2   :  { %v5242_v5 = vpop.f32.mrf.mxu2 }
 0xbc3   :  { %v1842_v37 = vsel %vm674_vm2, %v5242_v5, -inf }
 0xbc4   :  { %1843 = vmax.xlane.f32.xlu2 %v1842_v37  ;;  %1502 = vadd.xlane.f32.xlu1 %v1501_v7 }
 0xbc5   :  { %4127 = vmatmul.msk.bf16.gmra.mxu3 %vm142_vm0, %v4561_v55 }
 0xbca   :  { %v5260_v13 = vpop.f32.mrf.mxu2 }
 0xbcb   :  { %v1845_v15 = vsel %vm674_vm2, %v5260_v13, -inf }
 0xbcc   :  { %1846 = vmax.xlane.f32.xlu1 %v1845_v15 }
 0xbcd   :  { %4139 = vmatmul.msk.bf16.gmra.mxu2 %vm142_vm0, %v4561_v55 }
 0xbce   :  { %413 = vperm.xlu0 %4228, %v295_v20  }
 0xbd2   :  { %v5267_v16 = vpop.f32.mrf.mxu2 }
 0xbd3   :  { %v1848_v52 = vsel %vm674_vm2, %v5267_v16, -inf }
 0xbd4   :  { %1849 = vmax.xlane.f32.xlu1 %v1848_v52 }
 0xbd5   :  { %4128 = vmatmul.msk.bf16.gmra.mxu3 %vm142_vm0, %v4562_v38 }
 0xbdc   :  { %408 = vperm.xlu2 %4227, %v294_v10  }
 0xbdd   :  { %4140 = vmatmul.msk.bf16.gmra.mxu2 %vm142_vm0, %v4562_v38 }
 0xbe1   :  { %v1494_v18 = vpop.xlane.xlu0 %1493 }
 0xbe5   :  { %4129 = vmatmul.msk.bf16.gmra.mxu3 %vm142_vm0, %v4563_v32 }
 0xbed   :  { %4141 = vmatmul.msk.bf16.gmra.mxu2 %vm142_vm0, %v4563_v32 }
 0xbf5   :  { %4130 = vmatmul.msk.bf16.gmra.mxu3 %vm142_vm0, %v5321_v45 }
 0xbfd   :  { %4142 = vmatmul.msk.bf16.gmra.mxu2 %vm142_vm0, %v5321_v45 }
 0xc05   :  { %4131 = vmatmul.msk.bf16.gmra.mxu3 %vm142_vm0, %v5343_v26 }
 0xc0d   :  { %4143 = vmatmul.msk.bf16.gmra.mxu2 %vm142_vm0, %v5343_v26  ;;  %v2189_v26 = vld [vmem:[%s6237_s4] sm:$0xff] }
 0xc0f   :  { %v1829_v4 = vpop.xlane.xlu2 %1828 }
 0xc10   :  { %v1851_v22 = vsub.f32 %v5194_v63, %v1829_v4 }
 0xc12   :  { %v1859_v30 = vmul.f32 1.442695, %v1851_v22 }
 0xc14   :  { %4346 = vpow2.f32 %v1859_v30 }
 0xc17   :  { %v1832_v41 = vpop.xlane.xlu2 %1831 }
 0xc18   :  { %v1852_v56 = vsub.f32 %v5201_v40, %v1832_v41 }
 0xc1a   :  { %v5311_v6 = vpop.eup %4346  ;;  %v1861_v43 = vmul.f32 1.442695, %v1852_v56 }
 0xc1b   :  { %v1875_v63 = vsel %vm674_vm2, %v5311_v6, 0.0 }
 0xc1c   :  { %4348 = vpow2.f32 %v1861_v43  ;;  %1876 = vadd.xlane.f32.xlu1 %v1875_v63 }
 0xc1d   :  { %4350 = vrcp.f32 %v1491_v11 }
 0xc1f   :  { %v1488_v47 = vpop.xlane.xlu2 %1487  ;;  %v1835_v21 = vpop.xlane.xlu1 %1834 }
 0xc20   :  { %4352 = vrcp.f32 %v1488_v47  ;;  %v1853_v0 = vsub.f32 %v5211_v27, %v1835_v21 }
 0xc22   :  { %v5316_v53 = vpop.eup %4348  ;;  %v1863_v40 = vmul.f32 1.442695, %v1853_v0 }
 0xc23   :  { %v1878_v37 = vsel %vm674_vm2, %v5316_v53, 0.0  ;;  %v4351_v7 = vpop.eup %4350 }
 0xc24   :  { %4354 = vpow2.f32 %v1863_v40  ;;  %1879 = vadd.xlane.f32.xlu0 %v1878_v37  ;;  %v1515_v27 = vmul.f32 %v4351_v7, %v5128_v31 }
 0xc25   :  { %v1318_v31 = vpop.xlane.xlu0 %1317 }
 0xc26   :  { %v4353_v8 = vpop.eup %4352  ;;  %v1320_v25 = vsub.f32 %v5219_v50, %v1318_v31 }
 0xc27   :  { %v1514_v12 = vmul.f32 %v4353_v8, %v5206_v9  ;;  %v1838_v1 = vpop.xlane.xlu2 %1837  ;;  %v1497_v3 = vpop.xlane.xlu1 %1496  ;;  %v4566_v8 = vld [vmem:[%s6235_s2 + $0x38] sm:$0xff] }
 0xc28   :  { %v1854_v15 = vsub.f32 %v5224_v44, %v1838_v1  ;;  %4356 = vrcp.f32 %v1497_v3  ;;  %v1323_v51 = vmul.f32 1.442695, %v1320_v25  ;;  %4132 = vmatmul.msk.bf16.gmra.mxu3 %vm142_vm0, %v4566_v8  ;;  %4144 = vmatmul.msk.bf16.gmra.mxu2 %vm142_vm0, %v4566_v8 }
 0xc29   :  { %v1521_v20 = vpack.c.bf16 %v1515_v27, %v1514_v12 }
 0xc2a   :  { %v5331_v58 = vpop.eup %4354  ;;  %v1865_v24 = vmul.f32 1.442695, %v1854_v15 }
 0xc2b   :  { %4096 = vmatmul.msk.bf16.gmra.mxu0 %vm674_vm2, %v1521_v20  ;;  %v1881_v52 = vsel %vm674_vm2, %v5331_v58, 0.0 }
 0xc2c   :  { %4358 = vpow2.f32 %v1865_v24  ;;  %1882 = vadd.xlane.f32.xlu2 %v1881_v52 }
 0xc2d   :  { %4360 = vrcp.f32 %v1494_v18  ;;  %v1500_v22 = vpop.xlane.xlu0 %1499 }
 0xc2e   :  { %v4357_v62 = vpop.eup %4356 }
 0xc2f   :  { %v1315_v9 = vpop.xlane.xlu2 %1314  ;;  %v1841_v10 = vpop.xlane.xlu1 %1840 }
 0xc30   :  { %v1319_v44 = vsub.f32 %v5209_v34, %v1315_v9  ;;  %v1517_v34 = vmul.f32 %v4357_v62, %v5217_v29  ;;  %v1855_v56 = vsub.f32 %v5236_v46, %v1841_v10 }
 0xc32   :  { %v5337_v33 = vpop.eup %4358  ;;  %v1321_v59 = vmul.f32 1.442695, %v1319_v44  ;;  %v4567_v44 = vld [vmem:[%s6235_s2 + $0x40] sm:$0xff] }
 0xc33   :  { %v1884_v28 = vsel %vm674_vm2, %v5337_v33, 0.0  ;;  %v4361_v55 = vpop.eup %4360 }
 0xc34   :  { %4362 = vpow2.f32 %v1321_v59  ;;  %1885 = vadd.xlane.f32.xlu1 %v1884_v28  ;;  %v1516_v50 = vmul.f32 %v4361_v55, %v5176_v2  ;;  %v1867_v2 = vmul.f32 1.442695, %v1855_v56  ;;  %v5399_v59 = vpop.f32.mrf.mxu3  ;;  %v2190_v28 = vld [vmem:[%s6237_s4 + $0x8] sm:$0xff] }
 0xc35   :  { %4364 = vpow2.f32 %v1323_v51  ;;  %v4568_v55 = vld [vmem:[%s6235_s2 + $0x48] sm:$0xff] }
 0xc36   :  { %v1522_v30 = vpack.c.bf16 %v1517_v34, %v1516_v50  ;;  %v2197_v34 = vld [vmem:[%s6237_s4 + $0x40] sm:$0xff] }
 0xc37   :  { %v1844_v38 = vpop.xlane.xlu2 %1843  ;;  %v1503_v4 = vpop.xlane.xlu1 %1502 }
 0xc38   :  { %4366 = vrcp.f32 %v1503_v4  ;;  %v1856_v40 = vsub.f32 %v5242_v5, %v1844_v38  ;;  %4133 = vmatmul.msk.bf16.gmra.mxu3 %vm142_vm0, %v4567_v44  ;;  %v2198_v38 = vld [vmem:[%s6237_s4 + $0x48] sm:$0xff]  ;;  %4145 = vmatmul.msk.bf16.gmra.mxu2 %vm142_vm0, %v4567_v44  ;;  %v2072_v4 = vld [vmem:[%s6236_s3] sm:$0xff] }
 0xc39   :  { %4368 = vrcp.f32 %v1500_v22  ;;  %v2073_v22 = vld [vmem:[%s6236_s3 + $0x8] sm:$0xff] }
 0xc3a   :  { %v5352_v41 = vpop.eup %4362  ;;  %4370 = vpow2.f32 %v1867_v2  ;;  %v1869_v5 = vmul.f32 1.442695, %v1856_v40 }
 0xc3b   :  { %4097 = vmatmul.msk.bf16.gmra.mxu0 %vm674_vm2, %v1522_v30  ;;  %v1325_v43 = vsel %vm537_vm1, %v5352_v41, 0.0  ;;  %v5358_v63 = vpop.eup %4364 }
 0xc3c   :  { %1326 = vadd.xlane.f32.xlu1 %v1325_v43  ;;  %v5411_v51 = vpop.f32.mrf.mxu3 }
 0xc3e   :  { %v4367_v0 = vpop.eup %4366 }
 0xc3f   :  { %v409_v29 = vpop.permute.xlu2 %408  ;;  %v1847_v11 = vpop.xlane.xlu1 %1846 }
 0xc40   :  { %v481_v32 = vadd.f32 %v4710_v48, %v409_v29  ;;  %v1857_v47 = vsub.f32 %v5260_v13, %v1847_v11  ;;  %v414_v21 = vpop.permute.xlu0 %413  ;;  %v1328_v48 = vsel %vm537_vm1, %v5358_v63, 0.0  ;;  %v4369_v13 = vpop.eup %4368 }
 0xc41   :  { %v483_v46 = vadd.f32 %v4712_v49, %v414_v21  ;;  %v1519_v49 = vmul.f32 %v4367_v0, %v5240_v19  ;;  %v1518_v1 = vmul.f32 %v4369_v13, %v5230_v35  ;;  %v5372_v20 = vpop.eup %4370  ;;  %v5432_v21 = vpop.f32.mrf.mxu2 }
 0xc42   :  { %v507_v37 = vpack.c.bf16 %v481_v32, %v481_v32  ;;  %v1871_v7 = vmul.f32 1.442695, %v1857_v47  ;;  %v1887_v35 = vsel %vm674_vm2, %v5372_v20, 0.0 }
 0xc43   :  { %v508_v18 = vpack.c.bf16 %v483_v46, %v483_v46  ;;  %v1523_v31 = vpack.c.bf16 %v1519_v49, %v1518_v1 }
 0xc44   :  { %v1921_v27 = vunpack.c.l.b16 %v507_v37  ;;  %4372 = vpow2.f32 %v1871_v7  ;;  %1329 = vadd.xlane.f32.xlu1 %v1328_v48  ;;  %v2105_v50 = vpop.f32.mrf.mxu3 }
 0xc45   :  { %v1922_v12 = vunpack.c.l.b16 %v508_v18  ;;  %4374 = vpow2.f32 %v1869_v5  ;;  %v2106_v56 = vadd.f32 %v2105_v50, %v2072_v4 }
 0xc47   :  { %v1923_v3 = vpack.c.b16 %v1922_v12, %v1921_v27  ;;  %v1850_v15 = vpop.xlane.xlu1 %1849  ;;  %v2165_v2 = vpack.c.bf16 %v2106_v56, %v2106_v56 }
 0xc48   :  { %v1858_v24 = vsub.f32 %v5267_v16, %v1850_v15  ;;  %4134 = vmatmul.msk.bf16.gmra.mxu3 %vm142_vm0, %v4568_v55  ;;  %4146 = vmatmul.msk.bf16.gmra.mxu2 %vm142_vm0, %v4568_v55 }
 0xc49   :  { %v1937_v52 = vsel %vm674_vm2, %v1923_v3, 0  ;;  %v2428_v11 = vunpack.c.l.b16 %v2165_v2  ;;  %v5436_v40 = vpop.f32.mrf.mxu2 }
 0xc4a   :  { %v5378_v9 = vpop.eup %4372  ;;  %v1873_v19 = vmul.f32 1.442695, %v1858_v24  ;;  %1946 = vmatpush.bf16.xpose.msrb.mxu0 %v1937_v52 }
 0xc4b   :  { %4098 = vmatmul.msk.bf16.gmra.mxu0 %vm674_vm2, %v1523_v31  ;;  %v1893_v10 = vsel %vm674_vm2, %v5378_v9, 0.0  ;;  %v5385_v16 = vpop.eup %4374 }
 0xc4c   :  { %4376 = vpow2.f32 %v1873_v19  ;;  %1888 = vadd.xlane.f32.xlu1 %v1887_v35  ;;  %1894 = vadd.xlane.f32.xlu2 %v1893_v10  ;;  %v1890_v62 = vsel %vm674_vm2, %v5385_v16, 0.0  ;;  %v2107_v30 = vpop.f32.mrf.mxu3 }
 0xc4d   :  { %v2108_v43 = vadd.f32 %v2107_v30, %v2073_v22 }
 0xc4f   :  { %v2166_v29 = vpack.c.bf16 %v2108_v43, %v2108_v43 }
 0xc51   :  { %v2429_v32 = vunpack.c.l.b16 %v2166_v29  ;;  %v5446_v12 = vpop.f32.mrf.mxu2 }
 0xc52   :  { %v5387_v45 = vpop.eup %4376 }
 0xc53   :  { %v1896_v25 = vsel %vm674_vm2, %v5387_v45, 0.0  ;;  %v2430_v47 = vpack.c.b16 %v2429_v32, %v2428_v11 }
 0xc54   :  { %1891 = vadd.xlane.f32.xlu1 %v1890_v62  ;;  %1897 = vadd.xlane.f32.xlu0 %v1896_v25  ;;  %v5434_v46 = vpop.f32.mrf.mxu3 }
 0xc58   :  { %4135 = vmatmul.msk.bf16.gmra.mxu3 %vm142_vm0, %v5082_v42  ;;  %4147 = vmatmul.msk.bf16.gmra.mxu2 %vm142_vm0, %v5082_v42 }
 0xc59   :  { %v5453_v42 = vpop.f32.mrf.mxu2 }
 0xc5c   :  { %v5438_v7 = vpop.f32.mrf.mxu3 }
 0xc61   :  { %v5460_v35 = vpop.f32.mrf.mxu2 }
 0xc64   :  { %2220 = vperm.xlu2 %4227, %v2190_v28   ;;  %v5444_v27 = vpop.f32.mrf.mxu3 }
 0xc68   :  { %2255 = vperm.xlu0 %4228, %v2197_v34   ;;  %4136 = vmatmul.msk.bf16.gmra.mxu3 %vm142_vm0, %v5100_v61 }
 0xc69   :  { %4148 = vmatmul.msk.bf16.gmra.mxu2 %vm142_vm0, %v5100_v61  ;;  %v5466_v28 = vpop.f32.mrf.mxu2 }
 0xc6c   :  { %v5449_v3 = vpop.f32.mrf.mxu3 }
 0xc6d   :  { %2215 = vperm.xlu1 %4226, %v2189_v26   ;;  %v2080_v26 = vld [vmem:[%s6236_s3 + $0x40] sm:$0xff] }
 0xc74   :  { %v5457_v31 = vpop.f32.mrf.mxu3 }
 0xc75   :  { %2260 = vperm.xlu1 %4226, %v2198_v38   ;;  %v2081_v38 = vld [vmem:[%s6236_s3 + $0x48] sm:$0xff] }
 0xc7c   :  { %v5462_v44 = vpop.f32.mrf.mxu3 }
 0xc84   :  { %v2125_v55 = vpop.f32.mrf.mxu3 }
 0xc85   :  { %v2126_v50 = vadd.f32 %v2125_v55, %v2080_v26 }
 0xc87   :  { %v2173_v4 = vpack.c.bf16 %v2126_v50, %v2126_v50 }
 0xc89   :  { %v2450_v56 = vunpack.c.l.b16 %v2173_v4 }
 0xc8a   :  { %2432 = vxpose.xlu0.c.b16.start.end [1/1] (short) (narrow) %v2430_v47, 16 }
 0xc8c   :  { %v2127_v22 = vpop.f32.mrf.mxu3 }
 0xc8d   :  { %v2128_v30 = vadd.f32 %v2127_v22, %v2081_v38 }
 0xc8f   :  { %v1877_v0 = vpop.xlane.xlu1 %1876  ;;  %v2174_v43 = vpack.c.bf16 %v2128_v30, %v2128_v30 }
 0xc90   :  { %4378 = vrcp.f32 %v1877_v0 }
 0xc91   :  { %v2451_v29 = vunpack.c.l.b16 %v2174_v43  ;;  %v1757_v43 = vmul.f32 0.25, %v5411_v51 }
 0xc96   :  { %v4379_v8 = vpop.eup %4378 }
 0xc97   :  { %v1880_v37 = vpop.xlane.xlu0 %1879  ;;  %v1907_v48 = vmul.f32 %v4379_v8, %v5311_v6 }
 0xc98   :  { %4380 = vrcp.f32 %v1880_v37  ;;  %v2452_v37 = vpack.c.b16 %v2451_v29, %v2450_v56 }
 0xc9a   :  { %2464 = vmatpush.bf16.msra.mxu0 %v2452_v37 }
 0xc9e   :  { %v4381_v18 = vpop.eup %4380 }
 0xc9f   :  { %v1908_v13 = vmul.f32 %v4381_v18, %v5316_v53  ;;  %v1883_v5 = vpop.xlane.xlu2 %1882 }
 0xca0   :  { %4382 = vrcp.f32 %v1883_v5 }
 0xca1   :  { %v1915_v49 = vpack.c.bf16 %v1908_v13, %v1907_v48 }
 0xca3   :  { %4109 = vmatmul.msk.bf16.vlgmr.msrb.gmra.mxu0 %vm674_vm2, %v1915_v49 }
 0xca6   :  { %v4383_v6 = vpop.eup %4382 }
 0xca7   :  { %v1886_v1 = vpop.xlane.xlu1 %1885  ;;  %v1909_v15 = vmul.f32 %v4383_v6, %v5331_v58 }
 0xca8   :  { %4384 = vrcp.f32 %v1886_v1 }
 0xcae   :  { %v4385_v53 = vpop.eup %4384 }
 0xcaf   :  { %v1910_v24 = vmul.f32 %v4385_v53, %v5337_v33  ;;  %v1327_v52 = vpop.xlane.xlu1 %1326 }
 0xcb0   :  { %4386 = vrcp.f32 %v1327_v52 }
 0xcb1   :  { %v1916_v19 = vpack.c.bf16 %v1910_v24, %v1909_v15 }
 0xcb3   :  { %4110 = vmatmul.msk.bf16.gmra.mxu0 %vm674_vm2, %v1916_v19 }
 0xcb6   :  { %v4387_v61 = vpop.eup %4386 }
 0xcb7   :  { %v1330_v10 = vpop.xlane.xlu1 %1329  ;;  %v1333_v25 = vmul.f32 %v4387_v61, %v5352_v41 }
 0xcb8   :  { %4388 = vrcp.f32 %v1330_v10 }
 0xcbe   :  { %v4389_v62 = vpop.eup %4388 }
 0xcbf   :  { %v1334_v58 = vmul.f32 %v4389_v62, %v5358_v63  ;;  %v1889_v33 = vpop.xlane.xlu1 %1888  ;;  %v5475_v63 = vpop.f32.mrf.mxu2 }
 0xcc0   :  { %4390 = vrcp.f32 %v1889_v33  ;;  %v1895_v32 = vpop.xlane.xlu2 %1894 }
 0xcc1   :  { %v1335_v34 = vpack.c.bf16 %v1334_v58, %v1333_v25 }
 0xcc3   :  { %4090 = vmatmul.msk.bf16.vlgmr.msrb.gmra.mxu1 %vm537_vm1, %v1335_v34 }
 0xcc6   :  { %v4391_v2 = vpop.eup %4390 }
 0xcc7   :  { %v1892_v41 = vpop.xlane.xlu1 %1891  ;;  %v1911_v47 = vmul.f32 %v4391_v2, %v5372_v20  ;;  %v1898_v8 = vpop.xlane.xlu0 %1897  ;;  %v1756_v2 = vmul.f32 0.25, %v5399_v59 }
 0xcc8   :  { %4392 = vrcp.f32 %v1892_v41  ;;  %v5479_v48 = vpop.f32.mrf.mxu2  ;;  %v2221_v13 = vpop.permute.xlu2 %2220 }
 0xcc9   :  { %4394 = vrcp.f32 %v1898_v8  ;;  %v2345_v5 = vadd.f32 %v5436_v40, %v2221_v13 }
 0xcca   :  { %4396 = vrcp.f32 %v1895_v32 }
 0xccb   :  { %v2403_v15 = vpack.c.bf16 %v2345_v5, %v2345_v5 }
 0xccd   :  { %v2524_v61 = vunpack.c.l.b16 %v2403_v15 }
 0xcce   :  { %v4393_v11 = vpop.eup %4392 }
 0xccf   :  { %v1912_v0 = vmul.f32 %v4393_v11, %v5385_v16  ;;  %v4395_v49 = vpop.eup %4394 }
 0xcd0   :  { %v4397_v1 = vpop.eup %4396  ;;  %v2362_v6 = vpop.f32.mrf.mxu2  ;;  %v1914_v20 = vmul.f32 %v4395_v49, %v5387_v45 }
 0xcd1   :  { %v1917_v18 = vpack.c.bf16 %v1912_v0, %v1911_v47  ;;  %v1913_v16 = vmul.f32 %v4397_v1, %v5378_v9  ;;  %v1972_v47 = vpack.c.bf16 %v1757_v43, %v1756_v2 }
 0xcd3   :  { %4111 = vmatmul.msk.bf16.gmra.mxu0 %vm674_vm2, %v1917_v18  ;;  %v1918_v10 = vpack.c.bf16 %v1914_v20, %v1913_v16  ;;  %v1986_v18 = vsel %vm537_vm1, %v1972_v47, 0 }
 0xcd8   :  { %v2364_v58 = vpop.f32.mrf.mxu2 }
 0xcda   :  { %v2256_v52 = vpop.permute.xlu0 %2255 }
 0xcdb   :  { %v2363_v62 = vadd.f32 %v2362_v6, %v2256_v52 }
 0xcdd   :  { %v2410_v55 = vpack.c.bf16 %v2363_v62, %v2363_v62 }
 0xcdf   :  { %v2216_v53 = vpop.permute.xlu1 %2215  ;;  %v2545_v26 = vunpack.c.l.b16 %v2410_v55 }
 0xce0   :  { %v2343_v24 = vadd.f32 %v5432_v21, %v2216_v53  ;;  %v1553_v21 = vpop.f32.mrf.mxu0 }
 0xce2   :  { %v2402_v19 = vpack.c.bf16 %v2343_v24, %v2343_v24 }
 0xce3   :  { %4112 = vmatmul.msk.bf16.gmra.mxu0 %vm674_vm2, %v1918_v10 }
 0xce4   :  { %v2523_v25 = vunpack.c.l.b16 %v2402_v19 }
 0xce6   :  { %v2525_v40 = vpack.c.b16 %v2524_v61, %v2523_v25 }
 0xce7   :  { %v2261_v33 = vpop.permute.xlu1 %2260 }
 0xce8   :  { %v2365_v34 = vadd.f32 %v2364_v58, %v2261_v33  ;;  %2527 = vxpose.xlu2.c.b16.start.end [1/1] (short) (narrow) %v2525_v40, 64  ;;  %v1555_v38 = vpop.f32.mrf.mxu0 }
 0xce9   :  { %v1573_v13 = vpack.c.bf16 %v1555_v38, %v1553_v21 }
 0xcea   :  { %v2411_v45 = vpack.c.bf16 %v2365_v34, %v2365_v34 }
 0xcec   :  { %v2546_v9 = vunpack.c.l.b16 %v2411_v45 }
 0xcee   :  { %v2547_v50 = vpack.c.b16 %v2546_v9, %v2545_v26 }
 0xcf0   :  { %2568 = vmatpush.bf16.msrb.mxu0 %v2547_v50  ;;  %v1558_v41 = vpop.f32.mrf.mxu0  ;;  %v2205_v50 = vld [vmem:[%s6237_s4 + $0x80] sm:$0xff] }
 0xcf8   :  { %v1560_v22 = vpop.f32.mrf.mxu0 }
 0xcf9   :  { %v1574_v51 = vpack.c.bf16 %v1560_v22, %v1558_v41 }
 0xd00   :  { %v1563_v56 = vpop.f32.mrf.mxu0 }
 0xd08   :  { %v1565_v37 = vpop.f32.mrf.mxu0 }
 0xd09   :  { %v1575_v6 = vpack.c.bf16 %v1565_v37, %v1563_v56 }
 0xd10   :  { %v1568_v49 = vpop.f32.mrf.mxu0 }
 0xd18   :  { %v1570_v5 = vpop.f32.mrf.mxu0 }
 0xd19   :  { %v1576_v53 = vpack.c.bf16 %v1570_v5, %v1568_v49 }
 0xd20   :  { %v1948_v59 = vpop.f32.mrf.mxu0 }
 0xd28   :  { %v1950_v1 = vpop.f32.mrf.mxu0 }
 0xd29   :  { %v1968_v52 = vpack.c.bf16 %v1950_v1, %v1948_v59 }
 0xd30   :  { %v1953_v20 = vpop.f32.mrf.mxu0 }
 0xd36   :  { %v2440_v4 = vpop.trf.xlu0 }
 0xd37   :  { %4149 = vmatmul.msk.bf16.vlgmr.msra.gmra.mxu0 %vm537_vm1, %v2440_v4 }
 0xd38   :  { %v1955_v16 = vpop.f32.mrf.mxu0 }
 0xd39   :  { %v1969_v62 = vpack.c.bf16 %v1955_v16, %v1953_v20  ;;  %v2206_v16 = vld [vmem:[%s6237_s4 + $0x88] sm:$0xff] }
 0xd40   :  { %v1356_v30 = vpop.f32.mrf.mxu1 }
 0xd41   :  { %v1361_v11 = vmul.f32 0.25, %v1356_v30 }
 0xd48   :  { %v1358_v29 = vpop.f32.mrf.mxu1 }
 0xd49   :  { %v1362_v32 = vmul.f32 0.25, %v1358_v29 }
 0xd4b   :  { %v1577_v0 = vpack.c.bf16 %v1362_v32, %v1361_v11 }
 0xd4d   :  { %v1591_v8 = vsel %vm537_vm1, %v1577_v0, 0 }
 0xd4e   :  { %1600 = vmatpush.bf16.xpose.msra.mxu1 %v1591_v8 }
 0xd50   :  { %v1958_v24 = vpop.f32.mrf.mxu0 }
 0xd55   :  { %4099 = vmatmul.msk.bf16.vlgmr.msra.gmra.mxu1 %vm537_vm1, %v1573_v13 }
 0xd56   :  { %1995 = vmatpush.bf16.xpose.msrb.mxu1 %v1986_v18 }
 0xd58   :  { %v1960_v19 = vpop.f32.mrf.mxu0 }
 0xd59   :  { %v1970_v40 = vpack.c.bf16 %v1960_v19, %v1958_v24 }
 0xd60   :  { %v1963_v61 = vpop.f32.mrf.mxu0 }
 0xd65   :  { %4100 = vmatmul.msk.bf16.gmra.mxu1 %vm537_vm1, %v1574_v51 }
 0xd68   :  { %v1965_v58 = vpop.f32.mrf.mxu0 }
 0xd69   :  { %v1971_v9 = vpack.c.bf16 %v1965_v58, %v1963_v61 }
 0xd75   :  { %4101 = vmatmul.msk.bf16.gmra.mxu1 %vm537_vm1, %v1575_v6 }
 0xd85   :  { %4102 = vmatmul.msk.bf16.gmra.mxu1 %vm537_vm1, %v1576_v53  ;;  %v5538_v53 = vpop.f32.mrf.mxu3 }
 0xd89   :  { %v2535_v15 = vpop.trf.xlu2 }
 0xd8a   :  { %4151 = vmatmul.msk.bf16.vlgmr.msrb.gmra.mxu0 %vm537_vm1, %v2535_v15 }
 0xd8d   :  { %v5543_v15 = vpop.f32.mrf.mxu3 }
 0xd95   :  { %4113 = vmatmul.msk.bf16.vlgmr.msrb.gmra.mxu1 %vm537_vm1, %v1968_v52  ;;  %v5545_v24 = vpop.f32.mrf.mxu3 }
 0xd99   :  { %v2536_v10 = vpop.trf.xlu2 }
 0xd9a   :  { %4152 = vmatmul.msk.bf16.gmra.mxu0 %vm537_vm1, %v2536_v10 }
 0xd9d   :  { %v5547_v52 = vpop.f32.mrf.mxu3 }
 0xda5   :  { %4114 = vmatmul.msk.bf16.gmra.mxu1 %vm537_vm1, %v1969_v62  ;;  %v5549_v19 = vpop.f32.mrf.mxu3 }
 0xda9   :  { %v2537_v25 = vpop.trf.xlu2 }
 0xdaa   :  { %4153 = vmatmul.msk.bf16.gmra.mxu0 %vm537_vm1, %v2537_v25 }
 0xdad   :  { %v5553_v58 = vpop.f32.mrf.mxu3 }
 0xdb4   :  { %v2466_v33 = vpop.f32.mrf.mxu0 }
 0xdb5   :  { %4115 = vmatmul.msk.bf16.gmra.mxu1 %vm537_vm1, %v1970_v40  ;;  %v2471_v55 = vsel %vm537_vm1, %v2466_v33, -inf }
 0xdb6   :  { %2472 = vmax.xlane.f32.xlu1 %v2471_v55 }
 0xdb9   :  { %v2538_v34 = vpop.trf.xlu2 }
 0xdba   :  { %4154 = vmatmul.msk.bf16.gmra.mxu0 %vm537_vm1, %v2538_v34  ;;  %v5557_v34 = vpop.f32.mrf.mxu2 }
 0xdbc   :  { %v2468_v45 = vpop.f32.mrf.mxu0 }
 0xdbd   :  { %v2474_v26 = vsel %vm537_vm1, %v2468_v45, -inf }
 0xdbe   :  { %2475 = vmax.xlane.f32.xlu0 %v2474_v26 }
 0xdc5   :  { %4116 = vmatmul.msk.bf16.gmra.mxu1 %vm537_vm1, %v1971_v9 }
 0xdcf   :  { %2295 = vperm.xlu1 %4226, %v2205_v50   ;;  %v2145_v50 = vpop.f32.mrf.mxu3 }
 0xe07   :  { %v2570_v21 = vpop.f32.mrf.mxu0 }
 0xe08   :  { %v2590_v38 = vsel %vm674_vm2, %v2570_v21, -inf }
 0xe09   :  { %2591 = vmax.xlane.f32.xlu2 %v2590_v38 }
 0xe0f   :  { %v2572_v41 = vpop.f32.mrf.mxu0 }
 0xe10   :  { %v2593_v4 = vsel %vm674_vm2, %v2572_v41, -inf }
 0xe11   :  { %2594 = vmax.xlane.f32.xlu1 %v2593_v4 }
 0xe17   :  { %v2575_v22 = vpop.f32.mrf.mxu0 }
 0xe18   :  { %v2596_v30 = vsel %vm674_vm2, %v2575_v22, -inf }
 0xe19   :  { %2597 = vmax.xlane.f32.xlu1 %v2596_v30 }
 0xe1f   :  { %v5512_v56 = vpop.f32.mrf.mxu0 }
 0xe20   :  { %v2599_v43 = vsel %vm674_vm2, %v5512_v56, -inf }
 0xe21   :  { %2600 = vmax.xlane.f32.xlu1 %v2599_v43 }
 0xe27   :  { %v5516_v2 = vpop.f32.mrf.mxu0 }
 0xe28   :  { %v2602_v29 = vsel %vm674_vm2, %v5516_v2, -inf }
 0xe29   :  { %2603 = vmax.xlane.f32.xlu1 %v2602_v29  ;;  %v2473_v11 = vpop.xlane.xlu1 %2472 }
 0xe2a   :  { %v2477_v32 = vsub.f32 %v2466_v33, %v2473_v11  ;;  %v5568_v11 = vpop.f32.mrf.mxu2 }
 0xe2c   :  { %v2479_v47 = vmul.f32 1.442695, %v2477_v32 }
 0xe2e   :  { %4398 = vpow2.f32 %v2479_v47  ;;  %v2089_v47 = vld [vmem:[%s6236_s3 + $0x88] sm:$0xff] }
 0xe2f   :  { %v5520_v0 = vpop.f32.mrf.mxu0 }
 0xe30   :  { %v2605_v37 = vsel %vm674_vm2, %v5520_v0, -inf }
 0xe31   :  { %v2476_v8 = vpop.xlane.xlu0 %2475  ;;  %2606 = vmax.xlane.f32.xlu1 %v2605_v37  ;;  %v2147_v37 = vpop.f32.mrf.mxu3 }
 0xe32   :  { %v2478_v18 = vsub.f32 %v2468_v45, %v2476_v8  ;;  %v2148_v8 = vadd.f32 %v2147_v37, %v2089_v47 }
 0xe34   :  { %v2481_v13 = vmul.f32 1.442695, %v2478_v18  ;;  %v5524_v49 = vpop.eup %4398 }
 0xe35   :  { %v2483_v51 = vsel %vm537_vm1, %v5524_v49, 0.0 }
 0xe36   :  { %4400 = vpow2.f32 %v2481_v13  ;;  %v2182_v13 = vpack.c.bf16 %v2148_v8, %v2148_v8 }
 0xe37   :  { %v5526_v5 = vpop.f32.mrf.mxu0 }
 0xe38   :  { %v2608_v40 = vsel %vm674_vm2, %v5526_v5, -inf }
 0xe39   :  { %2484 = vadd.xlane.f32.xlu1 %v2483_v51 }
 0xe3c   :  { %v5530_v59 = vpop.eup %4400 }
 0xe3d   :  { %v2486_v20 = vsel %vm537_vm1, %v5530_v59, 0.0 }
 0xe3f   :  { %v5532_v1 = vpop.f32.mrf.mxu0 }
 0xe40   :  { %v2611_v6 = vsel %vm674_vm2, %v5532_v1, -inf }
 0xe41   :  { %2612 = vmax.xlane.f32.xlu0 %v2611_v6  ;;  %2487 = vadd.xlane.f32.xlu1 %v2486_v20  ;;  %v5551_v10 = vpop.permute.xlu1 %2295  ;;  %v2497_v6 = vunpack.c.l.b16 %v2182_v13 }
 0xe5a   :  { %2300 = vperm.xlu1 %4226, %v2206_v16  }
 0xe7c   :  { %v2592_v61 = vpop.xlane.xlu2 %2591 }
 0xe7d   :  { %v2614_v62 = vsub.f32 %v2570_v21, %v2592_v61  ;;  %v2088_v21 = vld [vmem:[%s6236_s3 + $0x80] sm:$0xff] }
 0xe7e   :  { %v2146_v38 = vadd.f32 %v2145_v50, %v2088_v21 }
 0xe7f   :  { %v2622_v25 = vmul.f32 1.442695, %v2614_v62 }
 0xe80   :  { %v2181_v29 = vpack.c.bf16 %v2146_v38, %v2146_v38 }
 0xe81   :  { %4402 = vpow2.f32 %v2622_v25 }
 0xe82   :  { %v2496_v18 = vunpack.c.l.b16 %v2181_v29 }
 0xe84   :  { %2609 = vmax.xlane.f32.xlu1 %v2608_v40  ;;  %v2595_v33 = vpop.xlane.xlu1 %2594  ;;  %v2498_v61 = vpack.c.b16 %v2497_v6, %v2496_v18  ;;  %v5581_v40 = vpop.f32.mrf.mxu2 }
 0xe85   :  { %v2615_v55 = vsub.f32 %v2572_v41, %v2595_v33 }
 0xe86   :  { %v2503_v25 = vsel %vm537_vm1, %v2498_v61, 0 }
 0xe87   :  { %v5559_v45 = vpop.eup %4402  ;;  %v2624_v26 = vmul.f32 1.442695, %v2615_v55  ;;  %2512 = vmatpush.bf16.xpose.msra.mxu1 %v2503_v25 }
 0xe88   :  { %v2638_v9 = vsel %vm674_vm2, %v5559_v45, 0.0 }
 0xe89   :  { %4404 = vpow2.f32 %v2624_v26  ;;  %2639 = vadd.xlane.f32.xlu0 %v2638_v9 }
 0xe8c   :  { %v2598_v4 = vpop.xlane.xlu1 %2597  ;;  %v5590_v21 = vpop.f32.mrf.mxu2 }
 0xe8d   :  { %v2616_v30 = vsub.f32 %v2575_v22, %v2598_v4 }
 0xe8f   :  { %v5566_v43 = vpop.eup %4404  ;;  %v2626_v41 = vmul.f32 1.442695, %v2616_v30 }
 0xe90   :  { %v2641_v32 = vsel %vm674_vm2, %v5566_v43, 0.0 }
 0xe91   :  { %4406 = vpow2.f32 %v2626_v41  ;;  %2642 = vadd.xlane.f32.xlu0 %v2641_v32 }
 0xe94   :  { %v2601_v22 = vpop.xlane.xlu1 %2600  ;;  %v5599_v47 = vpop.f32.mrf.mxu2 }
 0xe95   :  { %v2617_v51 = vsub.f32 %v5512_v56, %v2601_v22  ;;  %v5586_v56 = vpop.f32.mrf.mxu1 }
 0xe97   :  { %v5576_v20 = vpop.eup %4406  ;;  %v2628_v16 = vmul.f32 1.442695, %v2617_v51 }
 0xe98   :  { %v2644_v62 = vsel %vm674_vm2, %v5576_v20, 0.0 }
 0xe99   :  { %4408 = vpow2.f32 %v2628_v16  ;;  %2645 = vadd.xlane.f32.xlu0 %v2644_v62 }
 0xe9c   :  { %v2604_v33 = vpop.xlane.xlu1 %2603  ;;  %v5608_v6 = vpop.f32.mrf.mxu2 }
 0xe9d   :  { %v2618_v55 = vsub.f32 %v5516_v2, %v2604_v33  ;;  %v5597_v29 = vpop.f32.mrf.mxu1 }
 0xe9f   :  { %v5584_v26 = vpop.eup %4408  ;;  %v2630_v9 = vmul.f32 1.442695, %v2618_v55 }
 0xea0   :  { %v2647_v50 = vsel %vm674_vm2, %v5584_v26, 0.0 }
 0xea1   :  { %4410 = vpow2.f32 %v2630_v9  ;;  %2648 = vadd.xlane.f32.xlu0 %v2647_v50 }
 0xea4   :  { %v2607_v38 = vpop.xlane.xlu1 %2606  ;;  %v2382_v50 = vpop.f32.mrf.mxu2 }
 0xea5   :  { %v2619_v4 = vsub.f32 %v5520_v0, %v2607_v38  ;;  %v5605_v0 = vpop.f32.mrf.mxu1  ;;  %v2082_v38 = vld [vmem:[%s6236_s3 + $0x50] sm:$0xff] }
 0xea7   :  { %v5593_v30 = vpop.eup %4410  ;;  %v2632_v41 = vmul.f32 1.442695, %v2619_v4  ;;  %v2131_v4 = vadd.f32 %v5538_v53, %v2082_v38 }
 0xea8   :  { %v2650_v2 = vsel %vm674_vm2, %v5593_v30, 0.0 }
 0xea9   :  { %4412 = vpow2.f32 %v2632_v41  ;;  %2651 = vadd.xlane.f32.xlu1 %v2650_v2  ;;  %v2383_v2 = vadd.f32 %v2382_v50, %v5551_v10 }
 0xeac   :  { %v2485_v32 = vpop.xlane.xlu1 %2484 }
 0xead   :  { %4414 = vrcp.f32 %v2485_v32  ;;  %v5612_v33 = vpop.f32.mrf.mxu1  ;;  %v2384_v32 = vpop.f32.mrf.mxu2 }
 0xeae   :  { %6239 = vst [vmem:[#allocation5_spill] sm:$0xff] %v5612_v33 }
 0xeaf   :  { %v5601_v37 = vpop.eup %4412 }
 0xeb0   :  { %v2653_v8 = vsel %vm674_vm2, %v5601_v37, 0.0 }
 0xeb1   :  { %2654 = vadd.xlane.f32.xlu0 %v2653_v8  ;;  %v2175_v8 = vpack.c.bf16 %v2131_v4, %v2131_v4 }
 0xeb3   :  { %v4415_v16 = vpop.eup %4414 }
 0xeb4   :  { %v2613_v18 = vpop.xlane.xlu0 %2612  ;;  %v2488_v13 = vpop.xlane.xlu1 %2487  ;;  %v2491_v62 = vmul.f32 %v4415_v16, %v5524_v49  ;;  %v2083_v49 = vld [vmem:[%s6236_s3 + $0x58] sm:$0xff]  ;;  %v2813_v16 = vunpack.c.l.b16 %v2175_v8 }
 0xeb5   :  { %v2621_v22 = vsub.f32 %v5532_v1, %v2613_v18  ;;  %4416 = vrcp.f32 %v2488_v13  ;;  %v2133_v41 = vadd.f32 %v5543_v15, %v2083_v49 }
 0xeb7   :  { %v2636_v51 = vmul.f32 1.442695, %v2621_v22  ;;  %v2176_v18 = vpack.c.bf16 %v2133_v41, %v2133_v41  ;;  %v2418_v22 = vpack.c.bf16 %v2383_v2, %v2383_v2 }
 0xeb9   :  { %4418 = vpow2.f32 %v2636_v51 }
 0xebb   :  { %v4417_v61 = vpop.eup %4416 }
 0xebc   :  { %v2492_v25 = vmul.f32 %v4417_v61, %v5530_v59  ;;  %v5625_v59 = vpop.f32.mrf.mxu1  ;;  %v2814_v61 = vunpack.c.l.b16 %v2176_v18 }
 0xebd   :  { %6240 = vst [vmem:[#allocation6_spill] sm:$0xff] %v5625_v59 }
 0xebe   :  { %v2493_v55 = vpack.c.bf16 %v2492_v25, %v2491_v62  ;;  %v2815_v33 = vpack.c.b16 %v2814_v61, %v2813_v16 }
 0xebf   :  { %v5614_v9 = vpop.eup %4418 }
 0xec0   :  { %4150 = vmatmul.msk.bf16.vlgmr.msra.gmra.mxu1 %vm537_vm1, %v2493_v55  ;;  %v2659_v1 = vsel %vm674_vm2, %v5614_v9, 0.0  ;;  %v2684_v55 = vunpack.c.l.b16 %v2418_v22 }
 0xec1   :  { %2660 = vadd.xlane.f32.xlu0 %v2659_v1 }
 0xec4   :  { %v5630_v25 = vpop.f32.mrf.mxu1 }
 0xecc   :  { %v2301_v13 = vpop.permute.xlu1 %2300  ;;  %v5633_v15 = vpop.f32.mrf.mxu1 }
 0xecd   :  { %v2385_v51 = vadd.f32 %v2384_v32, %v2301_v13 }
 0xecf   :  { %v2419_v62 = vpack.c.bf16 %v2385_v51, %v2385_v51 }
 0xed1   :  { %v2685_v1 = vunpack.c.l.b16 %v2419_v62 }
 0xed3   :  { %v2686_v59 = vpack.c.b16 %v2685_v1, %v2684_v55 }
 0xed4   :  { %v5635_v10 = vpop.f32.mrf.mxu1 }
 0xed5   :  { %v2700_v53 = vsel %vm674_vm2, %v2686_v59, 0 }
 0xed6   :  { %2709 = vmatpush.bf16.xpose.msrb.mxu1 %v2700_v53 }
 0xedc   :  { %v5637_v50 = vpop.f32.mrf.mxu1 }
 0xede   :  { %2827 = vmatpush.bf16.msra.mxu1 %v2815_v33 }
 0xee4   :  { %v5640_v4 = vpop.f32.mrf.mxu1 }
 0xeec   :  { %v5642_v8 = vpop.f32.mrf.mxu1 }
 0xef4   :  { %v5647_v16 = vpop.f32.mrf.mxu1 }
 0xef7   :  { %v2610_v38 = vpop.xlane.xlu1 %2609 }
 0xef8   :  { %v2620_v49 = vsub.f32 %v5526_v5, %v2610_v38 }
 0xefa   :  { %v2634_v41 = vmul.f32 1.442695, %v2620_v49 }
 0xefc   :  { %4420 = vpow2.f32 %v2634_v41  ;;  %v2640_v2 = vpop.xlane.xlu0 %2639  ;;  %v5650_v55 = vpop.f32.mrf.mxu1 }
 0xefd   :  { %4422 = vrcp.f32 %v2640_v2 }
 0xf02   :  { %v4421_v32 = vpop.eup %4420 }
 0xf03   :  { %v2656_v33 = vsel %vm674_vm2, %v4421_v32, 0.0  ;;  %v4423_v18 = vpop.eup %4422 }
 0xf04   :  { %v2643_v59 = vpop.xlane.xlu0 %2642  ;;  %2657 = vadd.xlane.f32.xlu1 %v2656_v33  ;;  %v2670_v22 = vmul.f32 %v4423_v18, %v5559_v45 }
 0xf05   :  { %4424 = vrcp.f32 %v2643_v59 }
 0xf0b   :  { %v4425_v13 = vpop.eup %4424 }
 0xf0c   :  { %v2671_v5 = vmul.f32 %v4425_v13, %v5566_v43  ;;  %v2646_v51 = vpop.xlane.xlu0 %2645  ;;  %v5655_v43 = vpop.f32.mrf.mxu1 }
 0xf0d   :  { %4426 = vrcp.f32 %v2646_v51  ;;  %6241 = vst [vmem:[#allocation7_spill] sm:$0xff] %v5655_v43 }
 0xf0e   :  { %v2678_v61 = vpack.c.bf16 %v2671_v5, %v2670_v22 }
 0xf10   :  { %4155 = vmatmul.msk.bf16.vlgmr.msrb.gmra.mxu1 %vm674_vm2, %v2678_v61 }
 0xf13   :  { %v4427_v1 = vpop.eup %4426 }
 0xf14   :  { %v2649_v62 = vpop.xlane.xlu0 %2648  ;;  %v2672_v38 = vmul.f32 %v4427_v1, %v5576_v20  ;;  %v5657_v18 = vpop.f32.mrf.mxu1  ;;  %v2074_v20 = vld [vmem:[%s6236_s3 + $0x10] sm:$0xff] }
 0xf15   :  { %4428 = vrcp.f32 %v2649_v62  ;;  %v2111_v51 = vadd.f32 %v5434_v46, %v2074_v20 }
 0xf17   :  { %v2167_v62 = vpack.c.bf16 %v2111_v51, %v2111_v51 }
 0xf1b   :  { %v4429_v53 = vpop.eup %4428 }
 0xf1c   :  { %v2673_v49 = vmul.f32 %v4429_v53, %v5584_v26  ;;  %v2652_v41 = vpop.xlane.xlu1 %2651  ;;  %v2075_v26 = vld [vmem:[%s6236_s3 + $0x18] sm:$0xff] }
 0xf1d   :  { %4430 = vrcp.f32 %v2652_v41  ;;  %v2113_v61 = vadd.f32 %v5438_v7, %v2075_v26 }
 0xf1e   :  { %v2679_v45 = vpack.c.bf16 %v2673_v49, %v2672_v38 }
 0xf1f   :  { %v2168_v1 = vpack.c.bf16 %v2113_v61, %v2113_v61 }
 0xf20   :  { %4156 = vmatmul.msk.bf16.gmra.mxu1 %vm674_vm2, %v2679_v45 }
 0xf21   :  { %v2792_v53 = vunpack.c.l.b16 %v2168_v1 }
 0xf23   :  { %v4431_v33 = vpop.eup %4430 }
 0xf24   :  { %v2655_v2 = vpop.xlane.xlu0 %2654  ;;  %v2674_v13 = vmul.f32 %v4431_v33, %v5593_v30  ;;  %v5670_v30 = vpop.f32.mrf.mxu1 }
 0xf25   :  { %4432 = vrcp.f32 %v2655_v2  ;;  %6242 = vst [vmem:[#allocation8_spill] sm:$0xff] %v5670_v30 }
 0xf2b   :  { %v4433_v59 = vpop.eup %4432 }
 0xf2c   :  { %v2675_v22 = vmul.f32 %v4433_v59, %v5601_v37  ;;  %v2791_v37 = vunpack.c.l.b16 %v2167_v62  ;;  %v2199_v62 = vld [vmem:[%s6237_s4 + $0x50] sm:$0xff] }
 0xf2e   :  { %v2680_v5 = vpack.c.bf16 %v2675_v22, %v2674_v13  ;;  %v2793_v38 = vpack.c.b16 %v2792_v53, %v2791_v37 }
 0xf30   :  { %4157 = vmatmul.msk.bf16.gmra.mxu1 %vm674_vm2, %v2680_v5 }
 0xf34   :  { %v2661_v46 = vpop.xlane.xlu0 %2660 }
 0xf35   :  { %4434 = vrcp.f32 %v2661_v46 }
 0xf3b   :  { %v4435_v13 = vpop.eup %4434 }
 0xf3c   :  { %v2677_v20 = vmul.f32 %v4435_v13, %v5614_v9 }
 0xf3d   :  { %v2514_v49 = vpop.f32.mrf.mxu1 }
 0xf3e   :  { %2795 = vxpose.xlu1.c.b16.start.end [1/1] (short) (narrow) %v2793_v38, 16  ;;  %v2519_v41 = vmul.f32 0.25, %v2514_v49 }
 0xf45   :  { %v2516_v45 = vpop.f32.mrf.mxu1 }
 0xf46   :  { %v2520_v2 = vmul.f32 0.25, %v2516_v45 }
 0xf48   :  { %v2735_v33 = vpack.c.bf16 %v2520_v2, %v2519_v41 }
 0xf4a   :  { %v2749_v59 = vsel %vm537_vm1, %v2735_v33, 0 }
 0xf4b   :  { %2758 = vmatpush.bf16.xpose.msra.mxu0 %v2749_v59 }
 0xf77   :  { %v2658_v7 = vpop.xlane.xlu1 %2657 }
 0xf78   :  { %4436 = vrcp.f32 %v2658_v7 }
 0xf7e   :  { %v4437_v22 = vpop.eup %4436 }
 0xf7f   :  { %v2676_v26 = vmul.f32 %v4437_v22, %v4421_v32 }
 0xf81   :  { %v2681_v5 = vpack.c.bf16 %v2677_v20, %v2676_v26 }
 0xf83   :  { %4158 = vmatmul.msk.bf16.gmra.mxu1 %vm674_vm2, %v2681_v5 }
 0xf8d   :  { %v2711_v51 = vpop.f32.mrf.mxu1 }
 0xf95   :  { %v2713_v61 = vpop.f32.mrf.mxu1 }
 0xf96   :  { %v2731_v1 = vpack.c.bf16 %v2713_v61, %v2711_v51 }
 0xf98   :  { %4159 = vmatmul.msk.bf16.vlgmr.msra.gmra.mxu0 %vm537_vm1, %v2731_v1  ;;  %2265 = vperm.xlu1 %4226, %v2199_v62   ;;  %v2191_v62 = vld [vmem:[%s6237_s4 + $0x10] sm:$0xff]  ;;  %v2192_v1 = vld [vmem:[%s6237_s4 + $0x18] sm:$0xff] }
 0xf9d   :  { %v2716_v37 = vpop.f32.mrf.mxu1 }
 0xfa5   :  { %v2718_v53 = vpop.f32.mrf.mxu1 }
 0xfa6   :  { %v2732_v38 = vpack.c.bf16 %v2718_v53, %v2716_v37 }
 0xfa8   :  { %4160 = vmatmul.msk.bf16.gmra.mxu0 %vm537_vm1, %v2732_v38 }
 0xfad   :  { %v2721_v9 = vpop.f32.mrf.mxu1 }
 0xfb5   :  { %v2723_v32 = vpop.f32.mrf.mxu1 }
 0xfb6   :  { %v2733_v49 = vpack.c.bf16 %v2723_v32, %v2721_v9 }
 0xfb8   :  { %4161 = vmatmul.msk.bf16.gmra.mxu0 %vm537_vm1, %v2733_v49 }
 0xfea   :  { %v2803_v45 = vpop.trf.xlu1 }
 0xfeb   :  { %4163 = vmatmul.msk.bf16.vlgmr.msra.gmra.mxu1 %vm537_vm1, %v2803_v45 }
0x1000   :  { %v2726_v41 = vpop.f32.mrf.mxu1 }
0x1008   :  { %v2728_v2 = vpop.f32.mrf.mxu1 }
0x1009   :  { %v2734_v33 = vpack.c.bf16 %v2728_v2, %v2726_v41 }
0x100b   :  { %4162 = vmatmul.msk.bf16.gmra.mxu0 %vm537_vm1, %v2734_v33 }
0x1015   :  { %v2760_v59 = vpop.f32.mrf.mxu0 }
0x1016   :  { %2781 = vst.msk [vmem:[#allocation2 + $0x40] sm:$0xff] %vm537_vm1, %v2760_v59 }
0x101d   :  { %v2762_v46 = vpop.f32.mrf.mxu0 }
0x101e   :  { %2782 = vst.msk [vmem:[#allocation2 + $0x48] sm:$0xff] %vm537_vm1, %v2762_v46 }
0x1025   :  { %v2765_v7 = vpop.f32.mrf.mxu0 }
0x1026   :  { %2783 = vst.msk [vmem:[#allocation2 + $0x50] sm:$0xff] %vm537_vm1, %v2765_v7  ;;  %v2200_v7 = vld [vmem:[%s6237_s4 + $0x58] sm:$0xff] }
0x102d   :  { %v2767_v13 = vpop.f32.mrf.mxu0 }
0x102e   :  { %2784 = vst.msk [vmem:[#allocation2 + $0x58] sm:$0xff] %vm537_vm1, %v2767_v13 }
0x1035   :  { %v2770_v22 = vpop.f32.mrf.mxu0 }
0x1036   :  { %2785 = vst.msk [vmem:[#allocation2 + $0x60] sm:$0xff] %vm537_vm1, %v2770_v22 }
0x103d   :  { %v2772_v20 = vpop.f32.mrf.mxu0 }
0x103e   :  { %2786 = vst.msk [vmem:[#allocation2 + $0x68] sm:$0xff] %vm537_vm1, %v2772_v20 }
0x1068   :  { %v2829_v26 = vpop.f32.mrf.mxu1 }
0x1069   :  { %v2834_v5 = vsel %vm537_vm1, %v2829_v26, -inf }
0x106a   :  { %2835 = vmax.xlane.f32.xlu2 %v2834_v5 }
0x1070   :  { %v2831_v51 = vpop.f32.mrf.mxu1 }
0x1071   :  { %v2837_v61 = vsel %vm537_vm1, %v2831_v51, -inf }
0x1072   :  { %2838 = vmax.xlane.f32.xlu0 %v2837_v61 }
0x1082   :  { %2225 = vperm.xlu2 %4227, %v2191_v62  }
0x1086   :  { %2230 = vperm.xlu0 %4228, %v2192_v1  }
0x1088   :  { %v2775_v37 = vpop.f32.mrf.mxu0 }
0x1089   :  { %2787 = vst.msk [vmem:[#allocation2 + $0x70] sm:$0xff] %vm537_vm1, %v2775_v37  ;;  %v2150_v37 = vpop.f32.mrf.mxu3 }
0x1090   :  { %v2777_v53 = vpop.f32.mrf.mxu0 }
0x1091   :  { %2788 = vst.msk [vmem:[#allocation2 + $0x78] sm:$0xff] %vm537_vm1, %v2777_v53  ;;  %v2090_v53 = vld [vmem:[%s6236_s3 + $0x90] sm:$0xff] }
0x10dd   :  { %v2836_v38 = vpop.xlane.xlu2 %2835 }
0x10de   :  { %v2840_v9 = vsub.f32 %v2829_v26, %v2836_v38  ;;  %v2151_v38 = vadd.f32 %v2150_v37, %v2090_v53 }
0x10e0   :  { %v2842_v32 = vmul.f32 1.442695, %v2840_v9  ;;  %v2183_v9 = vpack.c.bf16 %v2151_v38, %v2151_v38 }
0x10e2   :  { %4438 = vpow2.f32 %v2842_v32  ;;  %v2091_v32 = vld [vmem:[%s6236_s3 + $0x98] sm:$0xff] }
0x10e5   :  { %v2839_v49 = vpop.xlane.xlu0 %2838  ;;  %v2226_v22 = vpop.permute.xlu2 %2225 }
0x10e6   :  { %v2841_v45 = vsub.f32 %v2831_v51, %v2839_v49  ;;  %v2348_v26 = vadd.f32 %v5446_v12, %v2226_v22  ;;  %v2859_v12 = vunpack.c.l.b16 %v2183_v9  ;;  %v2084_v22 = vld [vmem:[%s6236_s3 + $0x60] sm:$0xff] }
0x10e8   :  { %v4439_v41 = vpop.eup %4438  ;;  %v2844_v2 = vmul.f32 1.442695, %v2841_v45  ;;  %v2404_v51 = vpack.c.bf16 %v2348_v26, %v2348_v26 }
0x10e9   :  { %v2846_v33 = vsel %vm537_vm1, %v4439_v41, 0.0 }
0x10ea   :  { %4440 = vpow2.f32 %v2844_v2  ;;  %2847 = vadd.xlane.f32.xlu0 %v2846_v33  ;;  %v2886_v62 = vunpack.c.l.b16 %v2404_v51 }
0x10f0   :  { %v4441_v59 = vpop.eup %4440 }
0x10f1   :  { %v2849_v46 = vsel %vm537_vm1, %v4441_v59, 0.0 }
0x10f2   :  { %2850 = vadd.xlane.f32.xlu2 %v2849_v46 }
0x10f8   :  { %v2231_v13 = vpop.permute.xlu0 %2230 }
0x10f9   :  { %v2350_v20 = vadd.f32 %v5453_v42, %v2231_v13  ;;  %v2152_v42 = vpop.f32.mrf.mxu3 }
0x10fa   :  { %v2153_v49 = vadd.f32 %v2152_v42, %v2091_v32 }
0x10fb   :  { %v2405_v5 = vpack.c.bf16 %v2350_v20, %v2350_v20  ;;  %v2085_v20 = vld [vmem:[%s6236_s3 + $0x68] sm:$0xff] }
0x10fc   :  { %v2184_v45 = vpack.c.bf16 %v2153_v49, %v2153_v49 }
0x10fd   :  { %v2887_v61 = vunpack.c.l.b16 %v2405_v5  ;;  %v2266_v5 = vpop.permute.xlu1 %2265 }
0x10fe   :  { %2270 = vperm.xlu0 %4228, %v2200_v7   ;;  %v2860_v2 = vunpack.c.l.b16 %v2184_v45 }
0x10ff   :  { %v2888_v1 = vpack.c.b16 %v2887_v61, %v2886_v62  ;;  %v2136_v61 = vadd.f32 %v5545_v24, %v2084_v22  ;;  %v2138_v62 = vadd.f32 %v5547_v52, %v2085_v20 }
0x1100   :  { %v2861_v33 = vpack.c.b16 %v2860_v2, %v2859_v12 }
0x1101   :  { %v2177_v9 = vpack.c.bf16 %v2136_v61, %v2136_v61  ;;  %v2178_v32 = vpack.c.bf16 %v2138_v62, %v2138_v62 }
0x1102   :  { %v2866_v46 = vsel %vm537_vm1, %v2861_v33, 0 }
0x1103   :  { %2875 = vmatpush.bf16.xpose.msrb.mxu1 %v2866_v46  ;;  %v3207_v2 = vunpack.c.l.b16 %v2177_v9  ;;  %v3208_v33 = vunpack.c.l.b16 %v2178_v32 }
0x1105   :  { %v3209_v52 = vpack.c.b16 %v3208_v33, %v3207_v2  ;;  %v2207_v2 = vld [vmem:[%s6237_s4 + $0x90] sm:$0xff] }
0x111b   :  { %2890 = vxpose.xlu2.c.b16.start.end [1/1] (short) (narrow) %v2888_v1, 64  ;;  %v2368_v1 = vadd.f32 %v5557_v34, %v2266_v5 }
0x111d   :  { %v2412_v49 = vpack.c.bf16 %v2368_v1, %v2368_v1 }
0x111f   :  { %v2908_v46 = vunpack.c.l.b16 %v2412_v49 }
0x115d   :  { %v2848_v7 = vpop.xlane.xlu0 %2847 }
0x115e   :  { %4442 = vrcp.f32 %v2848_v7 }
0x1164   :  { %v4443_v26 = vpop.eup %4442 }
0x1165   :  { %v2851_v13 = vpop.xlane.xlu2 %2850  ;;  %v2854_v37 = vmul.f32 %v4443_v26, %v4439_v41 }
0x1166   :  { %4444 = vrcp.f32 %v2851_v13  ;;  %v2087_v13 = vld [vmem:[%s6236_s3 + $0x78] sm:$0xff] }
0x1167   :  { %v2143_v5 = vadd.f32 %v5553_v58, %v2087_v13  ;;  %v2203_v13 = vld [vmem:[%s6237_s4 + $0x70] sm:$0xff] }
0x1169   :  { %v2180_v61 = vpack.c.bf16 %v2143_v5, %v2143_v5 }
0x116c   :  { %v4445_v51 = vpop.eup %4444 }
0x116d   :  { %v2855_v53 = vmul.f32 %v4445_v51, %v4441_v59 }
0x116f   :  { %v2856_v38 = vpack.c.bf16 %v2855_v53, %v2854_v37  ;;  %v3602_v37 = vunpack.c.l.b16 %v2180_v61  ;;  %v2077_v61 = vld [vmem:[%s6236_s3 + $0x28] sm:$0xff] }
0x1170   :  { %v2271_v42 = vpop.permute.xlu0 %2270 }
0x1171   :  { %v2370_v12 = vadd.f32 %v5568_v11, %v2271_v42  ;;  %4164 = vmatmul.msk.bf16.vlgmr.msrb.gmra.mxu1 %vm537_vm1, %v2856_v38  ;;  %v2086_v11 = vld [vmem:[%s6236_s3 + $0x70] sm:$0xff] }
0x1172   :  { %v2141_v26 = vadd.f32 %v5549_v19, %v2086_v11 }
0x1173   :  { %v2413_v45 = vpack.c.bf16 %v2370_v12, %v2370_v12 }
0x1174   :  { %v2179_v51 = vpack.c.bf16 %v2141_v26, %v2141_v26 }
0x1175   :  { %v2909_v24 = vunpack.c.l.b16 %v2413_v45 }
0x1176   :  { %v3601_v1 = vunpack.c.l.b16 %v2179_v51  ;;  %v2076_v51 = vld [vmem:[%s6236_s3 + $0x20] sm:$0xff] }
0x1177   :  { %v2910_v7 = vpack.c.b16 %v2909_v24, %v2908_v46  ;;  %v2194_v46 = vld [vmem:[%s6237_s4 + $0x28] sm:$0xff] }
0x1178   :  { %v3603_v32 = vpack.c.b16 %v3602_v37, %v3601_v1  ;;  %v2118_v1 = vadd.f32 %v5449_v3, %v2077_v61 }
0x1179   :  { %2931 = vmatpush.bf16.msra.mxu1 %v2910_v7 }
0x117d   :  { %3221 = vmatpush.bf16.msrb.mxu1 %v3209_v52  ;;  %v2201_v52 = vld [vmem:[%s6237_s4 + $0x60] sm:$0xff] }
0x11bc   :  { %v2898_v34 = vpop.trf.xlu2 }
0x11bd   :  { %4165 = vmatmul.msk.bf16.vlgmr.msra.gmra.mxu1 %vm537_vm1, %v2898_v34 }
0x11cc   :  { %v2899_v41 = vpop.trf.xlu2 }
0x11cd   :  { %4166 = vmatmul.msk.bf16.gmra.mxu1 %vm537_vm1, %v2899_v41  ;;  %v2202_v41 = vld [vmem:[%s6237_s4 + $0x68] sm:$0xff] }
0x11dc   :  { %v2900_v59 = vpop.trf.xlu2 }
0x11dd   :  { %4167 = vmatmul.msk.bf16.gmra.mxu1 %vm537_vm1, %v2900_v59 }
0x11ec   :  { %v2901_v22 = vpop.trf.xlu2 }
0x11ed   :  { %4168 = vmatmul.msk.bf16.gmra.mxu1 %vm537_vm1, %v2901_v22 }
0x11ee   :  { %v2877_v20 = vpop.f32.mrf.mxu1 }
0x11ef   :  { %v2882_v53 = vmul.f32 0.25, %v2877_v20  ;;  %v2204_v20 = vld [vmem:[%s6237_s4 + $0x78] sm:$0xff] }
0x11f6   :  { %v2879_v62 = vpop.f32.mrf.mxu1 }
0x11f7   :  { %v2883_v38 = vmul.f32 0.25, %v2879_v62  ;;  %v2116_v62 = vadd.f32 %v5444_v27, %v2076_v51 }
0x11f9   :  { %v3098_v9 = vpack.c.bf16 %v2883_v38, %v2882_v53  ;;  %v2169_v37 = vpack.c.bf16 %v2116_v62, %v2116_v62  ;;  %v2170_v53 = vpack.c.bf16 %v2118_v1, %v2118_v1  ;;  %v2208_v38 = vld [vmem:[%s6237_s4 + $0x98] sm:$0xff] }
0x11fb   :  { %v3112_v42 = vsel %vm537_vm1, %v3098_v9, 0  ;;  %v3185_v9 = vunpack.c.l.b16 %v2169_v37 }
0x11fc   :  { %3121 = vmatpush.bf16.xpose.msrb.mxu0 %v3112_v42 }
0x1204   :  { %3615 = vmatpush.bf16.msra.mxu0 %v3603_v32  ;;  %v3186_v32 = vunpack.c.l.b16 %v2170_v53 }
0x1206   :  { %v3187_v42 = vpack.c.b16 %v3186_v32, %v3185_v9 }
0x123a   :  { %v2933_v49 = vpop.f32.mrf.mxu1 }
0x123b   :  { %v2953_v12 = vsel %vm674_vm2, %v2933_v49, -inf }
0x123c   :  { %2954 = vmax.xlane.f32.xlu0 %v2953_v12 }
0x1242   :  { %v2935_v19 = vpop.f32.mrf.mxu1 }
0x1243   :  { %v2956_v58 = vsel %vm674_vm2, %v2935_v19, -inf }
0x1244   :  { %2957 = vmax.xlane.f32.xlu2 %v2956_v58 }
0x124a   :  { %v5739_v45 = vpop.f32.mrf.mxu1 }
0x124b   :  { %v2959_v22 = vsel %vm674_vm2, %v5739_v45, -inf }
0x1250   :  { %2305 = vperm.xlu0 %4228, %v2207_v2  }
0x1252   :  { %v5744_v33 = vpop.f32.mrf.mxu1 }
0x1253   :  { %v2962_v26 = vsel %vm674_vm2, %v5744_v33, -inf }
0x125a   :  { %v5749_v24 = vpop.f32.mrf.mxu1 }
0x125b   :  { %v2965_v7 = vsel %vm674_vm2, %v5749_v24, -inf }
0x125c   :  { %2240 = vperm.xlu2 %4227, %v2194_v46   ;;  %2966 = vmax.xlane.f32.xlu1 %v2965_v7 }
0x1262   :  { %v5756_v34 = vpop.f32.mrf.mxu1 }
0x1263   :  { %v2968_v5 = vsel %vm674_vm2, %v5756_v34, -inf }
0x1264   :  { %2275 = vperm.xlu2 %4227, %v2201_v52  }
0x126a   :  { %v5761_v59 = vpop.f32.mrf.mxu1 }
0x126b   :  { %v2971_v11 = vsel %vm674_vm2, %v5761_v59, -inf }
0x126c   :  { %2280 = vperm.xlu2 %4227, %v2202_v41   ;;  %2972 = vmax.xlane.f32.xlu1 %v2971_v11 }
0x1274   :  { %2285 = vperm.xlu2 %4227, %v2203_v13  }
0x127a   :  { %2960 = vmax.xlane.f32.xlu0 %v2959_v22 }
0x127c   :  { %2290 = vperm.xlu2 %4227, %v2204_v20  }
0x1282   :  { %2963 = vmax.xlane.f32.xlu0 %v2962_v26 }
0x128a   :  { %2969 = vmax.xlane.f32.xlu0 %v2968_v5 }
0x129e   :  { %2310 = vperm.xlu0 %4228, %v2208_v38  }
0x12a2   :  { %3189 = vxpose.xlu2.c.b16.start.end [1/1] (short) (narrow) %v3187_v42, 16 }
0x12af   :  { %v2955_v12 = vpop.xlane.xlu0 %2954 }
0x12b0   :  { %v2977_v58 = vsub.f32 %v2933_v49, %v2955_v12  ;;  %v5798_v49 = vpop.f32.mrf.mxu1 }
0x12b2   :  { %v2985_v2 = vmul.f32 1.442695, %v2977_v58 }
0x12b4   :  { %4446 = vpow2.f32 %v2985_v2 }
0x12b7   :  { %v2958_v46 = vpop.xlane.xlu2 %2957 }
0x12b8   :  { %v2978_v7 = vsub.f32 %v2935_v19, %v2958_v46  ;;  %v2974_v19 = vsel %vm674_vm2, %v5798_v49, -inf }
0x12ba   :  { %v5788_v27 = vpop.eup %4446  ;;  %v2987_v3 = vmul.f32 1.442695, %v2978_v7 }
0x12bb   :  { %v3001_v52 = vsel %vm674_vm2, %v5788_v27, 0.0 }
0x12bc   :  { %4448 = vpow2.f32 %v2987_v3  ;;  %3002 = vadd.xlane.f32.xlu1 %v3001_v52 }
0x12bf   :  { %v5792_v41 = vpop.permute.xlu2 %2240 }
0x12c2   :  { %v5794_v11 = vpop.eup %4448  ;;  %v2306_v53 = vpop.permute.xlu0 %2305 }
0x12c3   :  { %v3004_v13 = vsel %vm674_vm2, %v5794_v11, 0.0 }
0x12c4   :  { %3005 = vadd.xlane.f32.xlu1 %v3004_v13 }
0x12c7   :  { %v2276_v22 = vpop.permute.xlu2 %2275 }
0x12c8   :  { %2975 = vmax.xlane.f32.xlu0 %v2974_v19  ;;  %v2373_v20 = vadd.f32 %v5581_v40, %v2276_v22 }
0x12ca   :  { %v2414_v5 = vpack.c.bf16 %v2373_v20, %v2373_v20 }
0x12cc   :  { %v3302_v62 = vunpack.c.l.b16 %v2414_v5 }
0x12cf   :  { %v2281_v26 = vpop.permute.xlu2 %2280  ;;  %v2967_v42 = vpop.xlane.xlu1 %2966 }
0x12d0   :  { %v2375_v51 = vadd.f32 %v5590_v21, %v2281_v26  ;;  %v2981_v2 = vsub.f32 %v5749_v24, %v2967_v42  ;;  %v2387_v26 = vpop.f32.mrf.mxu2 }
0x12d2   :  { %v2415_v61 = vpack.c.bf16 %v2375_v51, %v2375_v51  ;;  %v2993_v7 = vmul.f32 1.442695, %v2981_v2 }
0x12d4   :  { %v3303_v1 = vunpack.c.l.b16 %v2415_v61 }
0x12d6   :  { %v3304_v37 = vpack.c.b16 %v3303_v1, %v3302_v62 }
0x12d8   :  { %3325 = vmatpush.bf16.msra.mxu1 %v3304_v37  ;;  %v2389_v62 = vpop.f32.mrf.mxu2 }
0x12df   :  { %v2973_v52 = vpop.xlane.xlu1 %2972 }
0x12ed   :  { %v2961_v38 = vpop.xlane.xlu0 %2960 }
0x12ee   :  { %v2979_v9 = vsub.f32 %v5739_v45, %v2961_v38 }
0x12f0   :  { %v2989_v32 = vmul.f32 1.442695, %v2979_v9 }
0x12f2   :  { %4450 = vpow2.f32 %v2989_v32 }
0x12f5   :  { %v2964_v12 = vpop.xlane.xlu0 %2963 }
0x12f6   :  { %v2980_v58 = vsub.f32 %v5744_v33, %v2964_v12  ;;  %v2983_v33 = vsub.f32 %v5761_v59, %v2973_v52  ;;  %v2388_v59 = vadd.f32 %v2387_v26, %v2306_v53 }
0x12f8   :  { %v5806_v40 = vpop.eup %4450  ;;  %v2991_v21 = vmul.f32 1.442695, %v2980_v58  ;;  %v2997_v19 = vmul.f32 1.442695, %v2983_v33  ;;  %v2420_v37 = vpack.c.bf16 %v2388_v59, %v2388_v59 }
0x12f9   :  { %v3007_v46 = vsel %vm674_vm2, %v5806_v40, 0.0 }
0x12fa   :  { %4452 = vpow2.f32 %v2991_v21  ;;  %3008 = vadd.xlane.f32.xlu1 %v3007_v46  ;;  %v3047_v42 = vunpack.c.l.b16 %v2420_v37  ;;  %v2078_v46 = vld [vmem:[%s6236_s3 + $0x30] sm:$0xff] }
0x12fb   :  { %4454 = vpow2.f32 %v2993_v7  ;;  %v2079_v7 = vld [vmem:[%s6236_s3 + $0x38] sm:$0xff]  ;;  %v2121_v33 = vadd.f32 %v5457_v31, %v2078_v46 }
0x12fd   :  { %v2970_v3 = vpop.xlane.xlu0 %2969  ;;  %v2171_v59 = vpack.c.bf16 %v2121_v33, %v2121_v33  ;;  %v2155_v33 = vpop.f32.mrf.mxu3 }
0x12fe   :  { %v2982_v45 = vsub.f32 %v5756_v34, %v2970_v3 }
0x12ff   :  { %v3579_v37 = vunpack.c.l.b16 %v2171_v59 }
0x1300   :  { %v5812_v13 = vpop.eup %4452  ;;  %v2995_v22 = vmul.f32 1.442695, %v2982_v45 }
0x1301   :  { %v3010_v24 = vsel %vm674_vm2, %v5812_v13, 0.0  ;;  %v5817_v20 = vpop.eup %4454 }
0x1302   :  { %4456 = vpow2.f32 %v2995_v22  ;;  %3011 = vadd.xlane.f32.xlu1 %v3010_v24  ;;  %v3013_v34 = vsel %vm674_vm2, %v5817_v20, 0.0  ;;  %v2123_v24 = vadd.f32 %v5462_v44, %v2079_v7  ;;  %v2193_v44 = vld [vmem:[%s6237_s4 + $0x20] sm:$0xff] }
0x1303   :  { %4458 = vpow2.f32 %v2997_v19 }
0x1308   :  { %v5819_v5 = vpop.eup %4456 }
0x1309   :  { %v3016_v51 = vsel %vm674_vm2, %v5819_v5, 0.0  ;;  %v5825_v61 = vpop.eup %4458 }
0x130a   :  { %3014 = vadd.xlane.f32.xlu1 %v3013_v34  ;;  %3017 = vadd.xlane.f32.xlu0 %v3016_v51  ;;  %v3019_v9 = vsel %vm674_vm2, %v5825_v61, 0.0 }
0x1310   :  { %v2311_v1 = vpop.permute.xlu0 %2310 }
0x1311   :  { %v2390_v38 = vadd.f32 %v2389_v62, %v2311_v1  ;;  %v2172_v62 = vpack.c.bf16 %v2123_v24, %v2123_v24 }
0x1312   :  { %3020 = vadd.xlane.f32.xlu1 %v3019_v9 }
0x1313   :  { %v2421_v32 = vpack.c.bf16 %v2390_v38, %v2390_v38  ;;  %v3580_v38 = vunpack.c.l.b16 %v2172_v62 }
0x1315   :  { %v3048_v12 = vunpack.c.l.b16 %v2421_v32  ;;  %v3581_v31 = vpack.c.b16 %v3580_v38, %v3579_v37 }
0x1317   :  { %v3049_v58 = vpack.c.b16 %v3048_v12, %v3047_v42 }
0x1319   :  { %v3063_v2 = vsel %vm674_vm2, %v3049_v58, 0 }
0x131a   :  { %3072 = vmatpush.bf16.xpose.msra.mxu3 %v3063_v2 }
0x132f   :  { %v3003_v21 = vpop.xlane.xlu1 %3002 }
0x1330   :  { %4460 = vrcp.f32 %v3003_v21 }
0x1336   :  { %v4461_v52 = vpop.eup %4460 }
0x1337   :  { %v3006_v53 = vpop.xlane.xlu1 %3005  ;;  %v3033_v26 = vmul.f32 %v4461_v52, %v5788_v27  ;;  %v2195_v27 = vld [vmem:[%s6237_s4 + $0x30] sm:$0xff] }
0x1338   :  { %4462 = vrcp.f32 %v3006_v53 }
0x133b   :  { %v2976_v3 = vpop.xlane.xlu0 %2975 }
0x133c   :  { %v2984_v45 = vsub.f32 %v5798_v49, %v2976_v3 }
0x133e   :  { %v4463_v22 = vpop.eup %4462  ;;  %v2999_v19 = vmul.f32 1.442695, %v2984_v45 }
0x133f   :  { %v3034_v34 = vmul.f32 %v4463_v22, %v5794_v11  ;;  %v2196_v11 = vld [vmem:[%s6237_s4 + $0x38] sm:$0xff] }
0x1340   :  { %4464 = vpow2.f32 %v2999_v19 }
0x1341   :  { %v3041_v51 = vpack.c.bf16 %v3034_v34, %v3033_v26 }
0x1343   :  { %4169 = vmatmul.msk.bf16.vlgmr.msra.gmra.mxu3 %vm674_vm2, %v3041_v51 }
0x1346   :  { %v4465_v1 = vpop.eup %4464 }
0x1347   :  { %v3022_v49 = vsel %vm674_vm2, %v4465_v1, 0.0 }
0x1348   :  { %3023 = vadd.xlane.f32.xlu0 %v3022_v49 }
0x134c   :  { %3583 = vxpose.xlu1.c.b16.start.end [1/1] (short) (narrow) %v3581_v31, 16 }
0x135c   :  { %2235 = vperm.xlu0 %4228, %v2193_v44  }
0x1364   :  { %2245 = vperm.xlu0 %4228, %v2195_v27  }
0x136c   :  { %2250 = vperm.xlu0 %4228, %v2196_v11   ;;  %v2092_v11 = vld [vmem:[%s6236_s3 + $0xa0] sm:$0xff] }
0x136d   :  { %v3009_v9 = vpop.xlane.xlu1 %3008 }
0x136e   :  { %4466 = vrcp.f32 %v3009_v9 }
0x1374   :  { %v4467_v42 = vpop.eup %4466 }
0x1375   :  { %v3012_v32 = vpop.xlane.xlu1 %3011  ;;  %v3035_v58 = vmul.f32 %v4467_v42, %v5806_v40  ;;  %v2157_v40 = vpop.f32.mrf.mxu3 }
0x1376   :  { %4468 = vrcp.f32 %v3012_v32 }
0x137c   :  { %v4469_v12 = vpop.eup %4468 }
0x137d   :  { %v3036_v2 = vmul.f32 %v4469_v12, %v5812_v13  ;;  %v3015_v21 = vpop.xlane.xlu1 %3014  ;;  %v3018_v53 = vpop.xlane.xlu0 %3017 }
0x137e   :  { %4470 = vrcp.f32 %v3015_v21  ;;  %v2160_v24 = vpop.f32.mrf.mxu3 }
0x137f   :  { %v3042_v46 = vpack.c.bf16 %v3036_v2, %v3035_v58  ;;  %4472 = vrcp.f32 %v3018_v53  ;;  %v2094_v53 = vld [vmem:[%s6236_s3 + $0xb0] sm:$0xff] }
0x1381   :  { %4170 = vmatmul.msk.bf16.gmra.mxu3 %vm674_vm2, %v3042_v46  ;;  %v2095_v46 = vld [vmem:[%s6236_s3 + $0xb8] sm:$0xff] }
0x1384   :  { %v4471_v7 = vpop.eup %4470 }
0x1385   :  { %v4473_v3 = vpop.eup %4472  ;;  %v3037_v52 = vmul.f32 %v4471_v7, %v5817_v20  ;;  %v3021_v13 = vpop.xlane.xlu1 %3020  ;;  %v2161_v7 = vadd.f32 %v2160_v24, %v2094_v53 }
0x1386   :  { %v3038_v45 = vmul.f32 %v4473_v3, %v5819_v5  ;;  %4474 = vrcp.f32 %v3021_v13  ;;  %v2162_v26 = vpop.f32.mrf.mxu3  ;;  %v2355_v5 = vadd.f32 %v5466_v28, %v5792_v41  ;;  %v2156_v41 = vadd.f32 %v2155_v33, %v2092_v11 }
0x1387   :  { %v2163_v3 = vadd.f32 %v2162_v26, %v2095_v46 }
0x1388   :  { %v3043_v22 = vpack.c.bf16 %v3038_v45, %v3037_v52  ;;  %v2407_v31 = vpack.c.bf16 %v2355_v5, %v2355_v5  ;;  %v2185_v42 = vpack.c.bf16 %v2156_v41, %v2156_v41  ;;  %v2187_v45 = vpack.c.bf16 %v2161_v7, %v2161_v7 }
0x138a   :  { %v5870_v9 = vunpack.c.l.b16 %v2407_v31  ;;  %v3253_v58 = vunpack.c.l.b16 %v2185_v42  ;;  %v3647_v33 = vunpack.c.l.b16 %v2187_v45 }
0x138c   :  { %v4475_v34 = vpop.eup %4474 }
0x138d   :  { %v3039_v59 = vmul.f32 %v4475_v34, %v5825_v61  ;;  %v2093_v61 = vld [vmem:[%s6236_s3 + $0xa8] sm:$0xff] }
0x138e   :  { %v2158_v32 = vadd.f32 %v2157_v40, %v2093_v61 }
0x1390   :  { %v2186_v12 = vpack.c.bf16 %v2158_v32, %v2158_v32 }
0x1391   :  { %4171 = vmatmul.msk.bf16.gmra.mxu3 %vm674_vm2, %v3043_v22  ;;  %v2188_v22 = vpack.c.bf16 %v2163_v3, %v2163_v3 }
0x1392   :  { %v3254_v2 = vunpack.c.l.b16 %v2186_v12 }
0x1393   :  { %v3648_v40 = vunpack.c.l.b16 %v2188_v22 }
0x1394   :  { %v3255_v21 = vpack.c.b16 %v3254_v2, %v3253_v58 }
0x1395   :  { %v3649_v13 = vpack.c.b16 %v3648_v40, %v3647_v33 }
0x1396   :  { %v3260_v52 = vsel %vm537_vm1, %v3255_v21, 0 }
0x1397   :  { %3269 = vmatpush.bf16.xpose.msrb.mxu2 %v3260_v52 }
0x13bb   :  { %v3024_v19 = vpop.xlane.xlu0 %3023 }
0x13bc   :  { %4476 = vrcp.f32 %v3024_v19  ;;  %v3654_v19 = vsel %vm537_vm1, %v3649_v13, 0 }
0x13c2   :  { %v4477_v51 = vpop.eup %4476 }
0x13c3   :  { %v3040_v62 = vmul.f32 %v4477_v51, %v4465_v1 }
0x13c5   :  { %v3044_v37 = vpack.c.bf16 %v3040_v62, %v3039_v59 }
0x13c6   :  { %v3074_v20 = vpop.f32.mrf.mxu3 }
0x13c7   :  { %4172 = vmatmul.msk.bf16.gmra.mxu3 %vm674_vm2, %v3044_v37 }
0x13ce   :  { %v3076_v38 = vpop.f32.mrf.mxu3  ;;  %v2236_v49 = vpop.permute.xlu0 %2235 }
0x13cf   :  { %v3094_v44 = vpack.c.bf16 %v3076_v38, %v3074_v20  ;;  %v2353_v27 = vadd.f32 %v5460_v35, %v2236_v49  ;;  %v2286_v20 = vpop.permute.xlu2 %2285 }
0x13d1   :  { %v2406_v1 = vpack.c.bf16 %v2353_v27, %v2353_v27  ;;  %4173 = vmatmul.msk.bf16.vlgmr.msrb.gmra.mxu0 %vm537_vm1, %v3094_v44  ;;  %v2378_v44 = vadd.f32 %v5599_v47, %v2286_v20 }
0x13d2   :  { %3663 = vmatpush.bf16.xpose.msrb.mxu0 %v3654_v19 }
0x13d3   :  { %v5872_v28 = vunpack.c.l.b16 %v2406_v1  ;;  %v2416_v11 = vpack.c.bf16 %v2378_v44, %v2378_v44 }
0x13d5   :  { %v3282_v35 = vpack.c.b16 %v5870_v9, %v5872_v28  ;;  %v3696_v1 = vunpack.c.l.b16 %v2416_v11 }
0x13d6   :  { %v2246_v22 = vpop.permute.xlu0 %2245 }
0x13d7   :  { %v2291_v49 = vpop.permute.xlu2 %2290 }
0x13d8   :  { %v2380_v31 = vadd.f32 %v5608_v6, %v2291_v49  ;;  %v2358_v49 = vadd.f32 %v5475_v63, %v2246_v22 }
0x13da   :  { %v2417_v27 = vpack.c.bf16 %v2380_v31, %v2380_v31  ;;  %v2408_v44 = vpack.c.bf16 %v2358_v49, %v2358_v49 }
0x13dc   :  { %v3697_v61 = vunpack.c.l.b16 %v2417_v27  ;;  %v3674_v11 = vunpack.c.l.b16 %v2408_v44 }
0x13de   :  { %v3698_v32 = vpack.c.b16 %v3697_v61, %v3696_v1  ;;  %v2251_v33 = vpop.permute.xlu0 %2250 }
0x13df   :  { %v3197_v21 = vpop.trf.xlu2 }
0x13e0   :  { %4177 = vmatmul.msk.bf16.vlgmr.msrb.gmra.mxu1 %vm537_vm1, %v3197_v21 }
0x13f8   :  { %v3591_v41 = vpop.trf.xlu1 }
0x1404   :  { %v3079_v34 = vpop.f32.mrf.mxu3 }
0x140c   :  { %v3081_v51 = vpop.f32.mrf.mxu3 }
0x140d   :  { %v3095_v59 = vpack.c.bf16 %v3081_v51, %v3079_v34 }
0x140f   :  { %4174 = vmatmul.msk.bf16.gmra.mxu0 %vm537_vm1, %v3095_v59 }
0x1414   :  { %v3084_v62 = vpop.f32.mrf.mxu3 }
0x141c   :  { %v3086_v37 = vpop.f32.mrf.mxu3 }
0x141d   :  { %v3096_v24 = vpack.c.bf16 %v3086_v37, %v3084_v62 }
0x141f   :  { %4175 = vmatmul.msk.bf16.gmra.mxu0 %vm537_vm1, %v3096_v24 }
0x144a   :  { %v3089_v26 = vpop.f32.mrf.mxu3 }
0x144e   :  { %v5890_v42 = vpop.f32.mrf.mxu0 }
0x1452   :  { %v3091_v5 = vpop.f32.mrf.mxu3 }
0x1453   :  { %v3097_v38 = vpack.c.bf16 %v3091_v5, %v3089_v26 }
0x1455   :  { %4176 = vmatmul.msk.bf16.gmra.mxu0 %vm537_vm1, %v3097_v38  ;;  %v2360_v38 = vadd.f32 %v5479_v48, %v2251_v33 }
0x1456   :  { %v5892_v12 = vpop.f32.mrf.mxu0 }
0x1457   :  { %v2409_v31 = vpack.c.bf16 %v2360_v38, %v2360_v38 }
0x1459   :  { %v3675_v27 = vunpack.c.l.b16 %v2409_v31 }
0x145b   :  { %v3676_v61 = vpack.c.b16 %v3675_v27, %v3674_v11 }
0x145d   :  { %v3223_v40 = vpop.f32.mrf.mxu1 }
0x145e   :  { %v3228_v13 = vsel %vm537_vm1, %v3223_v40, -inf }
0x145f   :  { %3229 = vmax.xlane.f32.xlu2 %v3228_v13 }
0x1465   :  { %4191 = vmatmul.msk.bf16.vlgmr.msra.gmra.mxu0 %vm537_vm1, %v3591_v41  ;;  %v3225_v28 = vpop.f32.mrf.mxu1 }
0x1466   :  { %3719 = vmatpush.bf16.msra.mxu0 %v3698_v32 }
0x148c   :  { %v5894_v58 = vpop.f32.mrf.mxu0 }
0x1494   :  { %v5896_v2 = vpop.f32.mrf.mxu0 }
0x149c   :  { %v5898_v6 = vpop.f32.mrf.mxu0 }
0x14a4   :  { %v5900_v47 = vpop.f32.mrf.mxu0 }
0x14d2   :  { %v5903_v53 = vpop.f32.mrf.mxu0  ;;  %v3230_v1 = vpop.xlane.xlu2 %3229 }
0x14d3   :  { %v3234_v41 = vsub.f32 %v3223_v40, %v3230_v1 }
0x14d5   :  { %v3236_v32 = vmul.f32 1.442695, %v3234_v41 }
0x14da   :  { %v5905_v46 = vpop.f32.mrf.mxu0 }
0x14e2   :  { %v3617_v7 = vpop.f32.mrf.mxu0 }
0x14e3   :  { %v3622_v3 = vsel %vm537_vm1, %v3617_v7, -inf }
0x14e4   :  { %3623 = vmax.xlane.f32.xlu0 %v3622_v3 }
0x14ea   :  { %v3619_v52 = vpop.f32.mrf.mxu0 }
0x14eb   :  { %v3625_v45 = vsel %vm537_vm1, %v3619_v52, -inf }
0x14ec   :  { %3626 = vmax.xlane.f32.xlu0 %v3625_v45 }
0x1557   :  { %v3624_v19 = vpop.xlane.xlu0 %3623 }
0x1558   :  { %v3628_v34 = vsub.f32 %v3617_v7, %v3624_v19 }
0x155a   :  { %v3630_v51 = vmul.f32 1.442695, %v3628_v34 }
0x155c   :  { %4478 = vpow2.f32 %v3630_v51 }
0x155f   :  { %v3627_v59 = vpop.xlane.xlu0 %3626 }
0x1560   :  { %v3629_v62 = vsub.f32 %v3619_v52, %v3627_v59 }
0x1562   :  { %v4479_v37 = vpop.eup %4478  ;;  %v3632_v24 = vmul.f32 1.442695, %v3629_v62 }
0x1563   :  { %v3634_v26 = vsel %vm537_vm1, %v4479_v37, 0.0 }
0x1564   :  { %4480 = vpow2.f32 %v3632_v24  ;;  %3635 = vadd.xlane.f32.xlu0 %v3634_v26 }
0x1565   :  { %4482 = vpow2.f32 %v3236_v32 }
0x156a   :  { %v4481_v20 = vpop.eup %4480 }
0x156b   :  { %v3637_v5 = vsel %vm537_vm1, %v4481_v20, 0.0  ;;  %v5917_v21 = vpop.eup %4482 }
0x156c   :  { %3638 = vadd.xlane.f32.xlu1 %v3637_v5  ;;  %v3240_v48 = vsel %vm537_vm1, %v5917_v21, 0.0 }
0x156d   :  { %3241 = vadd.xlane.f32.xlu2 %v3240_v48 }
0x158d   :  { %4229 = vxpose.binary.xlu0.c.b16.start.end [1/2] (short) (narrow) %v3676_v61, %v3282_v35, 64  ;;  %v3231_v35 = vsel %vm537_vm1, %v3225_v28, -inf }
0x15d7   :  { %v3636_v63 = vpop.xlane.xlu0 %3635 }
0x15d8   :  { %4484 = vrcp.f32 %v3636_v63 }
0x15de   :  { %v4485_v3 = vpop.eup %4484 }
0x15df   :  { %v3639_v7 = vpop.xlane.xlu1 %3638  ;;  %v3642_v45 = vmul.f32 %v4485_v3, %v4479_v37 }
0x15e0   :  { %4486 = vrcp.f32 %v3639_v7 }
0x15e6   :  { %v4487_v52 = vpop.eup %4486 }
0x15e7   :  { %v3643_v22 = vmul.f32 %v4487_v52, %v4481_v20  ;;  %v2209_v52 = vld [vmem:[%s6237_s4 + $0xa0] sm:$0xff] }
0x15e9   :  { %v3644_v9 = vpack.c.bf16 %v3643_v22, %v3642_v45  ;;  %v2210_v45 = vld [vmem:[%s6237_s4 + $0xa8] sm:$0xff]  ;;  %v2212_v22 = vld [vmem:[%s6237_s4 + $0xb8] sm:$0xff] }
0x15eb   :  { %4192 = vmatmul.msk.bf16.vlgmr.msrb.gmra.mxu0 %vm537_vm1, %v3644_v9 }
0x162e   :  { %3232 = vmax.xlane.f32.xlu0 %v3231_v35 }
0x1639   :  { %v4230_v33 = vpop.trf.xlu0 }
0x163a   :  { %4179 = vmatmul.msk.bf16.vlgmr.msra.gmra.mxu1 %vm537_vm1, %v4230_v33 }
0x1641   :  { %v4231_v40 = vpop.trf.xlu0 }
0x1642   :  { %4193 = vmatmul.msk.bf16.vlgmr.msra.gmra.mxu0 %vm537_vm1, %v4231_v40 }
0x1649   :  { %v4232_v13 = vpop.trf.xlu0 }
0x164a   :  { %4180 = vmatmul.msk.bf16.gmra.mxu1 %vm537_vm1, %v4232_v13 }
0x1651   :  { %v4233_v19 = vpop.trf.xlu0 }
0x1652   :  { %4194 = vmatmul.msk.bf16.gmra.mxu0 %vm537_vm1, %v4233_v19 }
0x1659   :  { %v4234_v34 = vpop.trf.xlu0 }
0x165a   :  { %4181 = vmatmul.msk.bf16.gmra.mxu1 %vm537_vm1, %v4234_v34 }
0x1661   :  { %v4235_v51 = vpop.trf.xlu0 }
0x1662   :  { %4195 = vmatmul.msk.bf16.gmra.mxu0 %vm537_vm1, %v4235_v51 }
0x1668   :  { %v5966_v9 = vpop.f32.mrf.mxu0 }
0x1669   :  { %v4236_v59 = vpop.trf.xlu0 }
0x166a   :  { %4182 = vmatmul.msk.bf16.gmra.mxu1 %vm537_vm1, %v4236_v59 }
0x1671   :  { %v4237_v62 = vpop.trf.xlu0 }
0x1672   :  { %4196 = vmatmul.msk.bf16.gmra.mxu0 %vm537_vm1, %v4237_v62 }
0x16a1   :  { %v3233_v44 = vpop.xlane.xlu0 %3232 }
0x16a2   :  { %v3235_v27 = vsub.f32 %v3225_v28, %v3233_v44  ;;  %v5968_v28 = vpop.f32.mrf.mxu0 }
0x16a4   :  { %v3238_v1 = vmul.f32 1.442695, %v3235_v27 }
0x16a6   :  { %4488 = vpow2.f32 %v3238_v1 }
0x16ac   :  { %v5949_v48 = vpop.eup %4488 }
0x16ad   :  { %v3243_v3 = vsel %vm537_vm1, %v5949_v48, 0.0 }
0x16b7   :  { %v3327_v37 = vpop.f32.mrf.mxu1 }
0x16b8   :  { %v3347_v24 = vsel %vm674_vm2, %v3327_v37, -inf }
0x16b9   :  { %3348 = vmax.xlane.f32.xlu1 %v3347_v24 }
0x16bf   :  { %v3329_v26 = vpop.f32.mrf.mxu1  ;;  %v5970_v35 = vpop.f32.mrf.mxu0 }
0x16c0   :  { %v3350_v20 = vsel %vm674_vm2, %v3329_v26, -inf  ;;  %v3741_v59 = vsel %vm674_vm2, %v5970_v35, -inf }
0x16c1   :  { %3351 = vmax.xlane.f32.xlu1 %v3350_v20 }
0x16c7   :  { %v5933_v5 = vpop.f32.mrf.mxu1  ;;  %v5976_v51 = vpop.f32.mrf.mxu0 }
0x16c8   :  { %v3353_v38 = vsel %vm674_vm2, %v5933_v5, -inf }
0x16c9   :  { %3354 = vmax.xlane.f32.xlu1 %v3353_v38 }
0x16cf   :  { %v5937_v49 = vpop.f32.mrf.mxu1  ;;  %v5984_v44 = vpop.f32.mrf.mxu0 }
0x16d0   :  { %v3356_v31 = vsel %vm674_vm2, %v5937_v49, -inf  ;;  %v3747_v1 = vsel %vm674_vm2, %v5984_v44, -inf }
0x16d1   :  { %3357 = vmax.xlane.f32.xlu1 %v3356_v31 }
0x16d7   :  { %v5941_v11 = vpop.f32.mrf.mxu1 }
0x16d8   :  { %v3359_v61 = vsel %vm674_vm2, %v5941_v11, -inf }
0x16d9   :  { %3360 = vmax.xlane.f32.xlu1 %v3359_v61 }
0x16df   :  { %v5945_v41 = vpop.f32.mrf.mxu1 }
0x16e0   :  { %v3362_v32 = vsel %vm674_vm2, %v5945_v41, -inf }
0x16e1   :  { %3363 = vmax.xlane.f32.xlu1 %v3362_v32  ;;  %v5994_v32 = vpop.f32.mrf.mxu0 }
0x16e7   :  { %v5951_v63 = vpop.f32.mrf.mxu1 }
0x16e8   :  { %v3365_v7 = vsel %vm674_vm2, %v5951_v63, -inf }
0x16e9   :  { %3366 = vmax.xlane.f32.xlu2 %v3365_v7  ;;  %3244 = vadd.xlane.f32.xlu1 %v3243_v3  ;;  %v3750_v3 = vsel %vm674_vm2, %v5994_v32, -inf }
0x16ef   :  { %v5972_v33 = vpop.f32.mrf.mxu1 }
0x16f0   :  { %v3368_v40 = vsel %vm674_vm2, %v5972_v33, -inf }
0x1701   :  { %2315 = vperm.xlu2 %4227, %v2209_v52  }
0x1702   :  { %2320 = vperm.xlu1 %4226, %v2210_v45   ;;  %v6000_v45 = vpop.f32.mrf.mxu0 }
0x1709   :  { %2330 = vperm.xlu2 %4227, %v2212_v22   ;;  %v2211_v22 = vld [vmem:[%s6237_s4 + $0xb0] sm:$0xff]  ;;  %s4596_s4 = smov 16  }
0x172c   :  { %v3349_v13 = vpop.xlane.xlu1 %3348  ;;  %3369 = vmax.xlane.f32.xlu1 %v3368_v40  ;;  %v3753_v40 = vsel %vm674_vm2, %v6000_v45, -inf }
0x172d   :  { %v3371_v19 = vsub.f32 %v3327_v37, %v3349_v13  ;;  %v3744_v37 = vsel %vm674_vm2, %v5976_v51, -inf }
0x172f   :  { %v3379_v34 = vmul.f32 1.442695, %v3371_v19  ;;  %v6007_v19 = vpop.f32.mrf.mxu0 }
0x1731   :  { %4490 = vpow2.f32 %v3379_v34  ;;  %v3242_v34 = vpop.xlane.xlu2 %3241 }
0x1734   :  { %v3352_v62 = vpop.xlane.xlu1 %3351  ;;  %3742 = vmax.xlane.f32.xlu1 %v3741_v59  ;;  %v3756_v59 = vsel %vm674_vm2, %v6007_v19, -inf }
0x1735   :  { %v3372_v24 = vsub.f32 %v3329_v26, %v3352_v62 }
0x1737   :  { %v5980_v20 = vpop.eup %4490  ;;  %v3381_v38 = vmul.f32 1.442695, %v3372_v24  ;;  %v6011_v24 = vpop.f32.mrf.mxu0 }
0x1738   :  { %v3395_v31 = vsel %vm674_vm2, %v5980_v20, 0.0 }
0x1739   :  { %4492 = vpow2.f32 %v3381_v38  ;;  %3396 = vadd.xlane.f32.xlu0 %v3395_v31 }
0x173a   :  { %4494 = vrcp.f32 %v3242_v34 }
0x173c   :  { %v3355_v27 = vpop.xlane.xlu1 %3354  ;;  %3745 = vmax.xlane.f32.xlu1 %v3744_v37 }
0x173d   :  { %v3373_v31 = vsub.f32 %v5933_v5, %v3355_v27  ;;  %v2392_v5 = vpop.f32.mrf.mxu2 }
0x173f   :  { %v5988_v61 = vpop.eup %4492 }
0x1740   :  { %v3398_v26 = vsel %vm674_vm2, %v5988_v61, 0.0  ;;  %v4495_v38 = vpop.eup %4494 }
0x1741   :  { %3399 = vadd.xlane.f32.xlu0 %v3398_v26  ;;  %v3759_v26 = vsel %vm674_vm2, %v6011_v24, -inf }
0x1744   :  { %v3358_v7 = vpop.xlane.xlu1 %3357  ;;  %3748 = vmax.xlane.f32.xlu1 %v3747_v1  ;;  %v3248_v1 = vmul.f32 %v4495_v38, %v5917_v21 }
0x174c   :  { %v5998_v52 = vpop.xlane.xlu1 %3360  ;;  %3751 = vmax.xlane.f32.xlu1 %v3750_v3 }
0x1754   :  { %v3364_v13 = vpop.xlane.xlu1 %3363  ;;  %3754 = vmax.xlane.f32.xlu1 %v3753_v40  ;;  %v3383_v40 = vmul.f32 1.442695, %v3373_v31 }
0x1755   :  { %2325 = vperm.xlu0 %4228, %v2211_v22  }
0x175c   :  { %3757 = vmax.xlane.f32.xlu1 %v3756_v59  ;;  %v3245_v62 = vpop.xlane.xlu1 %3244  ;;  %v3367_v3 = vpop.xlane.xlu2 %3366 }
0x175d   :  { %4496 = vrcp.f32 %v3245_v62  ;;  %v6019_v59 = vpop.f32.mrf.mxu0  ;;  %v3374_v62 = vsub.f32 %v5937_v49, %v3358_v7  ;;  %v3671_v49 = vmul.f32 0.25, %v5968_v28 }
0x175e   :  { %4498 = vpow2.f32 %v3383_v40  ;;  %v3762_v27 = vsel %vm674_vm2, %v6019_v59, -inf }
0x175f   :  { %v3385_v43 = vmul.f32 1.442695, %v3374_v62 }
0x1761   :  { %4500 = vpow2.f32 %v3385_v43 }
0x1763   :  { %v4497_v37 = vpop.eup %4496 }
0x1764   :  { %v3249_v22 = vmul.f32 %v4497_v37, %v5949_v48  ;;  %3760 = vmax.xlane.f32.xlu1 %v3759_v26  ;;  %v2316_v21 = vpop.permute.xlu2 %2315  ;;  %v6024_v38 = vpop.eup %4498 }
0x1765   :  { %v2393_v48 = vadd.f32 %v2392_v5, %v2316_v21  ;;  %v3401_v31 = vsel %vm674_vm2, %v6024_v38, 0.0  ;;  %v2394_v37 = vpop.f32.mrf.mxu2 }
0x1766   :  { %v3250_v34 = vpack.c.bf16 %v3249_v22, %v3248_v1 }
0x1767   :  { %v2422_v1 = vpack.c.bf16 %v2393_v48, %v2393_v48  ;;  %v6029_v40 = vpop.eup %4500 }
0x1768   :  { %4178 = vmatmul.msk.bf16.vlgmr.msrb.gmra.mxu2 %vm537_vm1, %v3250_v34  ;;  %v3670_v34 = vmul.f32 0.25, %v5966_v9  ;;  %v3404_v43 = vsel %vm674_vm2, %v6029_v40, 0.0  ;;  %v3376_v9 = vsub.f32 %v5945_v41, %v3364_v13 }
0x1769   :  { %v3441_v62 = vunpack.c.l.b16 %v2422_v1 }
0x176a   :  { %v3886_v30 = vpack.c.bf16 %v3671_v49, %v3670_v34 }
0x176c   :  { %3763 = vmax.xlane.f32.xlu1 %v3762_v27  ;;  %v3900_v48 = vsel %vm537_vm1, %v3886_v30, 0  ;;  %v3377_v30 = vsub.f32 %v5951_v63, %v3367_v3 }
0x176d   :  { %v2397_v13 = vpop.f32.mrf.mxu2 }
0x1774   :  { %3402 = vadd.xlane.f32.xlu1 %v3401_v31  ;;  %v2321_v26 = vpop.permute.xlu1 %2320 }
0x1775   :  { %v2395_v22 = vadd.f32 %v2394_v37, %v2321_v26 }
0x1777   :  { %v2423_v7 = vpack.c.bf16 %v2395_v22, %v2395_v22  ;;  %v3389_v22 = vmul.f32 1.442695, %v3376_v9 }
0x1779   :  { %v3442_v27 = vunpack.c.l.b16 %v2423_v7 }
0x177b   :  { %v3443_v5 = vpack.c.b16 %v3442_v27, %v3441_v62 }
0x177c   :  { %3405 = vadd.xlane.f32.xlu1 %v3404_v43 }
0x177d   :  { %v3457_v21 = vsel %vm674_vm2, %v3443_v5, 0 }
0x177e   :  { %3466 = vmatpush.bf16.xpose.msrb.mxu3 %v3457_v21 }
0x1786   :  { %3909 = vmatpush.bf16.xpose.msra.mxu3 %v3900_v48 }
0x179f   :  { %v6036_v28 = vpop.xlane.xlu1 %3369 }
0x17a7   :  { %v3743_v31 = vpop.xlane.xlu1 %3742 }
0x17a8   :  { %v3765_v37 = vsub.f32 %v5970_v35, %v3743_v31  ;;  %v3391_v35 = vmul.f32 1.442695, %v3377_v30  ;;  %v2331_v30 = vpop.permute.xlu2 %2330 }
0x17aa   :  { %v3773_v26 = vmul.f32 1.442695, %v3765_v37 }
0x17ac   :  { %4502 = vpow2.f32 %v3773_v26  ;;  %v3397_v1 = vpop.xlane.xlu0 %3396 }
0x17ad   :  { %4504 = vpow2.f32 %v3389_v22 }
0x17ae   :  { %4506 = vrcp.f32 %v3397_v1 }
0x17af   :  { %v3746_v49 = vpop.xlane.xlu1 %3745 }
0x17b0   :  { %v3766_v7 = vsub.f32 %v5976_v51, %v3746_v49 }
0x17b2   :  { %v6041_v34 = vpop.eup %4502  ;;  %v3775_v62 = vmul.f32 1.442695, %v3766_v7  ;;  %v2399_v7 = vpop.f32.mrf.mxu2 }
0x17b3   :  { %v3789_v27 = vsel %vm674_vm2, %v6041_v34, 0.0  ;;  %v6046_v43 = vpop.eup %4504 }
0x17b4   :  { %4508 = vpow2.f32 %v3775_v62  ;;  %3790 = vadd.xlane.f32.xlu0 %v3789_v27  ;;  %v3400_v41 = vpop.xlane.xlu0 %3399  ;;  %v4507_v21 = vpop.eup %4506  ;;  %v3410_v31 = vsel %vm674_vm2, %v6046_v43, 0.0 }
0x17b5   :  { %4510 = vrcp.f32 %v3400_v41  ;;  %v3427_v9 = vmul.f32 %v4507_v21, %v5980_v20  ;;  %v3375_v20 = vsub.f32 %v5941_v11, %v5998_v52  ;;  %v3378_v11 = vsub.f32 %v5972_v33, %v6036_v28 }
0x17b6   :  { %4512 = vpow2.f32 %v3391_v35  ;;  %v2400_v35 = vadd.f32 %v2399_v7, %v2331_v30 }
0x17b7   :  { %v3749_v5 = vpop.xlane.xlu1 %3748 }
0x17b8   :  { %v3767_v51 = vsub.f32 %v5984_v44, %v3749_v5  ;;  %v2425_v21 = vpack.c.bf16 %v2400_v35, %v2400_v35 }
0x17ba   :  { %v6049_v48 = vpop.eup %4508  ;;  %v3777_v63 = vmul.f32 1.442695, %v3767_v51 }
0x17bb   :  { %v4511_v3 = vpop.eup %4510  ;;  %v3792_v37 = vsel %vm674_vm2, %v6049_v48, 0.0 }
0x17bc   :  { %v3428_v26 = vmul.f32 %v4511_v3, %v5988_v61  ;;  %4514 = vpow2.f32 %v3777_v63  ;;  %3411 = vadd.xlane.f32.xlu0 %v3410_v31  ;;  %3793 = vadd.xlane.f32.xlu2 %v3792_v37  ;;  %v6057_v22 = vpop.eup %4512 }
0x17bd   :  { %v3413_v61 = vsel %vm674_vm2, %v6057_v22, 0.0 }
0x17be   :  { %v3435_v44 = vpack.c.bf16 %v3428_v26, %v3427_v9  ;;  %v3836_v26 = vunpack.c.l.b16 %v2425_v21 }
0x17bf   :  { %v3752_v1 = vpop.xlane.xlu1 %3751 }
0x17c0   :  { %v3768_v49 = vsub.f32 %v5994_v32, %v3752_v1  ;;  %4183 = vmatmul.msk.bf16.vlgmr.msrb.gmra.mxu3 %vm674_vm2, %v3435_v44  ;;  %v3387_v32 = vmul.f32 1.442695, %v3375_v20  ;;  %v3393_v1 = vmul.f32 1.442695, %v3378_v11 }
0x17c2   :  { %v6061_v62 = vpop.eup %4514  ;;  %v3779_v27 = vmul.f32 1.442695, %v3768_v49 }
0x17c3   :  { %v3795_v41 = vsel %vm674_vm2, %v6061_v62, 0.0 }
0x17c4   :  { %4516 = vpow2.f32 %v3779_v27  ;;  %3414 = vadd.xlane.f32.xlu0 %v3413_v61  ;;  %3796 = vadd.xlane.f32.xlu1 %v3795_v41 }
0x17c5   :  { %4518 = vpow2.f32 %v3387_v32 }
0x17c7   :  { %v3755_v5 = vpop.xlane.xlu1 %3754  ;;  %v2326_v51 = vpop.permute.xlu0 %2325 }
0x17c8   :  { %v3769_v63 = vsub.f32 %v6000_v45, %v3755_v5  ;;  %v2398_v3 = vadd.f32 %v2397_v13, %v2326_v51 }
0x17ca   :  { %v6070_v31 = vpop.eup %4516  ;;  %v3781_v52 = vmul.f32 1.442695, %v3769_v63  ;;  %v2424_v37 = vpack.c.bf16 %v2398_v3, %v2398_v3 }
0x17cb   :  { %v3798_v9 = vsel %vm674_vm2, %v6070_v31, 0.0  ;;  %v6076_v45 = vpop.eup %4518 }
0x17cc   :  { %4520 = vpow2.f32 %v3781_v52  ;;  %v3835_v44 = vunpack.c.l.b16 %v2424_v37  ;;  %3799 = vadd.xlane.f32.xlu1 %v3798_v9  ;;  %v3407_v20 = vsel %vm674_vm2, %v6076_v45, 0.0 }
0x17cd   :  { %4522 = vpow2.f32 %v3393_v1 }
0x17ce   :  { %v3837_v49 = vpack.c.b16 %v3836_v26, %v3835_v44 }
0x17cf   :  { %v3758_v7 = vpop.xlane.xlu1 %3757 }
0x17d0   :  { %v3770_v13 = vsub.f32 %v6007_v19, %v3758_v7  ;;  %v3851_v30 = vsel %vm674_vm2, %v3837_v49, 0 }
0x17d1   :  { %3860 = vmatpush.bf16.xpose.msrb.mxu1 %v3851_v30 }
0x17d2   :  { %v6080_v33 = vpop.eup %4520  ;;  %v3783_v28 = vmul.f32 1.442695, %v3770_v13 }
0x17d3   :  { %v3801_v27 = vsel %vm674_vm2, %v6080_v33, 0.0  ;;  %v6086_v41 = vpop.eup %4522 }
0x17d4   :  { %4524 = vpow2.f32 %v3783_v28  ;;  %3408 = vadd.xlane.f32.xlu1 %v3407_v20  ;;  %3802 = vadd.xlane.f32.xlu2 %v3801_v27  ;;  %v3416_v5 = vsel %vm674_vm2, %v6086_v41, 0.0 }
0x17d7   :  { %v3761_v61 = vpop.xlane.xlu1 %3760 }
0x17d8   :  { %v3771_v19 = vsub.f32 %v6011_v24, %v3761_v61 }
0x17da   :  { %v6089_v35 = vpop.eup %4524  ;;  %v3785_v32 = vmul.f32 1.442695, %v3771_v19 }
0x17db   :  { %v3804_v51 = vsel %vm674_vm2, %v6089_v35, 0.0 }
0x17dc   :  { %4526 = vpow2.f32 %v3785_v32  ;;  %3417 = vadd.xlane.f32.xlu2 %v3416_v5  ;;  %3805 = vadd.xlane.f32.xlu1 %v3804_v51 }
0x17df   :  { %v3764_v21 = vpop.xlane.xlu1 %3763 }
0x17e0   :  { %v3772_v63 = vsub.f32 %v6019_v59, %v3764_v21 }
0x17e2   :  { %v6096_v3 = vpop.eup %4526  ;;  %v3787_v11 = vmul.f32 1.442695, %v3772_v63 }
0x17e3   :  { %v3807_v24 = vsel %vm674_vm2, %v6096_v3, 0.0 }
0x17e4   :  { %4528 = vpow2.f32 %v3787_v11  ;;  %3808 = vadd.xlane.f32.xlu1 %v3807_v24 }
0x17e7   :  { %v3403_v52 = vpop.xlane.xlu1 %3402 }
0x17e8   :  { %4530 = vrcp.f32 %v3403_v52 }
0x17ea   :  { %v6100_v37 = vpop.eup %4528 }
0x17eb   :  { %v3271_v9 = vpop.f32.mrf.mxu2  ;;  %v3810_v26 = vsel %vm674_vm2, %v6100_v37, 0.0 }
0x17ec   :  { %3811 = vadd.xlane.f32.xlu0 %v3810_v26  ;;  %v3276_v49 = vmul.f32 0.25, %v3271_v9 }
0x17ee   :  { %v4531_v1 = vpop.eup %4530 }
0x17ef   :  { %v3406_v44 = vpop.xlane.xlu1 %3405  ;;  %v3429_v28 = vmul.f32 %v4531_v1, %v6024_v38 }
0x17f0   :  { %4532 = vrcp.f32 %v3406_v44 }
0x17f3   :  { %v3273_v59 = vpop.f32.mrf.mxu2 }
0x17f4   :  { %v3277_v7 = vmul.f32 0.25, %v3273_v59  ;;  %1235 = vrot.lane.b32.xlu2 %v5055_v36, %s4596_s4 }
0x17f6   :  { %v4533_v13 = vpop.eup %4532  ;;  %v3492_v30 = vpack.c.bf16 %v3277_v7, %v3276_v49 }
0x17f7   :  { %v3430_v20 = vmul.f32 %v4533_v13, %v6029_v40 }
0x17f8   :  { %v3506_v27 = vsel %vm537_vm1, %v3492_v30, 0 }
0x17f9   :  { %3515 = vmatpush.bf16.xpose.msra.mxu2 %v3506_v27  ;;  %v3436_v61 = vpack.c.bf16 %v3430_v20, %v3429_v28 }
0x17fb   :  { %4184 = vmatmul.msk.bf16.gmra.mxu3 %vm674_vm2, %v3436_v61 }
0x17fc   :  { %1241 = vrot.lane.b32.xlu2 %v5063_v60, %s4596_s4  ;;  %v6244_v60 = vld [vmem:[#allocation5_spill] sm:$0xff] }
0x17fd   :  { %1237 = vrot.lane.b32.xlu1 %v5057_v23, %s4596_s4  ;;  %v6243_v23 = vld [vmem:[#allocation6_spill] sm:$0xff] }
0x1800   :  { %1239 = vrot.lane.b32.xlu0 %v5060_v39, %s4596_s4 }
0x1804   :  { %1247 = vrot.lane.b32.xlu2 %v5073_v57, %s4596_s4 }
0x1805   :  { %1245 = vrot.lane.b32.xlu1 %v5067_v17, %s4596_s4 }
0x1808   :  { %1243 = vrot.lane.b32.xlu0 %v5065_v14, %s4596_s4 }
0x180c   :  { %1632 = vrot.lane.b32.xlu2 %v5597_v29, %s4597_s24 }
0x180d   :  { %1630 = vrot.lane.b32.xlu1 %v5586_v56, %s4597_s24 }
0x1810   :  { %1249 = vrot.lane.b32.xlu0 %v5088_v54, %s4596_s4 }
0x1814   :  { %3153 = vrot.lane.b32.xlu2 %v5892_v12, %s4596_s4 }
0x1815   :  { %3151 = vrot.lane.b32.xlu1 %v5890_v42, %s4596_s4 }
0x1818   :  { %1634 = vrot.lane.b32.xlu0 %v5605_v0, %s4597_s24 }
0x181c   :  { %3159 = vrot.lane.b32.xlu2 %v5898_v6, %s4596_s4 }
0x181d   :  { %3157 = vrot.lane.b32.xlu1 %v5896_v2, %s4596_s4 }
0x1820   :  { %3155 = vrot.lane.b32.xlu0 %v5894_v58, %s4596_s4 }
0x1824   :  { %3165 = vrot.lane.b32.xlu2 %v5905_v46, %s4596_s4 }
0x1825   :  { %3163 = vrot.lane.b32.xlu1 %v5903_v53, %s4596_s4 }
0x1827   :  { %v3791_v36 = vpop.xlane.xlu0 %3790 }
0x1828   :  { %3161 = vrot.lane.b32.xlu0 %v5900_v47, %s4596_s4  ;;  %4534 = vrcp.f32 %v3791_v36 }
0x182c   :  { %1640 = vrot.lane.b32.xlu2 %v5630_v25, %s4597_s24 }
0x182d   :  { %1638 = vrot.lane.b32.xlu1 %v6243_v23, %s4597_s24 }
0x182e   :  { %v4535_v14 = vpop.eup %4534 }
0x182f   :  { %v3794_v39 = vpop.xlane.xlu2 %3793  ;;  %v3821_v57 = vmul.f32 %v4535_v14, %v6041_v34  ;;  %v3412_v12 = vpop.xlane.xlu0 %3411 }
0x1830   :  { %4536 = vrcp.f32 %v3794_v39  ;;  %1636 = vrot.lane.b32.xlu0 %v6244_v60, %s4597_s24 }
0x1835   :  { %1644 = vrot.lane.b32.xlu1 %v5635_v10, %s4597_s24 }
0x1836   :  { %v4537_v17 = vpop.eup %4536 }
0x1837   :  { %v3822_v54 = vmul.f32 %v4537_v17, %v6049_v48  ;;  %v3797_v56 = vpop.xlane.xlu1 %3796  ;;  %v3415_v32 = vpop.xlane.xlu0 %3414 }
0x1838   :  { %1642 = vrot.lane.b32.xlu0 %v5633_v15, %s4597_s24  ;;  %4538 = vrcp.f32 %v3797_v56 }
0x1839   :  { %v3829_v29 = vpack.c.bf16 %v3822_v54, %v3821_v57 }
0x183b   :  { %4197 = vmatmul.msk.bf16.vlgmr.msrb.gmra.mxu1 %vm674_vm2, %v3829_v29 }
0x183e   :  { %v4539_v42 = vpop.eup %4538 }
0x183f   :  { %v3800_v0 = vpop.xlane.xlu1 %3799  ;;  %v3823_v10 = vmul.f32 %v4539_v42, %v6061_v62 }
0x1840   :  { %4540 = vrcp.f32 %v3800_v0 }
0x1841   :  { %4542 = vrcp.f32 %v3412_v12 }
0x1843   :  { %v3468_v25 = vpop.f32.mrf.mxu3 }
0x1846   :  { %v4541_v58 = vpop.eup %4540 }
0x1847   :  { %v3824_v2 = vmul.f32 %v4541_v58, %v6070_v31  ;;  %v3803_v6 = vpop.xlane.xlu2 %3802  ;;  %v3409_v47 = vpop.xlane.xlu1 %3408 }
0x1848   :  { %4544 = vrcp.f32 %v3409_v47  ;;  %v4543_v38 = vpop.eup %4542 }
0x1849   :  { %v3830_v53 = vpack.c.bf16 %v3824_v2, %v3823_v10  ;;  %4546 = vrcp.f32 %v3803_v6  ;;  %v3432_v19 = vmul.f32 %v4543_v38, %v6046_v43 }
0x184b   :  { %v3470_v15 = vpop.f32.mrf.mxu3  ;;  %4198 = vmatmul.msk.bf16.gmra.mxu1 %vm674_vm2, %v3830_v53 }
0x184c   :  { %v3488_v46 = vpack.c.bf16 %v3470_v15, %v3468_v25 }
0x184e   :  { %4187 = vmatmul.msk.bf16.vlgmr.msra.gmra.mxu2 %vm537_vm1, %v3488_v46  ;;  %v4545_v40 = vpop.eup %4544 }
0x184f   :  { %v3418_v34 = vpop.xlane.xlu2 %3417  ;;  %v3806_v48 = vpop.xlane.xlu1 %3805  ;;  %v3431_v62 = vmul.f32 %v4545_v40, %v6076_v45 }
0x1850   :  { %4548 = vrcp.f32 %v3806_v48  ;;  %v4547_v5 = vpop.eup %4546 }
0x1851   :  { %v3437_v31 = vpack.c.bf16 %v3432_v19, %v3431_v62  ;;  %4550 = vrcp.f32 %v3418_v34  ;;  %v3825_v63 = vmul.f32 %v4547_v5, %v6080_v33 }
0x1852   :  { %4552 = vrcp.f32 %v3415_v32 }
0x1853   :  { %4185 = vmatmul.msk.bf16.gmra.mxu3 %vm674_vm2, %v3437_v31 }
0x1856   :  { %v4549_v51 = vpop.eup %4548 }
0x1857   :  { %v1236_v21 = vpop.permute.xlu2 %1235  ;;  %v3826_v11 = vmul.f32 %v4549_v51, %v6089_v35  ;;  %v4551_v24 = vpop.eup %4550 }
0x1858   :  { %1260 = vst.msk [vmem:[#allocation2] sm:$0xff] %vm1259_vm3, %v1236_v21  ;;  %v3809_v45 = vpop.xlane.xlu1 %3808  ;;  %v4553_v52 = vpop.eup %4552  ;;  %v3434_v9 = vmul.f32 %v4551_v24, %v6086_v41 }
0x1859   :  { %v3831_v43 = vpack.c.bf16 %v3826_v11, %v3825_v63  ;;  %4554 = vrcp.f32 %v3809_v45  ;;  %v3433_v59 = vmul.f32 %v4553_v52, %v6057_v22 }
0x185b   :  { %4199 = vmatmul.msk.bf16.gmra.mxu1 %vm674_vm2, %v3831_v43  ;;  %v3438_v33 = vpack.c.bf16 %v3434_v9, %v3433_v59 }
0x185f   :  { %v1242_v26 = vpop.permute.xlu2 %1241  ;;  %v3812_v44 = vpop.xlane.xlu0 %3811 }
0x1860   :  { %1263 = vst.msk [vmem:[#allocation2 + $0x18] sm:$0xff] %vm1259_vm3, %v1242_v26  ;;  %4556 = vrcp.f32 %v3812_v44  ;;  %v4555_v35 = vpop.eup %4554 }
0x1861   :  { %v3827_v49 = vmul.f32 %v4555_v35, %v6096_v3 }
0x1863   :  { %4186 = vmatmul.msk.bf16.gmra.mxu3 %vm674_vm2, %v3438_v33 }
0x1866   :  { %v4557_v1 = vpop.eup %4556 }
0x1867   :  { %v3828_v7 = vmul.f32 %v4557_v1, %v6100_v37  ;;  %v1248_v13 = vpop.permute.xlu2 %1247 }
0x1868   :  { %1266 = vst.msk [vmem:[#allocation2 + $0x30] sm:$0xff] %vm1259_vm3, %v1248_v13 }
0x1869   :  { %v3832_v41 = vpack.c.bf16 %v3828_v7, %v3827_v49 }
0x186b   :  { %4200 = vmatmul.msk.bf16.gmra.mxu1 %vm674_vm2, %v3832_v41 }
0x186f   :  { %v1633_v22 = vpop.permute.xlu2 %1632  ;;  %v1238_v30 = vpop.permute.xlu1 %1237 }
0x1870   :  { %1261 = vst.msk [vmem:[#allocation2 + $0x8] sm:$0xff] %vm1259_vm3, %v1238_v30  ;;  %v6245_v30 = vld [vmem:[#allocation8_spill] sm:$0xff] }
0x1871   :  { %1656 = vst.msk [vmem:[#allocation2 + $0x8] sm:$0xff] %vm1654_vm4, %v1633_v22 }
0x1872   :  { %v1240_v28 = vpop.permute.xlu0 %1239 }
0x1873   :  { %1262 = vst.msk [vmem:[#allocation2 + $0x10] sm:$0xff] %vm1259_vm3, %v1240_v28  ;;  %v6246_v28 = vld [vmem:[#allocation7_spill] sm:$0xff] }
0x1877   :  { %v3154_v20 = vpop.permute.xlu2 %3153  ;;  %v1246_v3 = vpop.permute.xlu1 %1245 }
0x1878   :  { %3176 = vst.msk [vmem:[#allocation2 + $0x48] sm:$0xff] %vm1259_vm3, %v3154_v20 }
0x1879   :  { %1265 = vst.msk [vmem:[#allocation2 + $0x28] sm:$0xff] %vm1259_vm3, %v1246_v3 }
0x187a   :  { %v1244_v37 = vpop.permute.xlu0 %1243 }
0x187b   :  { %1264 = vst.msk [vmem:[#allocation2 + $0x20] sm:$0xff] %vm1259_vm3, %v1244_v37 }
0x187e   :  { %v3473_v27 = vpop.f32.mrf.mxu3 }
0x187f   :  { %v3160_v61 = vpop.permute.xlu2 %3159  ;;  %v1631_v36 = vpop.permute.xlu1 %1630 }
0x1880   :  { %3179 = vst.msk [vmem:[#allocation2 + $0x60] sm:$0xff] %vm1259_vm3, %v3160_v61 }
0x1881   :  { %1655 = vst.msk [vmem:[#allocation2] sm:$0xff] %vm1654_vm4, %v1631_v36 }
0x1882   :  { %v1250_v23 = vpop.permute.xlu0 %1249 }
0x1883   :  { %1267 = vst.msk [vmem:[#allocation2 + $0x38] sm:$0xff] %vm1259_vm3, %v1250_v23 }
0x1886   :  { %v3475_v39 = vpop.f32.mrf.mxu3 }
0x1887   :  { %v3489_v60 = vpack.c.bf16 %v3475_v39, %v3473_v27  ;;  %v3166_v14 = vpop.permute.xlu2 %3165  ;;  %v3152_v17 = vpop.permute.xlu1 %3151 }
0x1888   :  { %3182 = vst.msk [vmem:[#allocation2 + $0x78] sm:$0xff] %vm1259_vm3, %v3166_v14 }
0x1889   :  { %3175 = vst.msk [vmem:[#allocation2 + $0x40] sm:$0xff] %vm1259_vm3, %v3152_v17  ;;  %4188 = vmatmul.msk.bf16.gmra.mxu2 %vm537_vm1, %v3489_v60 }
0x188a   :  { %v1635_v57 = vpop.permute.xlu0 %1634 }
0x188b   :  { %1657 = vst.msk [vmem:[#allocation2 + $0x10] sm:$0xff] %vm1654_vm4, %v1635_v57 }
0x188f   :  { %v1641_v54 = vpop.permute.xlu2 %1640  ;;  %v3158_v56 = vpop.permute.xlu1 %3157 }
0x1890   :  { %1660 = vst.msk [vmem:[#allocation2 + $0x28] sm:$0xff] %vm1654_vm4, %v1641_v54 }
0x1891   :  { %3178 = vst.msk [vmem:[#allocation2 + $0x58] sm:$0xff] %vm1259_vm3, %v3158_v56 }
0x1892   :  { %v3156_v29 = vpop.permute.xlu0 %3155 }
0x1893   :  { %3177 = vst.msk [vmem:[#allocation2 + $0x50] sm:$0xff] %vm1259_vm3, %v3156_v29 }
0x1897   :  { %v3164_v0 = vpop.permute.xlu1 %3163 }
0x1898   :  { %3181 = vst.msk [vmem:[#allocation2 + $0x70] sm:$0xff] %vm1259_vm3, %v3164_v0 }
0x189a   :  { %v3162_v25 = vpop.permute.xlu0 %3161 }
0x189b   :  { %3180 = vst.msk [vmem:[#allocation2 + $0x68] sm:$0xff] %vm1259_vm3, %v3162_v25 }
0x189f   :  { %v1639_v42 = vpop.permute.xlu1 %1638 }
0x18a0   :  { %1659 = vst.msk [vmem:[#allocation2 + $0x20] sm:$0xff] %vm1654_vm4, %v1639_v42 }
0x18a2   :  { %v1637_v12 = vpop.permute.xlu0 %1636 }
0x18a3   :  { %1658 = vst.msk [vmem:[#allocation2 + $0x18] sm:$0xff] %vm1654_vm4, %v1637_v12 }
0x18a7   :  { %v1645_v58 = vpop.permute.xlu1 %1644 }
0x18a8   :  { %1662 = vst.msk [vmem:[#allocation2 + $0x38] sm:$0xff] %vm1654_vm4, %v1645_v58 }
0x18aa   :  { %v1643_v10 = vpop.permute.xlu0 %1642 }
0x18ab   :  { %1661 = vst.msk [vmem:[#allocation2 + $0x30] sm:$0xff] %vm1654_vm4, %v1643_v10 }
0x18b8   :  { %v3862_v2 = vpop.f32.mrf.mxu1 }
0x18c0   :  { %v3864_v6 = vpop.f32.mrf.mxu1 }
0x18c1   :  { %v3882_v47 = vpack.c.bf16 %v3864_v6, %v3862_v2 }
0x18c3   :  { %4201 = vmatmul.msk.bf16.vlgmr.msra.gmra.mxu3 %vm537_vm1, %v3882_v47 }
0x18c8   :  { %v3867_v53 = vpop.f32.mrf.mxu1 }
0x18d0   :  { %v3869_v15 = vpop.f32.mrf.mxu1 }
0x18d1   :  { %v3883_v46 = vpack.c.bf16 %v3869_v15, %v3867_v53  ;;  %v3517_v38 = vpop.f32.mrf.mxu2 }
0x18d2   :  { %3545 = vrot.lane.b32.xlu2 %v3517_v38, %s4597_s24 }
0x18d3   :  { %4202 = vmatmul.msk.bf16.gmra.mxu3 %vm537_vm1, %v3883_v46 }
0x18d6   :  { %v3478_v40 = vpop.f32.mrf.mxu3 }
0x18d8   :  { %v3872_v34 = vpop.f32.mrf.mxu1 }
0x18d9   :  { %v3519_v48 = vpop.f32.mrf.mxu2 }
0x18da   :  { %3547 = vrot.lane.b32.xlu0 %v3519_v48, %s4597_s24 }
0x18de   :  { %v3480_v19 = vpop.f32.mrf.mxu3 }
0x18df   :  { %v3490_v62 = vpack.c.bf16 %v3480_v19, %v3478_v40 }
0x18e0   :  { %v3874_v31 = vpop.f32.mrf.mxu1 }
0x18e1   :  { %v3884_v32 = vpack.c.bf16 %v3874_v31, %v3872_v34  ;;  %4189 = vmatmul.msk.bf16.gmra.mxu2 %vm537_vm1, %v3490_v62 }
0x18e3   :  { %4203 = vmatmul.msk.bf16.gmra.mxu3 %vm537_vm1, %v3884_v32 }
0x18e6   :  { %v3483_v5 = vpop.f32.mrf.mxu3 }
0x18e8   :  { %v3877_v51 = vpop.f32.mrf.mxu1 }
0x18ee   :  { %v3485_v21 = vpop.f32.mrf.mxu3 }
0x18ef   :  { %v3491_v63 = vpack.c.bf16 %v3485_v21, %v3483_v5 }
0x18f0   :  { %v3879_v11 = vpop.f32.mrf.mxu1 }
0x18f1   :  { %v3885_v43 = vpack.c.bf16 %v3879_v11, %v3877_v51  ;;  %4190 = vmatmul.msk.bf16.gmra.mxu2 %vm537_vm1, %v3491_v63 }
0x18f3   :  { %4204 = vmatmul.msk.bf16.gmra.mxu3 %vm537_vm1, %v3885_v43 }
0x190c   :  { %v3522_v24 = vpop.f32.mrf.mxu2 }
0x190d   :  { %3549 = vrot.lane.b32.xlu1 %v3522_v24, %s4597_s24 }
0x1914   :  { %v3524_v45 = vpop.f32.mrf.mxu2 }
0x1915   :  { %3551 = vrot.lane.b32.xlu2 %v3524_v45, %s4597_s24 }
0x192c   :  { %v3546_v52 = vpop.permute.xlu2 %3545 }
0x192d   :  { %3569 = vst.msk [vmem:[#allocation2 + $0x40] sm:$0xff] %vm1654_vm4, %v3546_v52 }
0x1946   :  { %v3911_v26 = vpop.f32.mrf.mxu3 }
0x194c   :  { %v3548_v9 = vpop.permute.xlu0 %3547 }
0x194d   :  { %3570 = vst.msk [vmem:[#allocation2 + $0x48] sm:$0xff] %vm1654_vm4, %v3548_v9 }
0x194e   :  { %v3913_v44 = vpop.f32.mrf.mxu3 }
0x1956   :  { %v3916_v33 = vpop.f32.mrf.mxu3 }
0x195e   :  { %v3918_v49 = vpop.f32.mrf.mxu3 }
0x1964   :  { %v3527_v59 = vpop.f32.mrf.mxu2 }
0x1965   :  { %3553 = vrot.lane.b32.xlu0 %v3527_v59, %s4597_s24 }
0x1966   :  { %v3921_v41 = vpop.f32.mrf.mxu3 }
0x196c   :  { %v3529_v35 = vpop.f32.mrf.mxu2 }
0x196d   :  { %3555 = vrot.lane.b32.xlu1 %v3529_v35, %s4597_s24 }
0x196f   :  { %v3552_v1 = vpop.permute.xlu2 %3551 }
0x1970   :  { %3572 = vst.msk [vmem:[#allocation2 + $0x58] sm:$0xff] %vm1654_vm4, %v3552_v1 }
0x1974   :  { %v3532_v7 = vpop.f32.mrf.mxu2 }
0x1975   :  { %2025 = vrot.lane.b32.xlu1 %v5637_v50, %s4598_s25  ;;  %3557 = vrot.lane.b32.xlu2 %v3532_v7, %s4597_s24  ;;  %v3923_v50 = vpop.f32.mrf.mxu3 }
0x197c   :  { %v3534_v13 = vpop.f32.mrf.mxu2 }
0x197d   :  { %2031 = vrot.lane.b32.xlu1 %v5647_v16, %s4598_s25  ;;  %2027 = vrot.lane.b32.xlu2 %v5640_v4, %s4598_s25  ;;  %v3926_v16 = vpop.f32.mrf.mxu3 }
0x197e   :  { %3559 = vrot.lane.b32.xlu0 %v3534_v13, %s4597_s24 }
0x197f   :  { %v3550_v22 = vpop.permute.xlu1 %3549 }
0x1980   :  { %3571 = vst.msk [vmem:[#allocation2 + $0x50] sm:$0xff] %vm1654_vm4, %v3550_v22 }
0x1985   :  { %2037 = vrot.lane.b32.xlu1 %v5657_v18, %s4598_s25  ;;  %2033 = vrot.lane.b32.xlu2 %v5650_v55, %s4598_s25  ;;  %v3928_v4 = vpop.f32.mrf.mxu3 }
0x1986   :  { %2029 = vrot.lane.b32.xlu0 %v5642_v8, %s4598_s25 }
0x198d   :  { %3941 = vrot.lane.b32.xlu1 %v3913_v44, %s4598_s25  ;;  %2039 = vrot.lane.b32.xlu2 %v6245_v30, %s4598_s25 }
0x198e   :  { %2035 = vrot.lane.b32.xlu0 %v6246_v28, %s4598_s25 }
0x1995   :  { %3947 = vrot.lane.b32.xlu1 %v3921_v41, %s4598_s25  ;;  %3943 = vrot.lane.b32.xlu2 %v3916_v33, %s4598_s25 }
0x1996   :  { %3939 = vrot.lane.b32.xlu0 %v3911_v26, %s4598_s25 }
0x199d   :  { %3949 = vrot.lane.b32.xlu2 %v3923_v50, %s4598_s25  ;;  %3953 = vrot.lane.b32.xlu1 %v3928_v4, %s4598_s25 }
0x199e   :  { %3945 = vrot.lane.b32.xlu0 %v3918_v49, %s4598_s25 }
0x19a6   :  { %3951 = vrot.lane.b32.xlu0 %v3926_v16, %s4598_s25 }
0x19cf   :  { %v3558_v18 = vpop.permute.xlu2 %3557 }
0x19d0   :  { %3575 = vst.msk [vmem:[#allocation2 + $0x70] sm:$0xff] %vm1654_vm4, %v3558_v18 }
0x19d7   :  { %v2028_v8 = vpop.permute.xlu2 %2027  ;;  %v3554_v55 = vpop.permute.xlu0 %3553 }
0x19d8   :  { %2051 = vst.msk [vmem:[#allocation2 + $0x8] sm:$0xff] %vm2049_vm5, %v2028_v8 }
0x19d9   :  { %3573 = vst.msk [vmem:[#allocation2 + $0x60] sm:$0xff] %vm1654_vm4, %v3554_v55 }
0x19df   :  { %v3556_v20 = vpop.permute.xlu1 %3555  ;;  %v2034_v3 = vpop.permute.xlu2 %2033 }
0x19e0   :  { %3574 = vst.msk [vmem:[#allocation2 + $0x68] sm:$0xff] %vm1654_vm4, %v3556_v20 }
0x19e1   :  { %2054 = vst.msk [vmem:[#allocation2 + $0x20] sm:$0xff] %vm2049_vm5, %v2034_v3 }
0x19e7   :  { %v2026_v37 = vpop.permute.xlu1 %2025  ;;  %v2040_v27 = vpop.permute.xlu2 %2039 }
0x19e8   :  { %2050 = vst.msk [vmem:[#allocation2] sm:$0xff] %vm2049_vm5, %v2026_v37 }
0x19e9   :  { %2057 = vst.msk [vmem:[#allocation2 + $0x38] sm:$0xff] %vm2049_vm5, %v2040_v27 }
0x19ef   :  { %v2032_v61 = vpop.permute.xlu1 %2031  ;;  %v3944_v36 = vpop.permute.xlu2 %3943 }
0x19f0   :  { %2053 = vst.msk [vmem:[#allocation2 + $0x18] sm:$0xff] %vm2049_vm5, %v2032_v61  ;;  %v3560_v23 = vpop.permute.xlu0 %3559 }
0x19f1   :  { %3965 = vst.msk [vmem:[#allocation2 + $0x50] sm:$0xff] %vm2049_vm5, %v3944_v36 }
0x19f2   :  { %3576 = vst.msk [vmem:[#allocation2 + $0x78] sm:$0xff] %vm1654_vm4, %v3560_v23 }
0x19f7   :  { %v2038_v39 = vpop.permute.xlu1 %2037  ;;  %v3950_v60 = vpop.permute.xlu2 %3949 }
0x19f8   :  { %2056 = vst.msk [vmem:[#allocation2 + $0x30] sm:$0xff] %vm2049_vm5, %v2038_v39  ;;  %v2030_v14 = vpop.permute.xlu0 %2029 }
0x19f9   :  { %3968 = vst.msk [vmem:[#allocation2 + $0x68] sm:$0xff] %vm2049_vm5, %v3950_v60 }
0x19fa   :  { %2052 = vst.msk [vmem:[#allocation2 + $0x10] sm:$0xff] %vm2049_vm5, %v2030_v14 }
0x19ff   :  { %v3942_v17 = vpop.permute.xlu1 %3941 }
0x1a00   :  { %3964 = vst.msk [vmem:[#allocation2 + $0x48] sm:$0xff] %vm2049_vm5, %v3942_v17  ;;  %v2036_v57 = vpop.permute.xlu0 %2035 }
0x1a01   :  { %2055 = vst.msk [vmem:[#allocation2 + $0x28] sm:$0xff] %vm2049_vm5, %v2036_v57 }
0x1a07   :  { %v3948_v54 = vpop.permute.xlu1 %3947 }
0x1a08   :  { %3967 = vst.msk [vmem:[#allocation2 + $0x60] sm:$0xff] %vm2049_vm5, %v3948_v54  ;;  %v3940_v56 = vpop.permute.xlu0 %3939 }
0x1a09   :  { %3963 = vst.msk [vmem:[#allocation2 + $0x40] sm:$0xff] %vm2049_vm5, %v3940_v56 }
0x1a0f   :  { %v3954_v29 = vpop.permute.xlu1 %3953 }
0x1a10   :  { %3970 = vst.msk [vmem:[#allocation2 + $0x78] sm:$0xff] %vm2049_vm5, %v3954_v29  ;;  %v3946_v0 = vpop.permute.xlu0 %3945 }
0x1a11   :  { %3966 = vst.msk [vmem:[#allocation2 + $0x58] sm:$0xff] %vm2049_vm5, %v3946_v0 }
0x1a18   :  { %v3952_v25 = vpop.permute.xlu0 %3951 }
0x1a19   :  { %3969 = vst.msk [vmem:[#allocation2 + $0x70] sm:$0xff] %vm2049_vm5, %v3952_v25 }
0x1a1a   :  { %3983 = dma.vmem_to_hbm [thread:$0]  %s3976_s27, 2048, %s3978_s29, [#allocation3], %s4600_s30, %s4600_s30, %s4601_s6  }
0x1a1b   :  { %4593 = dma.done.wait [#allocation3], 2048  }
0x1a1c   :  { %4594 = vsyncadd [#allocation3], 4294965248 }
0x1a1d   :  { %3988 = vsyncpa [#allocation3], 1 }

</bundles_post_ra>
